<compile_context>
chip_gen: v6e
topology: v6e:2x2x1
jax: 0.10.0
libtpu: 0.0.40
codegen_flags: <defaults>
</compile_context>

<pallas_src>
import functools

import jax
import jax.numpy as jnp
from jax.experimental import pallas as pl
from jax.experimental.pallas import tpu as pltpu

EPS = 1e-5
LANE = 128


def _round_up(x, m):
    return ((x + m - 1) // m) * m


# ----------------------------- layout helpers (JAX glue) --------------------

def _phase_split(x_pad, s):
    """(N, Hp, Wp, C) -> (N*s*s, Hq, Wq, C) with
    out[n*s*s + ph*s + pw, i, j, c] == x_pad[n, s*i + ph, s*j + pw, c]."""
    N, Hp, Wp, C = x_pad.shape
    Hq = -(-Hp // s)
    Wq = -(-Wp // s)
    x_pad = jnp.pad(x_pad, ((0, 0), (0, Hq * s - Hp), (0, Wq * s - Wp), (0, 0)))
    x = x_pad.reshape(N, Hq, s, Wq, s, C)
    x = jnp.transpose(x, (0, 2, 4, 1, 3, 5))  # (N, s, s, Hq, Wq, C)
    return x.reshape(N * s * s, Hq, Wq, C)


def _prep_w3x3(w, cin_p, cout_p):
    """(Cout, Cin, 3, 3) -> (9, Cin_p, Cout_p) bf16, tap-major (kh*3+kw)."""
    cout, cin = w.shape[0], w.shape[1]
    wt = jnp.transpose(w, (2, 3, 1, 0)).reshape(9, cin, cout)
    wt = jnp.pad(wt, ((0, 0), (0, cin_p - cin), (0, cout_p - cout)))
    return wt.astype(jnp.bfloat16)


def _prep_w1x1(w, cin_p, cout_p):
    """(Cout, Cin, 1, 1) -> (Cin_p, Cout_p) bf16."""
    cout, cin = w.shape[0], w.shape[1]
    wt = jnp.transpose(w.reshape(cout, cin), (1, 0))
    wt = jnp.pad(wt, ((0, cin_p - cin), (0, cout_p - cout)))
    return wt.astype(jnp.bfloat16)


def _prep_row(v, cp):
    """(C,) -> (1, Cp) f32."""
    return jnp.pad(v, (0, cp - v.shape[0]))[None, :].astype(jnp.float32)


def _prep_vec(v, cp):
    """(C,) -> (Cp,) f32."""
    return jnp.pad(v, (0, cp - v.shape[0])).astype(jnp.float32)


def _bn_scale_shift(stats, count, gamma_p, beta_p):
    """Per-channel training-mode BN scale/shift from per-image [sum, sumsq]."""
    ssum = jnp.sum(stats[:, 0, :], axis=0)
    ssq = jnp.sum(stats[:, 1, :], axis=0)
    mean = ssum / count
    var = jnp.maximum(ssq / count - mean * mean, 0.0)
    scale = gamma_p * jax.lax.rsqrt(var + EPS)
    shift = beta_p - mean * scale
    return scale[None, :], shift[None, :]


# ----------------------------- kernel 1: conv1 + BN1 stats ------------------

def conv1_stats(xph, w, b, *, N, stride, Ho, Wo, cin_p, cout_p):
    s = stride
    Hq, Wq = xph.shape[1], xph.shape[2]
    MI = Ho * Wo
    # tap (kh, kw) -> (phase index p, in-phase offsets (di, dj), weight tap index t)
    taps = [((kh % s) * s + (kw % s), kh // s, kw // s, kh * 3 + kw)
            for kh in range(3) for kw in range(3)]

    def kernel(x_ref, w_ref, b_ref, y_ref, st_ref):
        acc = None
        for (p, di, dj, t) in taps:
            xt = x_ref[p, di:di + Ho, dj:dj + Wo, :].reshape(MI, cin_p)  # bf16
            pt = jnp.dot(xt, w_ref[t], preferred_element_type=jnp.float32)
            acc = pt if acc is None else acc + pt
        y = acc + b_ref[...]
        y_ref[0] = y
        st_ref[0, 0:1, :] = jnp.sum(y, axis=0, keepdims=True)
        st_ref[0, 1:2, :] = jnp.sum(y * y, axis=0, keepdims=True)

    return pl.pallas_call(
        kernel,
        out_shape=(jax.ShapeDtypeStruct((N, MI, cout_p), jnp.float32),
                   jax.ShapeDtypeStruct((N, 2, cout_p), jnp.float32)),
        grid=(N,),
        in_specs=[
            pl.BlockSpec((s * s, Hq, Wq, cin_p), lambda n: (n, 0, 0, 0)),
            pl.BlockSpec((9, cin_p, cout_p), lambda n: (0, 0, 0)),   # resident weights
            pl.BlockSpec((1, cout_p), lambda n: (0, 0)),
        ],
        out_specs=(
            pl.BlockSpec((1, MI, cout_p), lambda n: (n, 0, 0)),
            pl.BlockSpec((1, 2, cout_p), lambda n: (n, 0, 0)),
        ),
        compiler_params=pltpu.CompilerParams(dimension_semantics=("parallel",)),
    )(xph, w, b)


# ------------------- kernel 2: BN1+ReLU fused into conv2 + BN2 stats --------

def conv2_bnrelu_stats(y1, scale1, shift1, w, b, *, N, Ho, Wo, cp):
    MI = Ho * Wo

    def kernel(y1_ref, s_ref, t_ref, w_ref, b_ref, y2_ref, st_ref, pad_ref):
        # BN1 + ReLU applied on the fly; interior of a zero-haloed bf16 scratch.
        a = jnp.maximum(y1_ref[0] * s_ref[...] + t_ref[...], 0.0)
        # zero only the halo border (interior is fully overwritten below)
        z_row = jnp.zeros((1, Wo + 2, cp), pad_ref.dtype)
        z_col = jnp.zeros((Ho + 2, 1, cp), pad_ref.dtype)
        pad_ref[0:1, :, :] = z_row
        pad_ref[Ho + 1:Ho + 2, :, :] = z_row
        pad_ref[:, 0:1, :] = z_col
        pad_ref[:, Wo + 1:Wo + 2, :] = z_col
        pad_ref[1:1 + Ho, 1:1 + Wo, :] = a.reshape(Ho, Wo, cp).astype(pad_ref.dtype)
        acc = None
        for i in range(9):
            kh, kw = divmod(i, 3)
            xt = pad_ref[kh:kh + Ho, kw:kw + Wo, :].reshape(MI, cp)  # bf16
            pt = jnp.dot(xt, w_ref[i], preferred_element_type=jnp.float32)
            acc = pt if acc is None else acc + pt
        y2 = acc + b_ref[...]
        y2_ref[0] = y2
        st_ref[0, 0:1, :] = jnp.sum(y2, axis=0, keepdims=True)
        st_ref[0, 1:2, :] = jnp.sum(y2 * y2, axis=0, keepdims=True)

    return pl.pallas_call(
        kernel,
        out_shape=(jax.ShapeDtypeStruct((N, MI, cp), jnp.float32),
                   jax.ShapeDtypeStruct((N, 2, cp), jnp.float32)),
        grid=(N,),
        in_specs=[
            pl.BlockSpec((1, MI, cp), lambda n: (n, 0, 0)),
            pl.BlockSpec((1, cp), lambda n: (0, 0)),
            pl.BlockSpec((1, cp), lambda n: (0, 0)),
            pl.BlockSpec((9, cp, cp), lambda n: (0, 0, 0)),          # resident weights
            pl.BlockSpec((1, cp), lambda n: (0, 0)),
        ],
        out_specs=(
            pl.BlockSpec((1, MI, cp), lambda n: (n, 0, 0)),
            pl.BlockSpec((1, 2, cp), lambda n: (n, 0, 0)),
        ),
        scratch_shapes=[pltpu.VMEM((Ho + 2, Wo + 2, cp), jnp.bfloat16)],
        compiler_params=pltpu.CompilerParams(dimension_semantics=("parallel",)),
    )(y1, scale1, shift1, w, b)


# ----------------- kernel 3: BN2 + residual (1x1 conv / identity) + ReLU ----

def bn2_residual_relu(y2, scale2, shift2, xres, wr, br, *,
                      N, stride, Ho, Wo, cin_p, cout_p, res_conv):
    MI = Ho * Wo

    if res_conv:
        s = stride
        Hq, Wq = xres.shape[1], xres.shape[2]
        # residual taps original input at (s*ho, s*wo) == padded coord (s*ho+1, s*wo+1)
        pm = 1 % s
        po = 1 // s
        p_idx = pm * s + pm

        def kernel(y2_ref, s_ref, t_ref, x_ref, wr_ref, br_ref, o_ref):
            xs = x_ref[0, po:po + Ho, po:po + Wo, :].reshape(MI, cin_p)
            r = jnp.dot(xs, wr_ref[...], preferred_element_type=jnp.float32) + br_ref[...]
            o_ref[0] = jnp.maximum(y2_ref[0] * s_ref[...] + t_ref[...] + r, 0.0)

        in_specs = [
            pl.BlockSpec((1, MI, cout_p), lambda n: (n, 0, 0)),
            pl.BlockSpec((1, cout_p), lambda n: (0, 0)),
            pl.BlockSpec((1, cout_p), lambda n: (0, 0)),
            # DMA only the single stride-phase the 1x1 conv actually samples
            pl.BlockSpec((1, Hq, Wq, cin_p), lambda n: (n * s * s + p_idx, 0, 0, 0)),
            pl.BlockSpec((cin_p, cout_p), lambda n: (0, 0)),
            pl.BlockSpec((1, cout_p), lambda n: (0, 0)),
        ]
        args = (y2, scale2, shift2, xres, wr, br)
    else:
        def kernel(y2_ref, s_ref, t_ref, xr_ref, o_ref):
            o_ref[0] = jnp.maximum(
                y2_ref[0] * s_ref[...] + t_ref[...] + xr_ref[0], 0.0)

        in_specs = [
            pl.BlockSpec((1, MI, cout_p), lambda n: (n, 0, 0)),
            pl.BlockSpec((1, cout_p), lambda n: (0, 0)),
            pl.BlockSpec((1, cout_p), lambda n: (0, 0)),
            pl.BlockSpec((1, MI, cin_p), lambda n: (n, 0, 0)),
        ]
        args = (y2, scale2, shift2, xres)

    return pl.pallas_call(
        kernel,
        out_shape=jax.ShapeDtypeStruct((N, MI, cout_p), jnp.float32),
        grid=(N,),
        in_specs=in_specs,
        out_specs=pl.BlockSpec((1, MI, cout_p), lambda n: (n, 0, 0)),
        compiler_params=pltpu.CompilerParams(dimension_semantics=("parallel",)),
    )(*args)


# ----------------------------- forward ---------------------------------------

@functools.partial(jax.jit, static_argnames=("stride", "res_conv"))
def resblock_forward(params, x_nchw, stride, res_conv):
    x = jnp.transpose(x_nchw, (0, 2, 3, 1)).astype(jnp.float32)  # NCHW -> NHWC
    N, H, W, Cin = x.shape
    Cout = params["conv1_w"].shape[0]
    if not res_conv:
        assert stride == 1 and Cin == Cout, \
            "identity shortcut requires stride==1 and in_channels==out_channels"
    cin_p = _round_up(Cin, LANE)
    cout_p = _round_up(Cout, LANE)
    Ho = (H - 1) // stride + 1
    Wo = (W - 1) // stride + 1
    M = N * Ho * Wo

    # zero-pad spatially (conv pad=1) and on channels (lane density); bf16 for the MXU
    xp = jnp.pad(x, ((0, 0), (1, 1), (1, 1), (0, cin_p - Cin))).astype(jnp.bfloat16)
    xph = _phase_split(xp, stride)

    w1 = _prep_w3x3(params["conv1_w"], cin_p, cout_p)
    b1 = _prep_row(params["conv1_b"], cout_p)
    w2 = _prep_w3x3(params["conv2_w"], cout_p, cout_p)
    b2 = _prep_row(params["conv2_b"], cout_p)
    g1 = _prep_vec(params["bn1_g"], cout_p)
    be1 = _prep_vec(params["bn1_b"], cout_p)
    g2 = _prep_vec(params["bn2_g"], cout_p)
    be2 = _prep_vec(params["bn2_b"], cout_p)

    # K1: conv1 + BN1 stats
    y1, st1 = conv1_stats(xph, w1, b1, N=N, stride=stride, Ho=Ho, Wo=Wo,
                          cin_p=cin_p, cout_p=cout_p)
    s1, t1 = _bn_scale_shift(st1, M, g1, be1)

    # K2: BN1+ReLU fused into conv2 + BN2 stats
    y2, st2 = conv2_bnrelu_stats(y1, s1, t1, w2, b2, N=N, Ho=Ho, Wo=Wo, cp=cout_p)
    s2, t2 = _bn_scale_shift(st2, M, g2, be2)

    # K3: BN2 + residual (1x1 conv or identity) + add + ReLU
    if res_conv:
        wr = _prep_w1x1(params["res_w"], cin_p, cout_p)
        br = _prep_row(params["res_b"], cout_p)
        xres = xph
    else:
        wr = br = None
        # identity shortcut gets f32 activations (no bf16 rounding on the add)
        xres = jnp.pad(x, ((0, 0), (0, 0), (0, 0), (0, cin_p - Cin))).reshape(N, H * W, cin_p)
    out = bn2_residual_relu(y2, s2, t2, xres, wr, br, N=N, stride=stride, Ho=Ho, Wo=Wo,
                            cin_p=cin_p, cout_p=cout_p, res_conv=res_conv)

    out = out.reshape(N, Ho, Wo, cout_p)[..., :Cout]
    return jnp.transpose(out, (0, 3, 1, 2))  # NHWC -> NCHW


# ----------------------------- params / pure-JAX reference -------------------

def init_resblock_params(key, in_channels, out_channels, res_conv):
    ks = jax.random.split(key, 10)
    p = {
        "conv1_w": 0.1 * jax.random.normal(ks[0], (out_channels, in_channels, 3, 3), jnp.float32),
        "conv1_b": 0.05 * jax.random.normal(ks[1], (out_channels,), jnp.float32),
        "bn1_g": 1.0 + 0.1 * jax.random.normal(ks[2], (out_channels,), jnp.float32),
        "bn1_b": 0.1 * jax.random.normal(ks[3], (out_channels,), jnp.float32),
        "conv2_w": 0.1 * jax.random.normal(ks[4], (out_channels, out_channels, 3, 3), jnp.float32),
        "conv2_b": 0.05 * jax.random.normal(ks[5], (out_channels,), jnp.float32),
        "bn2_g": 1.0 + 0.1 * jax.random.normal(ks[6], (out_channels,), jnp.float32),
        "bn2_b": 0.1 * jax.random.normal(ks[7], (out_channels,), jnp.float32),
    }
    if res_conv:
        p["res_w"] = 0.1 * jax.random.normal(ks[8], (out_channels, in_channels, 1, 1), jnp.float32)
        p["res_b"] = 0.05 * jax.random.normal(ks[9], (out_channels,), jnp.float32)
    return p


def resblock_reference(params, x, stride, res_conv):
    def conv(x, w, b, stride, pad):
        y = jax.lax.conv_general_dilated(
            x, w, (stride, stride), [(pad, pad), (pad, pad)],
            dimension_numbers=("NCHW", "OIHW", "NCHW"),
            precision=jax.lax.Precision.HIGHEST,
        )
        return y + b[None, :, None, None]

    def bn(y, g, b):
        mean = jnp.mean(y, axis=(0, 2, 3), keepdims=True)
        var = jnp.mean(jnp.square(y - mean), axis=(0, 2, 3), keepdims=True)
        return (y - mean) * jax.lax.rsqrt(var + EPS) * g[None, :, None, None] + b[None, :, None, None]

    y = conv(x, params["conv1_w"], params["conv1_b"], stride, 1)
    y = jnp.maximum(bn(y, params["bn1_g"], params["bn1_b"]), 0.0)
    y = conv(y, params["conv2_w"], params["conv2_b"], 1, 1)
    y = bn(y, params["bn2_g"], params["bn2_b"])
    r = conv(x, params["res_w"], params["res_b"], stride, 0) if res_conv else x
    return jnp.maximum(y + r, 0.0)


# ----------------------------- main ------------------------------------------

if __name__ == "__main__":
    key = jax.random.PRNGKey(0)
    kx, kp1, kp2 = jax.random.split(key, 3)

    x = jax.random.normal(kx, (2, 4, 16, 16), jnp.float32)  # NCHW

    # Config A: downsampling block with projection shortcut.
    params_a = init_resblock_params(kp1, in_channels=4, out_channels=8, res_conv=True)
    out_a = jax.block_until_ready(resblock_forward(params_a, x, stride=2, res_conv=True))
    ref_a = resblock_reference(params_a, x, 2, True)
    assert out_a.shape == (2, 8, 8, 8)
    err_a = jnp.abs(out_a - ref_a)
    # bf16 MXU operands vs an f32 HIGHEST-precision reference -> relaxed tolerance.
    assert jnp.allclose(out_a, ref_a, atol=4e-2, rtol=4e-2), float(jnp.max(err_a))
    assert float(jnp.mean(err_a)) < 1e-2

    # Config B: identity-shortcut block (stride=1, Cin==Cout).
    params_b = init_resblock_params(kp2, in_channels=4, out_channels=4, res_conv=False)
    out_b = jax.block_until_ready(resblock_forward(params_b, x, stride=1, res_conv=False))
    ref_b = resblock_reference(params_b, x, 1, False)
    assert out_b.shape == (2, 4, 16, 16)
    err_b = jnp.abs(out_b - ref_b)
    assert jnp.allclose(out_b, ref_b, atol=4e-2, rtol=4e-2), float(jnp.max(err_b))
    assert float(jnp.mean(err_b)) < 1e-2

    print("KERNEL_OK")
</pallas_src>

<mosaic_0001>
module attributes {stable_mosaic.version = 11 : i64} {
  func.func @kernel(%arg0: i32, %arg1: memref<4x9x9x128xbf16, #tpu.memory_space<vmem>>, %arg2: memref<9x128x128xbf16, #tpu.memory_space<vmem>>, %arg3: memref<1x128xf32, #tpu.memory_space<vmem>>, %arg4: memref<1x64x128xf32, #tpu.memory_space<vmem>>, %arg5: memref<1x2x128xf32, #tpu.memory_space<vmem>>) attributes {dimension_semantics = [#tpu.dimension_semantics<parallel>], iteration_bounds = array<i64: 2>, scalar_prefetch = 0 : i64, scratch_operands = 0 : i64, tpu.core_type = #tpu.core_type<tc>, window_params = [{transform_indices = @transform_0, window_bounds = array<i64: 4, 9, 9, 128>}, {pipeline_mode = #tpu.pipeline_mode<synchronous>, transform_indices = @transform_1, window_bounds = array<i64: 9, 128, 128>}, {pipeline_mode = #tpu.pipeline_mode<synchronous>, transform_indices = @transform_2, window_bounds = array<i64: 1, 128>}, {transform_indices = @transform_3, window_bounds = array<i64: 1, 64, 128>}, {transform_indices = @transform_4, window_bounds = array<i64: 1, 2, 128>}]} {
    %c0 = arith.constant 0 : index
    %c0_0 = arith.constant 0 : index
    %c0_1 = arith.constant 0 : index
    %c0_2 = arith.constant 0 : index
    %0 = vector.load %arg1[%c0, %c0_0, %c0_1, %c0_2] : memref<4x9x9x128xbf16, #tpu.memory_space<vmem>>, vector<1x8x8x128xbf16>
    %1 = vector.shape_cast %0 : vector<1x8x8x128xbf16> to vector<8x8x128xbf16>
    %2 = vector.shape_cast %1 : vector<8x8x128xbf16> to vector<64x128xbf16>
    %c0_3 = arith.constant 0 : index
    %c0_4 = arith.constant 0 : index
    %c0_5 = arith.constant 0 : index
    %3 = vector.load %arg2[%c0_3, %c0_4, %c0_5] : memref<9x128x128xbf16, #tpu.memory_space<vmem>>, vector<1x128x128xbf16>
    %4 = vector.shape_cast %3 : vector<1x128x128xbf16> to vector<128x128xbf16>
    %cst = arith.constant dense<0.000000e+00> : vector<64x128xf32>
    %5 = tpu.matmul %2, %4, %cst {dimension_numbers = #tpu.dot_dimension_numbers<[1], [0], [0], [1], [0, 0, 1, 1], [], []>} : vector<64x128xbf16>, vector<128x128xbf16>, vector<64x128xf32> -> vector<64x128xf32>
    %c1 = arith.constant 1 : index
    %c0_6 = arith.constant 0 : index
    %c0_7 = arith.constant 0 : index
    %c0_8 = arith.constant 0 : index
    %6 = vector.load %arg1[%c1, %c0_6, %c0_7, %c0_8] : memref<4x9x9x128xbf16, #tpu.memory_space<vmem>>, vector<1x8x8x128xbf16>
    %7 = vector.shape_cast %6 : vector<1x8x8x128xbf16> to vector<8x8x128xbf16>
    %8 = vector.shape_cast %7 : vector<8x8x128xbf16> to vector<64x128xbf16>
    %c1_9 = arith.constant 1 : index
    %c0_10 = arith.constant 0 : index
    %c0_11 = arith.constant 0 : index
    %9 = vector.load %arg2[%c1_9, %c0_10, %c0_11] : memref<9x128x128xbf16, #tpu.memory_space<vmem>>, vector<1x128x128xbf16>
    %10 = vector.shape_cast %9 : vector<1x128x128xbf16> to vector<128x128xbf16>
    %cst_12 = arith.constant dense<0.000000e+00> : vector<64x128xf32>
    %11 = tpu.matmul %8, %10, %cst_12 {dimension_numbers = #tpu.dot_dimension_numbers<[1], [0], [0], [1], [0, 0, 1, 1], [], []>} : vector<64x128xbf16>, vector<128x128xbf16>, vector<64x128xf32> -> vector<64x128xf32>
    %12 = arith.addf %5, %11 : vector<64x128xf32>
    %c0_13 = arith.constant 0 : index
    %c0_14 = arith.constant 0 : index
    %c1_15 = arith.constant 1 : index
    %c0_16 = arith.constant 0 : index
    %13 = vector.load %arg1[%c0_13, %c0_14, %c1_15, %c0_16] : memref<4x9x9x128xbf16, #tpu.memory_space<vmem>>, vector<1x8x8x128xbf16>
    %14 = vector.shape_cast %13 : vector<1x8x8x128xbf16> to vector<8x8x128xbf16>
    %15 = vector.shape_cast %14 : vector<8x8x128xbf16> to vector<64x128xbf16>
    %c2 = arith.constant 2 : index
    %c0_17 = arith.constant 0 : index
    %c0_18 = arith.constant 0 : index
    %16 = vector.load %arg2[%c2, %c0_17, %c0_18] : memref<9x128x128xbf16, #tpu.memory_space<vmem>>, vector<1x128x128xbf16>
    %17 = vector.shape_cast %16 : vector<1x128x128xbf16> to vector<128x128xbf16>
    %cst_19 = arith.constant dense<0.000000e+00> : vector<64x128xf32>
    %18 = tpu.matmul %15, %17, %cst_19 {dimension_numbers = #tpu.dot_dimension_numbers<[1], [0], [0], [1], [0, 0, 1, 1], [], []>} : vector<64x128xbf16>, vector<128x128xbf16>, vector<64x128xf32> -> vector<64x128xf32>
    %19 = arith.addf %12, %18 : vector<64x128xf32>
    %c2_20 = arith.constant 2 : index
    %c0_21 = arith.constant 0 : index
    %c0_22 = arith.constant 0 : index
    %c0_23 = arith.constant 0 : index
    %20 = vector.load %arg1[%c2_20, %c0_21, %c0_22, %c0_23] : memref<4x9x9x128xbf16, #tpu.memory_space<vmem>>, vector<1x8x8x128xbf16>
    %21 = vector.shape_cast %20 : vector<1x8x8x128xbf16> to vector<8x8x128xbf16>
    %22 = vector.shape_cast %21 : vector<8x8x128xbf16> to vector<64x128xbf16>
    %c3 = arith.constant 3 : index
    %c0_24 = arith.constant 0 : index
    %c0_25 = arith.constant 0 : index
    %23 = vector.load %arg2[%c3, %c0_24, %c0_25] : memref<9x128x128xbf16, #tpu.memory_space<vmem>>, vector<1x128x128xbf16>
    %24 = vector.shape_cast %23 : vector<1x128x128xbf16> to vector<128x128xbf16>
    %cst_26 = arith.constant dense<0.000000e+00> : vector<64x128xf32>
    %25 = tpu.matmul %22, %24, %cst_26 {dimension_numbers = #tpu.dot_dimension_numbers<[1], [0], [0], [1], [0, 0, 1, 1], [], []>} : vector<64x128xbf16>, vector<128x128xbf16>, vector<64x128xf32> -> vector<64x128xf32>
    %26 = arith.addf %19, %25 : vector<64x128xf32>
    %c3_27 = arith.constant 3 : index
    %c0_28 = arith.constant 0 : index
    %c0_29 = arith.constant 0 : index
    %c0_30 = arith.constant 0 : index
    %27 = vector.load %arg1[%c3_27, %c0_28, %c0_29, %c0_30] : memref<4x9x9x128xbf16, #tpu.memory_space<vmem>>, vector<1x8x8x128xbf16>
    %28 = vector.shape_cast %27 : vector<1x8x8x128xbf16> to vector<8x8x128xbf16>
    %29 = vector.shape_cast %28 : vector<8x8x128xbf16> to vector<64x128xbf16>
    %c4 = arith.constant 4 : index
    %c0_31 = arith.constant 0 : index
    %c0_32 = arith.constant 0 : index
    %30 = vector.load %arg2[%c4, %c0_31, %c0_32] : memref<9x128x128xbf16, #tpu.memory_space<vmem>>, vector<1x128x128xbf16>
    %31 = vector.shape_cast %30 : vector<1x128x128xbf16> to vector<128x128xbf16>
    %cst_33 = arith.constant dense<0.000000e+00> : vector<64x128xf32>
    %32 = tpu.matmul %29, %31, %cst_33 {dimension_numbers = #tpu.dot_dimension_numbers<[1], [0], [0], [1], [0, 0, 1, 1], [], []>} : vector<64x128xbf16>, vector<128x128xbf16>, vector<64x128xf32> -> vector<64x128xf32>
    %33 = arith.addf %26, %32 : vector<64x128xf32>
    %c2_34 = arith.constant 2 : index
    %c0_35 = arith.constant 0 : index
    %c1_36 = arith.constant 1 : index
    %c0_37 = arith.constant 0 : index
    %34 = vector.load %arg1[%c2_34, %c0_35, %c1_36, %c0_37] : memref<4x9x9x128xbf16, #tpu.memory_space<vmem>>, vector<1x8x8x128xbf16>
    %35 = vector.shape_cast %34 : vector<1x8x8x128xbf16> to vector<8x8x128xbf16>
    %36 = vector.shape_cast %35 : vector<8x8x128xbf16> to vector<64x128xbf16>
    %c5 = arith.constant 5 : index
    %c0_38 = arith.constant 0 : index
    %c0_39 = arith.constant 0 : index
    %37 = vector.load %arg2[%c5, %c0_38, %c0_39] : memref<9x128x128xbf16, #tpu.memory_space<vmem>>, vector<1x128x128xbf16>
    %38 = vector.shape_cast %37 : vector<1x128x128xbf16> to vector<128x128xbf16>
    %cst_40 = arith.constant dense<0.000000e+00> : vector<64x128xf32>
    %39 = tpu.matmul %36, %38, %cst_40 {dimension_numbers = #tpu.dot_dimension_numbers<[1], [0], [0], [1], [0, 0, 1, 1], [], []>} : vector<64x128xbf16>, vector<128x128xbf16>, vector<64x128xf32> -> vector<64x128xf32>
    %40 = arith.addf %33, %39 : vector<64x128xf32>
    %c0_41 = arith.constant 0 : index
    %c1_42 = arith.constant 1 : index
    %c0_43 = arith.constant 0 : index
    %c0_44 = arith.constant 0 : index
    %41 = vector.load %arg1[%c0_41, %c1_42, %c0_43, %c0_44] : memref<4x9x9x128xbf16, #tpu.memory_space<vmem>>, vector<1x8x8x128xbf16>
    %42 = vector.shape_cast %41 : vector<1x8x8x128xbf16> to vector<8x8x128xbf16>
    %43 = vector.shape_cast %42 : vector<8x8x128xbf16> to vector<64x128xbf16>
    %c6 = arith.constant 6 : index
    %c0_45 = arith.constant 0 : index
    %c0_46 = arith.constant 0 : index
    %44 = vector.load %arg2[%c6, %c0_45, %c0_46] : memref<9x128x128xbf16, #tpu.memory_space<vmem>>, vector<1x128x128xbf16>
    %45 = vector.shape_cast %44 : vector<1x128x128xbf16> to vector<128x128xbf16>
    %cst_47 = arith.constant dense<0.000000e+00> : vector<64x128xf32>
    %46 = tpu.matmul %43, %45, %cst_47 {dimension_numbers = #tpu.dot_dimension_numbers<[1], [0], [0], [1], [0, 0, 1, 1], [], []>} : vector<64x128xbf16>, vector<128x128xbf16>, vector<64x128xf32> -> vector<64x128xf32>
    %47 = arith.addf %40, %46 : vector<64x128xf32>
    %c1_48 = arith.constant 1 : index
    %c1_49 = arith.constant 1 : index
    %c0_50 = arith.constant 0 : index
    %c0_51 = arith.constant 0 : index
    %48 = vector.load %arg1[%c1_48, %c1_49, %c0_50, %c0_51] : memref<4x9x9x128xbf16, #tpu.memory_space<vmem>>, vector<1x8x8x128xbf16>
    %49 = vector.shape_cast %48 : vector<1x8x8x128xbf16> to vector<8x8x128xbf16>
    %50 = vector.shape_cast %49 : vector<8x8x128xbf16> to vector<64x128xbf16>
    %c7 = arith.constant 7 : index
    %c0_52 = arith.constant 0 : index
    %c0_53 = arith.constant 0 : index
    %51 = vector.load %arg2[%c7, %c0_52, %c0_53] : memref<9x128x128xbf16, #tpu.memory_space<vmem>>, vector<1x128x128xbf16>
    %52 = vector.shape_cast %51 : vector<1x128x128xbf16> to vector<128x128xbf16>
    %cst_54 = arith.constant dense<0.000000e+00> : vector<64x128xf32>
    %53 = tpu.matmul %50, %52, %cst_54 {dimension_numbers = #tpu.dot_dimension_numbers<[1], [0], [0], [1], [0, 0, 1, 1], [], []>} : vector<64x128xbf16>, vector<128x128xbf16>, vector<64x128xf32> -> vector<64x128xf32>
    %54 = arith.addf %47, %53 : vector<64x128xf32>
    %c0_55 = arith.constant 0 : index
    %c1_56 = arith.constant 1 : index
    %c1_57 = arith.constant 1 : index
    %c0_58 = arith.constant 0 : index
    %55 = vector.load %arg1[%c0_55, %c1_56, %c1_57, %c0_58] : memref<4x9x9x128xbf16, #tpu.memory_space<vmem>>, vector<1x8x8x128xbf16>
    %56 = vector.shape_cast %55 : vector<1x8x8x128xbf16> to vector<8x8x128xbf16>
    %57 = vector.shape_cast %56 : vector<8x8x128xbf16> to vector<64x128xbf16>
    %c8 = arith.constant 8 : index
    %c0_59 = arith.constant 0 : index
    %c0_60 = arith.constant 0 : index
    %58 = vector.load %arg2[%c8, %c0_59, %c0_60] : memref<9x128x128xbf16, #tpu.memory_space<vmem>>, vector<1x128x128xbf16>
    %59 = vector.shape_cast %58 : vector<1x128x128xbf16> to vector<128x128xbf16>
    %cst_61 = arith.constant dense<0.000000e+00> : vector<64x128xf32>
    %60 = tpu.matmul %57, %59, %cst_61 {dimension_numbers = #tpu.dot_dimension_numbers<[1], [0], [0], [1], [0, 0, 1, 1], [], []>} : vector<64x128xbf16>, vector<128x128xbf16>, vector<64x128xf32> -> vector<64x128xf32>
    %61 = arith.addf %54, %60 : vector<64x128xf32>
    %c0_62 = arith.constant 0 : index
    %c0_63 = arith.constant 0 : index
    %62 = vector.load %arg3[%c0_62, %c0_63] : memref<1x128xf32, #tpu.memory_space<vmem>>, vector<1x128xf32>
    %63 = vector.broadcast %62 : vector<1x128xf32> to vector<64x128xf32>
    %64 = arith.addf %61, %63 : vector<64x128xf32>
    %c0_64 = arith.constant 0 : index
    %c0_65 = arith.constant 0 : index
    %c0_66 = arith.constant 0 : index
    %65 = vector.load %arg4[%c0_64, %c0_65, %c0_66] : memref<1x64x128xf32, #tpu.memory_space<vmem>>, vector<1x64x128xf32>
    %66 = vector.shape_cast %65 : vector<1x64x128xf32> to vector<64x128xf32>
    %67 = vector.shape_cast %64 : vector<64x128xf32> to vector<1x64x128xf32>
    tpu.vector_store %arg4[%c0_64, %c0_65, %c0_66], %67 {strides = array<i32>} : memref<1x64x128xf32, #tpu.memory_space<vmem>>, vector<1x64x128xf32>,
    %cst_67 = arith.constant dense<0.000000e+00> : vector<128xf32>
    %68 = vector.multi_reduction <add>, %64, %cst_67 [0] : vector<64x128xf32> to vector<128xf32>
    %69 = vector.shape_cast %68 : vector<128xf32> to vector<1x128xf32>
    %c0_68 = arith.constant 0 : index
    %c0_69 = arith.constant 0 : index
    %c0_70 = arith.constant 0 : index
    %70 = vector.load %arg5[%c0_68, %c0_69, %c0_70] : memref<1x2x128xf32, #tpu.memory_space<vmem>>, vector<1x1x128xf32>
    %71 = vector.shape_cast %70 : vector<1x1x128xf32> to vector<1x128xf32>
    %72 = vector.shape_cast %69 : vector<1x128xf32> to vector<1x1x128xf32>
    tpu.vector_store %arg5[%c0_68, %c0_69, %c0_70], %72 {strides = array<i32>} : memref<1x2x128xf32, #tpu.memory_space<vmem>>, vector<1x1x128xf32>,
    %73 = arith.mulf %64, %64 : vector<64x128xf32>
    %cst_71 = arith.constant dense<0.000000e+00> : vector<128xf32>
    %74 = vector.multi_reduction <add>, %73, %cst_71 [0] : vector<64x128xf32> to vector<128xf32>
    %75 = vector.shape_cast %74 : vector<128xf32> to vector<1x128xf32>
    %c0_72 = arith.constant 0 : index
    %c1_73 = arith.constant 1 : index
    %c0_74 = arith.constant 0 : index
    %76 = vector.load %arg5[%c0_72, %c1_73, %c0_74] : memref<1x2x128xf32, #tpu.memory_space<vmem>>, vector<1x1x128xf32>
    %77 = vector.shape_cast %76 : vector<1x1x128xf32> to vector<1x128xf32>
    %78 = vector.shape_cast %75 : vector<1x128xf32> to vector<1x1x128xf32>
    tpu.vector_store %arg5[%c0_72, %c1_73, %c0_74], %78 {strides = array<i32>} : memref<1x2x128xf32, #tpu.memory_space<vmem>>, vector<1x1x128xf32>,
    return
  }
  func.func @transform_0(%arg0: i32) -> (i32, i32, i32, i32) {
    %c0_i32 = arith.constant 0 : i32
    %c0_i32_0 = arith.constant 0 : i32
    %c0_i32_1 = arith.constant 0 : i32
    %c0_i32_2 = arith.constant 0 : i32
    return %arg0, %c0_i32, %c0_i32_0, %c0_i32_1 : i32, i32, i32, i32
  }
  func.func @transform_1(%arg0: i32) -> (i32, i32, i32) {
    %c0_i32 = arith.constant 0 : i32
    %c0_i32_0 = arith.constant 0 : i32
    %c0_i32_1 = arith.constant 0 : i32
    %c0_i32_2 = arith.constant 0 : i32
    return %c0_i32, %c0_i32_0, %c0_i32_1 : i32, i32, i32
  }
  func.func @transform_2(%arg0: i32) -> (i32, i32) {
    %c0_i32 = arith.constant 0 : i32
    %c0_i32_0 = arith.constant 0 : i32
    %c0_i32_1 = arith.constant 0 : i32
    return %c0_i32, %c0_i32_0 : i32, i32
  }
  func.func @transform_3(%arg0: i32) -> (i32, i32, i32) {
    %c0_i32 = arith.constant 0 : i32
    %c0_i32_0 = arith.constant 0 : i32
    %c0_i32_1 = arith.constant 0 : i32
    return %arg0, %c0_i32, %c0_i32_0 : i32, i32, i32
  }
  func.func @transform_4(%arg0: i32) -> (i32, i32, i32) {
    %c0_i32 = arith.constant 0 : i32
    %c0_i32_0 = arith.constant 0 : i32
    %c0_i32_1 = arith.constant 0 : i32
    return %arg0, %c0_i32, %c0_i32_0 : i32, i32, i32
  }
}

module attributes {stable_mosaic.version = 11 : i64} {
  func.func @kernel(%arg0: i32, %arg1: memref<1x64x128xf32, #tpu.memory_space<vmem>>, %arg2: memref<1x128xf32, #tpu.memory_space<vmem>>, %arg3: memref<1x128xf32, #tpu.memory_space<vmem>>, %arg4: memref<9x128x128xbf16, #tpu.memory_space<vmem>>, %arg5: memref<1x128xf32, #tpu.memory_space<vmem>>, %arg6: memref<1x64x128xf32, #tpu.memory_space<vmem>>, %arg7: memref<1x2x128xf32, #tpu.memory_space<vmem>>, %arg8: memref<10x10x128xbf16, #tpu.memory_space<vmem>>) attributes {dimension_semantics = [#tpu.dimension_semantics<parallel>], iteration_bounds = array<i64: 2>, scalar_prefetch = 0 : i64, scratch_operands = 1 : i64, tpu.core_type = #tpu.core_type<tc>, window_params = [{transform_indices = @transform_0, window_bounds = array<i64: 1, 64, 128>}, {pipeline_mode = #tpu.pipeline_mode<synchronous>, transform_indices = @transform_1, window_bounds = array<i64: 1, 128>}, {pipeline_mode = #tpu.pipeline_mode<synchronous>, transform_indices = @transform_2, window_bounds = array<i64: 1, 128>}, {pipeline_mode = #tpu.pipeline_mode<synchronous>, transform_indices = @transform_3, window_bounds = array<i64: 9, 128, 128>}, {pipeline_mode = #tpu.pipeline_mode<synchronous>, transform_indices = @transform_4, window_bounds = array<i64: 1, 128>}, {transform_indices = @transform_5, window_bounds = array<i64: 1, 64, 128>}, {transform_indices = @transform_6, window_bounds = array<i64: 1, 2, 128>}]} {
    %c0 = arith.constant 0 : index
    %c0_0 = arith.constant 0 : index
    %c0_1 = arith.constant 0 : index
    %0 = vector.load %arg1[%c0, %c0_0, %c0_1] : memref<1x64x128xf32, #tpu.memory_space<vmem>>, vector<1x64x128xf32>
    %1 = vector.shape_cast %0 : vector<1x64x128xf32> to vector<64x128xf32>
    %c0_2 = arith.constant 0 : index
    %c0_3 = arith.constant 0 : index
    %2 = vector.load %arg2[%c0_2, %c0_3] : memref<1x128xf32, #tpu.memory_space<vmem>>, vector<1x128xf32>
    %3 = vector.broadcast %2 : vector<1x128xf32> to vector<64x128xf32>
    %4 = arith.mulf %1, %3 : vector<64x128xf32>
    %c0_4 = arith.constant 0 : index
    %c0_5 = arith.constant 0 : index
    %5 = vector.load %arg3[%c0_4, %c0_5] : memref<1x128xf32, #tpu.memory_space<vmem>>, vector<1x128xf32>
    %6 = vector.broadcast %5 : vector<1x128xf32> to vector<64x128xf32>
    %7 = arith.addf %4, %6 : vector<64x128xf32>
    %cst = arith.constant 0.000000e+00 : f32
    %8 = vector.broadcast %cst : f32 to vector<64x128xf32>
    %9 = arith.maximumf %7, %8 : vector<64x128xf32>
    %cst_6 = arith.constant 0.000000e+00 : bf16
    %10 = vector.broadcast %cst_6 : bf16 to vector<1x10x128xbf16>
    %cst_7 = arith.constant 0.000000e+00 : bf16
    %11 = vector.broadcast %cst_7 : bf16 to vector<10x1x128xbf16>
    %c0_8 = arith.constant 0 : index
    %c0_9 = arith.constant 0 : index
    %c0_10 = arith.constant 0 : index
    %12 = vector.load %arg8[%c0_8, %c0_9, %c0_10] : memref<10x10x128xbf16, #tpu.memory_space<vmem>>, vector<1x10x128xbf16>
    tpu.vector_store %arg8[%c0_8, %c0_9, %c0_10], %10 {strides = array<i32>} : memref<10x10x128xbf16, #tpu.memory_space<vmem>>, vector<1x10x128xbf16>,
    %c9 = arith.constant 9 : index
    %c0_11 = arith.constant 0 : index
    %c0_12 = arith.constant 0 : index
    %13 = vector.load %arg8[%c9, %c0_11, %c0_12] : memref<10x10x128xbf16, #tpu.memory_space<vmem>>, vector<1x10x128xbf16>
    tpu.vector_store %arg8[%c9, %c0_11, %c0_12], %10 {strides = array<i32>} : memref<10x10x128xbf16, #tpu.memory_space<vmem>>, vector<1x10x128xbf16>,
    %c0_13 = arith.constant 0 : index
    %c0_14 = arith.constant 0 : index
    %c0_15 = arith.constant 0 : index
    %14 = vector.load %arg8[%c0_13, %c0_14, %c0_15] : memref<10x10x128xbf16, #tpu.memory_space<vmem>>, vector<10x1x128xbf16>
    tpu.vector_store %arg8[%c0_13, %c0_14, %c0_15], %11 {strides = array<i32>} : memref<10x10x128xbf16, #tpu.memory_space<vmem>>, vector<10x1x128xbf16>,
    %c0_16 = arith.constant 0 : index
    %c9_17 = arith.constant 9 : index
    %c0_18 = arith.constant 0 : index
    %15 = vector.load %arg8[%c0_16, %c9_17, %c0_18] : memref<10x10x128xbf16, #tpu.memory_space<vmem>>, vector<10x1x128xbf16>
    tpu.vector_store %arg8[%c0_16, %c9_17, %c0_18], %11 {strides = array<i32>} : memref<10x10x128xbf16, #tpu.memory_space<vmem>>, vector<10x1x128xbf16>,
    %16 = vector.shape_cast %9 : vector<64x128xf32> to vector<8x8x128xf32>
    %17 = arith.truncf %16 : vector<8x8x128xf32> to vector<8x8x128xbf16>
    %c1 = arith.constant 1 : index
    %c1_19 = arith.constant 1 : index
    %c0_20 = arith.constant 0 : index
    %18 = vector.load %arg8[%c1, %c1_19, %c0_20] : memref<10x10x128xbf16, #tpu.memory_space<vmem>>, vector<8x8x128xbf16>
    tpu.vector_store %arg8[%c1, %c1_19, %c0_20], %17 {strides = array<i32>} : memref<10x10x128xbf16, #tpu.memory_space<vmem>>, vector<8x8x128xbf16>,
    %c0_21 = arith.constant 0 : index
    %c0_22 = arith.constant 0 : index
    %c0_23 = arith.constant 0 : index
    %19 = vector.load %arg8[%c0_21, %c0_22, %c0_23] : memref<10x10x128xbf16, #tpu.memory_space<vmem>>, vector<8x8x128xbf16>
    %20 = vector.shape_cast %19 : vector<8x8x128xbf16> to vector<64x128xbf16>
    %c0_24 = arith.constant 0 : index
    %c0_25 = arith.constant 0 : index
    %c0_26 = arith.constant 0 : index
    %21 = vector.load %arg4[%c0_24, %c0_25, %c0_26] : memref<9x128x128xbf16, #tpu.memory_space<vmem>>, vector<1x128x128xbf16>
    %22 = vector.shape_cast %21 : vector<1x128x128xbf16> to vector<128x128xbf16>
    %cst_27 = arith.constant dense<0.000000e+00> : vector<64x128xf32>
    %23 = tpu.matmul %20, %22, %cst_27 {dimension_numbers = #tpu.dot_dimension_numbers<[1], [0], [0], [1], [0, 0, 1, 1], [], []>} : vector<64x128xbf16>, vector<128x128xbf16>, vector<64x128xf32> -> vector<64x128xf32>
    %c0_28 = arith.constant 0 : index
    %c1_29 = arith.constant 1 : index
    %c0_30 = arith.constant 0 : index
    %24 = vector.load %arg8[%c0_28, %c1_29, %c0_30] : memref<10x10x128xbf16, #tpu.memory_space<vmem>>, vector<8x8x128xbf16>
    %25 = vector.shape_cast %24 : vector<8x8x128xbf16> to vector<64x128xbf16>
    %c1_31 = arith.constant 1 : index
    %c0_32 = arith.constant 0 : index
    %c0_33 = arith.constant 0 : index
    %26 = vector.load %arg4[%c1_31, %c0_32, %c0_33] : memref<9x128x128xbf16, #tpu.memory_space<vmem>>, vector<1x128x128xbf16>
    %27 = vector.shape_cast %26 : vector<1x128x128xbf16> to vector<128x128xbf16>
    %cst_34 = arith.constant dense<0.000000e+00> : vector<64x128xf32>
    %28 = tpu.matmul %25, %27, %cst_34 {dimension_numbers = #tpu.dot_dimension_numbers<[1], [0], [0], [1], [0, 0, 1, 1], [], []>} : vector<64x128xbf16>, vector<128x128xbf16>, vector<64x128xf32> -> vector<64x128xf32>
    %29 = arith.addf %23, %28 : vector<64x128xf32>
    %c0_35 = arith.constant 0 : index
    %c2 = arith.constant 2 : index
    %c0_36 = arith.constant 0 : index
    %30 = vector.load %arg8[%c0_35, %c2, %c0_36] : memref<10x10x128xbf16, #tpu.memory_space<vmem>>, vector<8x8x128xbf16>
    %31 = vector.shape_cast %30 : vector<8x8x128xbf16> to vector<64x128xbf16>
    %c2_37 = arith.constant 2 : index
    %c0_38 = arith.constant 0 : index
    %c0_39 = arith.constant 0 : index
    %32 = vector.load %arg4[%c2_37, %c0_38, %c0_39] : memref<9x128x128xbf16, #tpu.memory_space<vmem>>, vector<1x128x128xbf16>
    %33 = vector.shape_cast %32 : vector<1x128x128xbf16> to vector<128x128xbf16>
    %cst_40 = arith.constant dense<0.000000e+00> : vector<64x128xf32>
    %34 = tpu.matmul %31, %33, %cst_40 {dimension_numbers = #tpu.dot_dimension_numbers<[1], [0], [0], [1], [0, 0, 1, 1], [], []>} : vector<64x128xbf16>, vector<128x128xbf16>, vector<64x128xf32> -> vector<64x128xf32>
    %35 = arith.addf %29, %34 : vector<64x128xf32>
    %c1_41 = arith.constant 1 : index
    %c0_42 = arith.constant 0 : index
    %c0_43 = arith.constant 0 : index
    %36 = vector.load %arg8[%c1_41, %c0_42, %c0_43] : memref<10x10x128xbf16, #tpu.memory_space<vmem>>, vector<8x8x128xbf16>
    %37 = vector.shape_cast %36 : vector<8x8x128xbf16> to vector<64x128xbf16>
    %c3 = arith.constant 3 : index
    %c0_44 = arith.constant 0 : index
    %c0_45 = arith.constant 0 : index
    %38 = vector.load %arg4[%c3, %c0_44, %c0_45] : memref<9x128x128xbf16, #tpu.memory_space<vmem>>, vector<1x128x128xbf16>
    %39 = vector.shape_cast %38 : vector<1x128x128xbf16> to vector<128x128xbf16>
    %cst_46 = arith.constant dense<0.000000e+00> : vector<64x128xf32>
    %40 = tpu.matmul %37, %39, %cst_46 {dimension_numbers = #tpu.dot_dimension_numbers<[1], [0], [0], [1], [0, 0, 1, 1], [], []>} : vector<64x128xbf16>, vector<128x128xbf16>, vector<64x128xf32> -> vector<64x128xf32>
    %41 = arith.addf %35, %40 : vector<64x128xf32>
    %c1_47 = arith.constant 1 : index
    %c1_48 = arith.constant 1 : index
    %c0_49 = arith.constant 0 : index
    %42 = vector.load %arg8[%c1_47, %c1_48, %c0_49] : memref<10x10x128xbf16, #tpu.memory_space<vmem>>, vector<8x8x128xbf16>
    %43 = vector.shape_cast %42 : vector<8x8x128xbf16> to vector<64x128xbf16>
    %c4 = arith.constant 4 : index
    %c0_50 = arith.constant 0 : index
    %c0_51 = arith.constant 0 : index
    %44 = vector.load %arg4[%c4, %c0_50, %c0_51] : memref<9x128x128xbf16, #tpu.memory_space<vmem>>, vector<1x128x128xbf16>
    %45 = vector.shape_cast %44 : vector<1x128x128xbf16> to vector<128x128xbf16>
    %cst_52 = arith.constant dense<0.000000e+00> : vector<64x128xf32>
    %46 = tpu.matmul %43, %45, %cst_52 {dimension_numbers = #tpu.dot_dimension_numbers<[1], [0], [0], [1], [0, 0, 1, 1], [], []>} : vector<64x128xbf16>, vector<128x128xbf16>, vector<64x128xf32> -> vector<64x128xf32>
    %47 = arith.addf %41, %46 : vector<64x128xf32>
    %c1_53 = arith.constant 1 : index
    %c2_54 = arith.constant 2 : index
    %c0_55 = arith.constant 0 : index
    %48 = vector.load %arg8[%c1_53, %c2_54, %c0_55] : memref<10x10x128xbf16, #tpu.memory_space<vmem>>, vector<8x8x128xbf16>
    %49 = vector.shape_cast %48 : vector<8x8x128xbf16> to vector<64x128xbf16>
    %c5 = arith.constant 5 : index
    %c0_56 = arith.constant 0 : index
    %c0_57 = arith.constant 0 : index
    %50 = vector.load %arg4[%c5, %c0_56, %c0_57] : memref<9x128x128xbf16, #tpu.memory_space<vmem>>, vector<1x128x128xbf16>
    %51 = vector.shape_cast %50 : vector<1x128x128xbf16> to vector<128x128xbf16>
    %cst_58 = arith.constant dense<0.000000e+00> : vector<64x128xf32>
    %52 = tpu.matmul %49, %51, %cst_58 {dimension_numbers = #tpu.dot_dimension_numbers<[1], [0], [0], [1], [0, 0, 1, 1], [], []>} : vector<64x128xbf16>, vector<128x128xbf16>, vector<64x128xf32> -> vector<64x128xf32>
    %53 = arith.addf %47, %52 : vector<64x128xf32>
    %c2_59 = arith.constant 2 : index
    %c0_60 = arith.constant 0 : index
    %c0_61 = arith.constant 0 : index
    %54 = vector.load %arg8[%c2_59, %c0_60, %c0_61] : memref<10x10x128xbf16, #tpu.memory_space<vmem>>, vector<8x8x128xbf16>
    %55 = vector.shape_cast %54 : vector<8x8x128xbf16> to vector<64x128xbf16>
    %c6 = arith.constant 6 : index
    %c0_62 = arith.constant 0 : index
    %c0_63 = arith.constant 0 : index
    %56 = vector.load %arg4[%c6, %c0_62, %c0_63] : memref<9x128x128xbf16, #tpu.memory_space<vmem>>, vector<1x128x128xbf16>
    %57 = vector.shape_cast %56 : vector<1x128x128xbf16> to vector<128x128xbf16>
    %cst_64 = arith.constant dense<0.000000e+00> : vector<64x128xf32>
    %58 = tpu.matmul %55, %57, %cst_64 {dimension_numbers = #tpu.dot_dimension_numbers<[1], [0], [0], [1], [0, 0, 1, 1], [], []>} : vector<64x128xbf16>, vector<128x128xbf16>, vector<64x128xf32> -> vector<64x128xf32>
    %59 = arith.addf %53, %58 : vector<64x128xf32>
    %c2_65 = arith.constant 2 : index
    %c1_66 = arith.constant 1 : index
    %c0_67 = arith.constant 0 : index
    %60 = vector.load %arg8[%c2_65, %c1_66, %c0_67] : memref<10x10x128xbf16, #tpu.memory_space<vmem>>, vector<8x8x128xbf16>
    %61 = vector.shape_cast %60 : vector<8x8x128xbf16> to vector<64x128xbf16>
    %c7 = arith.constant 7 : index
    %c0_68 = arith.constant 0 : index
    %c0_69 = arith.constant 0 : index
    %62 = vector.load %arg4[%c7, %c0_68, %c0_69] : memref<9x128x128xbf16, #tpu.memory_space<vmem>>, vector<1x128x128xbf16>
    %63 = vector.shape_cast %62 : vector<1x128x128xbf16> to vector<128x128xbf16>
    %cst_70 = arith.constant dense<0.000000e+00> : vector<64x128xf32>
    %64 = tpu.matmul %61, %63, %cst_70 {dimension_numbers = #tpu.dot_dimension_numbers<[1], [0], [0], [1], [0, 0, 1, 1], [], []>} : vector<64x128xbf16>, vector<128x128xbf16>, vector<64x128xf32> -> vector<64x128xf32>
    %65 = arith.addf %59, %64 : vector<64x128xf32>
    %c2_71 = arith.constant 2 : index
    %c2_72 = arith.constant 2 : index
    %c0_73 = arith.constant 0 : index
    %66 = vector.load %arg8[%c2_71, %c2_72, %c0_73] : memref<10x10x128xbf16, #tpu.memory_space<vmem>>, vector<8x8x128xbf16>
    %67 = vector.shape_cast %66 : vector<8x8x128xbf16> to vector<64x128xbf16>
    %c8 = arith.constant 8 : index
    %c0_74 = arith.constant 0 : index
    %c0_75 = arith.constant 0 : index
    %68 = vector.load %arg4[%c8, %c0_74, %c0_75] : memref<9x128x128xbf16, #tpu.memory_space<vmem>>, vector<1x128x128xbf16>
    %69 = vector.shape_cast %68 : vector<1x128x128xbf16> to vector<128x128xbf16>
    %cst_76 = arith.constant dense<0.000000e+00> : vector<64x128xf32>
    %70 = tpu.matmul %67, %69, %cst_76 {dimension_numbers = #tpu.dot_dimension_numbers<[1], [0], [0], [1], [0, 0, 1, 1], [], []>} : vector<64x128xbf16>, vector<128x128xbf16>, vector<64x128xf32> -> vector<64x128xf32>
    %71 = arith.addf %65, %70 : vector<64x128xf32>
    %c0_77 = arith.constant 0 : index
    %c0_78 = arith.constant 0 : index
    %72 = vector.load %arg5[%c0_77, %c0_78] : memref<1x128xf32, #tpu.memory_space<vmem>>, vector<1x128xf32>
    %73 = vector.broadcast %72 : vector<1x128xf32> to vector<64x128xf32>
    %74 = arith.addf %71, %73 : vector<64x128xf32>
    %c0_79 = arith.constant 0 : index
    %c0_80 = arith.constant 0 : index
    %c0_81 = arith.constant 0 : index
    %75 = vector.load %arg6[%c0_79, %c0_80, %c0_81] : memref<1x64x128xf32, #tpu.memory_space<vmem>>, vector<1x64x128xf32>
    %76 = vector.shape_cast %75 : vector<1x64x128xf32> to vector<64x128xf32>
    %77 = vector.shape_cast %74 : vector<64x128xf32> to vector<1x64x128xf32>
    tpu.vector_store %arg6[%c0_79, %c0_80, %c0_81], %77 {strides = array<i32>} : memref<1x64x128xf32, #tpu.memory_space<vmem>>, vector<1x64x128xf32>,
    %cst_82 = arith.constant dense<0.000000e+00> : vector<128xf32>
    %78 = vector.multi_reduction <add>, %74, %cst_82 [0] : vector<64x128xf32> to vector<128xf32>
    %79 = vector.shape_cast %78 : vector<128xf32> to vector<1x128xf32>
    %c0_83 = arith.constant 0 : index
    %c0_84 = arith.constant 0 : index
    %c0_85 = arith.constant 0 : index
    %80 = vector.load %arg7[%c0_83, %c0_84, %c0_85] : memref<1x2x128xf32, #tpu.memory_space<vmem>>, vector<1x1x128xf32>
    %81 = vector.shape_cast %80 : vector<1x1x128xf32> to vector<1x128xf32>
    %82 = vector.shape_cast %79 : vector<1x128xf32> to vector<1x1x128xf32>
    tpu.vector_store %arg7[%c0_83, %c0_84, %c0_85], %82 {strides = array<i32>} : memref<1x2x128xf32, #tpu.memory_space<vmem>>, vector<1x1x128xf32>,
    %83 = arith.mulf %74, %74 : vector<64x128xf32>
    %cst_86 = arith.constant dense<0.000000e+00> : vector<128xf32>
    %84 = vector.multi_reduction <add>, %83, %cst_86 [0] : vector<64x128xf32> to vector<128xf32>
    %85 = vector.shape_cast %84 : vector<128xf32> to vector<1x128xf32>
    %c0_87 = arith.constant 0 : index
    %c1_88 = arith.constant 1 : index
    %c0_89 = arith.constant 0 : index
    %86 = vector.load %arg7[%c0_87, %c1_88, %c0_89] : memref<1x2x128xf32, #tpu.memory_space<vmem>>, vector<1x1x128xf32>
    %87 = vector.shape_cast %86 : vector<1x1x128xf32> to vector<1x128xf32>
    %88 = vector.shape_cast %85 : vector<1x128xf32> to vector<1x1x128xf32>
    tpu.vector_store %arg7[%c0_87, %c1_88, %c0_89], %88 {strides = array<i32>} : memref<1x2x128xf32, #tpu.memory_space<vmem>>, vector<1x1x128xf32>,
    return
  }
  func.func @transform_0(%arg0: i32) -> (i32, i32, i32) {
    %c0_i32 = arith.constant 0 : i32
    %c0_i32_0 = arith.constant 0 : i32
    %c0_i32_1 = arith.constant 0 : i32
    return %arg0, %c0_i32, %c0_i32_0 : i32, i32, i32
  }
  func.func @transform_1(%arg0: i32) -> (i32, i32) {
    %c0_i32 = arith.constant 0 : i32
    %c0_i32_0 = arith.constant 0 : i32
    %c0_i32_1 = arith.constant 0 : i32
    return %c0_i32, %c0_i32_0 : i32, i32
  }
  func.func @transform_2(%arg0: i32) -> (i32, i32) {
    %c0_i32 = arith.constant 0 : i32
    %c0_i32_0 = arith.constant 0 : i32
    %c0_i32_1 = arith.constant 0 : i32
    return %c0_i32, %c0_i32_0 : i32, i32
  }
  func.func @transform_3(%arg0: i32) -> (i32, i32, i32) {
    %c0_i32 = arith.constant 0 : i32
    %c0_i32_0 = arith.constant 0 : i32
    %c0_i32_1 = arith.constant 0 : i32
    %c0_i32_2 = arith.constant 0 : i32
    return %c0_i32, %c0_i32_0, %c0_i32_1 : i32, i32, i32
  }
  func.func @transform_4(%arg0: i32) -> (i32, i32) {
    %c0_i32 = arith.constant 0 : i32
    %c0_i32_0 = arith.constant 0 : i32
    %c0_i32_1 = arith.constant 0 : i32
    return %c0_i32, %c0_i32_0 : i32, i32
  }
  func.func @transform_5(%arg0: i32) -> (i32, i32, i32) {
    %c0_i32 = arith.constant 0 : i32
    %c0_i32_0 = arith.constant 0 : i32
    %c0_i32_1 = arith.constant 0 : i32
    return %arg0, %c0_i32, %c0_i32_0 : i32, i32, i32
  }
  func.func @transform_6(%arg0: i32) -> (i32, i32, i32) {
    %c0_i32 = arith.constant 0 : i32
    %c0_i32_0 = arith.constant 0 : i32
    %c0_i32_1 = arith.constant 0 : i32
    return %arg0, %c0_i32, %c0_i32_0 : i32, i32, i32
  }
}

module attributes {stable_mosaic.version = 11 : i64} {
  func.func @kernel(%arg0: i32, %arg1: memref<1x64x128xf32, #tpu.memory_space<vmem>>, %arg2: memref<1x128xf32, #tpu.memory_space<vmem>>, %arg3: memref<1x128xf32, #tpu.memory_space<vmem>>, %arg4: memref<1x9x9x128xbf16, #tpu.memory_space<vmem>>, %arg5: memref<128x128xbf16, #tpu.memory_space<vmem>>, %arg6: memref<1x128xf32, #tpu.memory_space<vmem>>, %arg7: memref<1x64x128xf32, #tpu.memory_space<vmem>>) attributes {dimension_semantics = [#tpu.dimension_semantics<parallel>], iteration_bounds = array<i64: 2>, scalar_prefetch = 0 : i64, scratch_operands = 0 : i64, tpu.core_type = #tpu.core_type<tc>, window_params = [{transform_indices = @transform_0, window_bounds = array<i64: 1, 64, 128>}, {pipeline_mode = #tpu.pipeline_mode<synchronous>, transform_indices = @transform_1, window_bounds = array<i64: 1, 128>}, {pipeline_mode = #tpu.pipeline_mode<synchronous>, transform_indices = @transform_2, window_bounds = array<i64: 1, 128>}, {transform_indices = @transform_3, window_bounds = array<i64: 1, 9, 9, 128>}, {pipeline_mode = #tpu.pipeline_mode<synchronous>, transform_indices = @transform_4, window_bounds = array<i64: 128, 128>}, {pipeline_mode = #tpu.pipeline_mode<synchronous>, transform_indices = @transform_5, window_bounds = array<i64: 1, 128>}, {transform_indices = @transform_6, window_bounds = array<i64: 1, 64, 128>}]} {
    %c0 = arith.constant 0 : index
    %c0_0 = arith.constant 0 : index
    %c0_1 = arith.constant 0 : index
    %c0_2 = arith.constant 0 : index
    %0 = vector.load %arg4[%c0, %c0_0, %c0_1, %c0_2] : memref<1x9x9x128xbf16, #tpu.memory_space<vmem>>, vector<1x8x8x128xbf16>
    %1 = vector.shape_cast %0 : vector<1x8x8x128xbf16> to vector<8x8x128xbf16>
    %2 = vector.shape_cast %1 : vector<8x8x128xbf16> to vector<64x128xbf16>
    %c0_3 = arith.constant 0 : index
    %c0_4 = arith.constant 0 : index
    %3 = vector.load %arg5[%c0_3, %c0_4] : memref<128x128xbf16, #tpu.memory_space<vmem>>, vector<128x128xbf16>
    %cst = arith.constant dense<0.000000e+00> : vector<64x128xf32>
    %4 = tpu.matmul %2, %3, %cst {dimension_numbers = #tpu.dot_dimension_numbers<[1], [0], [0], [1], [0, 0, 1, 1], [], []>} : vector<64x128xbf16>, vector<128x128xbf16>, vector<64x128xf32> -> vector<64x128xf32>
    %c0_5 = arith.constant 0 : index
    %c0_6 = arith.constant 0 : index
    %5 = vector.load %arg6[%c0_5, %c0_6] : memref<1x128xf32, #tpu.memory_space<vmem>>, vector<1x128xf32>
    %6 = vector.broadcast %5 : vector<1x128xf32> to vector<64x128xf32>
    %7 = arith.addf %4, %6 : vector<64x128xf32>
    %c0_7 = arith.constant 0 : index
    %c0_8 = arith.constant 0 : index
    %c0_9 = arith.constant 0 : index
    %8 = vector.load %arg1[%c0_7, %c0_8, %c0_9] : memref<1x64x128xf32, #tpu.memory_space<vmem>>, vector<1x64x128xf32>
    %9 = vector.shape_cast %8 : vector<1x64x128xf32> to vector<64x128xf32>
    %c0_10 = arith.constant 0 : index
    %c0_11 = arith.constant 0 : index
    %10 = vector.load %arg2[%c0_10, %c0_11] : memref<1x128xf32, #tpu.memory_space<vmem>>, vector<1x128xf32>
    %11 = vector.broadcast %10 : vector<1x128xf32> to vector<64x128xf32>
    %12 = arith.mulf %9, %11 : vector<64x128xf32>
    %c0_12 = arith.constant 0 : index
    %c0_13 = arith.constant 0 : index
    %13 = vector.load %arg3[%c0_12, %c0_13] : memref<1x128xf32, #tpu.memory_space<vmem>>, vector<1x128xf32>
    %14 = vector.broadcast %13 : vector<1x128xf32> to vector<64x128xf32>
    %15 = arith.addf %12, %14 : vector<64x128xf32>
    %16 = arith.addf %15, %7 : vector<64x128xf32>
    %cst_14 = arith.constant 0.000000e+00 : f32
    %17 = vector.broadcast %cst_14 : f32 to vector<64x128xf32>
    %18 = arith.maximumf %16, %17 : vector<64x128xf32>
    %c0_15 = arith.constant 0 : index
    %c0_16 = arith.constant 0 : index
    %c0_17 = arith.constant 0 : index
    %19 = vector.load %arg7[%c0_15, %c0_16, %c0_17] : memref<1x64x128xf32, #tpu.memory_space<vmem>>, vector<1x64x128xf32>
    %20 = vector.shape_cast %19 : vector<1x64x128xf32> to vector<64x128xf32>
    %21 = vector.shape_cast %18 : vector<64x128xf32> to vector<1x64x128xf32>
    tpu.vector_store %arg7[%c0_15, %c0_16, %c0_17], %21 {strides = array<i32>} : memref<1x64x128xf32, #tpu.memory_space<vmem>>, vector<1x64x128xf32>,
    return
  }
  func.func @transform_0(%arg0: i32) -> (i32, i32, i32) {
    %c0_i32 = arith.constant 0 : i32
    %c0_i32_0 = arith.constant 0 : i32
    %c0_i32_1 = arith.constant 0 : i32
    return %arg0, %c0_i32, %c0_i32_0 : i32, i32, i32
  }
  func.func @transform_1(%arg0: i32) -> (i32, i32) {
    %c0_i32 = arith.constant 0 : i32
    %c0_i32_0 = arith.constant 0 : i32
    %c0_i32_1 = arith.constant 0 : i32
    return %c0_i32, %c0_i32_0 : i32, i32
  }
  func.func @transform_2(%arg0: i32) -> (i32, i32) {
    %c0_i32 = arith.constant 0 : i32
    %c0_i32_0 = arith.constant 0 : i32
    %c0_i32_1 = arith.constant 0 : i32
    return %c0_i32, %c0_i32_0 : i32, i32
  }
  func.func @transform_3(%arg0: i32) -> (i32, i32, i32, i32) {
    %c2_i32 = arith.constant 2 : i32
    %0 = arith.muli %arg0, %c2_i32 : i32
    %c2_i32_0 = arith.constant 2 : i32
    %1 = arith.muli %0, %c2_i32_0 : i32
    %c3_i32 = arith.constant 3 : i32
    %2 = arith.addi %1, %c3_i32 : i32
    %c0_i32 = arith.constant 0 : i32
    %c0_i32_1 = arith.constant 0 : i32
    %c0_i32_2 = arith.constant 0 : i32
    %c0_i32_3 = arith.constant 0 : i32
    return %2, %c0_i32, %c0_i32_1, %c0_i32_2 : i32, i32, i32, i32
  }
  func.func @transform_4(%arg0: i32) -> (i32, i32) {
    %c0_i32 = arith.constant 0 : i32
    %c0_i32_0 = arith.constant 0 : i32
    %c0_i32_1 = arith.constant 0 : i32
    return %c0_i32, %c0_i32_0 : i32, i32
  }
  func.func @transform_5(%arg0: i32) -> (i32, i32) {
    %c0_i32 = arith.constant 0 : i32
    %c0_i32_0 = arith.constant 0 : i32
    %c0_i32_1 = arith.constant 0 : i32
    return %c0_i32, %c0_i32_0 : i32, i32
  }
  func.func @transform_6(%arg0: i32) -> (i32, i32, i32) {
    %c0_i32 = arith.constant 0 : i32
    %c0_i32_0 = arith.constant 0 : i32
    %c0_i32_1 = arith.constant 0 : i32
    return %arg0, %c0_i32, %c0_i32_0 : i32, i32, i32
  }
}

</mosaic_0001>

<bundles_post_ra>
// kernel: resblock_forward.5
= control target key start
LH: loop header
LB: loop body
LE: loop exit
PB: predicated region body
PF: predicated region fallthrough
CT: control target
= control target key end

     0   :  { %s734_s21 = smov 0   ;;  %s809_s0 = inlined_call_operand.vmem [shape: f32[2,64,128], index: 0, kind: input, shape index: {}]   ;;  %s810_s1 = inlined_call_operand.vmem [shape: f32[1,128], index: 1, kind: input, shape index: {}]   ;;  %s811_s2 = inlined_call_operand.vmem [shape: f32[1,128], index: 2, kind: input, shape index: {}]   ;;  %s812_s3 = inlined_call_operand.vmem [shape: bf16[8,9,9,128], index: 3, kind: input, shape index: {}]   ;;  %s813_s4 = inlined_call_operand.vmem [shape: bf16[128,128], index: 4, kind: input, shape index: {}]   ;;  %s814_s5 = inlined_call_operand.vmem [shape: f32[1,128], index: 5, kind: input, shape index: {}]   ;;  %s815_s6 = inlined_call_operand.vmem [shape: f32[2,64,128], index: 6, kind: output, shape index: {}]  }
   0x1 LB: > { %s740_s22 = sadd.s32 4294967295, %s697_s21   ;;  %p590_p0 = scmp.ge.s32.totalorder %s697_s21, 1  ;;  %s697_s21 = sphi %s734_s21, %s16_s21  }
   0x2   : > { %p230_p1 = scmp.lt.s32.totalorder %s697_s21, 3 }
   0x4   : > { %p231_p2 = pnand %p590_p0, %p230_p1 }
   0x5   : > { %s593_s25 = sshll.u32 (!%p231_p2), %s740_s22, 2  ;;  %p267_p4 = scmp.lt.s32.totalorder (!%p231_p2), %s740_s22, 1 }
   0x6   : > { %234 = sbr.rel (%p231_p2) target bundleno = 250 (0xfa), region = 44  ;;  %s273_s28 = sadd.s32 (!%p231_p2), 3, %s593_s25 }
   0x7   : > { %p274_p3 = scmp.lt.s32.totalorder (!%p231_p2), %s273_s28, 7 }
   0xb   : > { %v679_v0 = vld [vmem:[%s813_s4 + $0x38] sm:$0xff]   ;;  %v680_v1 = vld [vmem:[%s813_s4 + $0x30] sm:$0xff]   ;;  %v681_v2 = vld [vmem:[%s813_s4 + $0x28] sm:$0xff]   ;;  %s817_s28 = smov (!%p274_p3, %s273_s28), 7  ;;  %s819_s22 = smov (!%p267_p4, %s740_s22), 1 }
   0xc   : > { %630 = vmatprep.subr.bf16.mxu0 %v679_v0  ;;  %654 = vmatprep.subr.bf16.mxu1 %v679_v0  ;;  %s670_s7 = smul.u32 72, %s817_s28  ;;  %v682_v3 = vld [vmem:[%s813_s4 + $0x20] sm:$0xff]   ;;  %v683_v6 = vld [vmem:[%s813_s4 + $0x18] sm:$0xff]   ;;  %v684_v7 = vld [vmem:[%s813_s4 + $0x10] sm:$0xff]   ;;  %s616_s23 = sshll.u32 %s819_s22, 6 }
   0xd   : > { %631 = vmatpush3.bf16.msra.mxu0 %v679_v0  ;;  %662 = vmatpush3.bf16.msra.mxu1 %v679_v0  ;;  %v685_v8 = vld [vmem:[%s813_s4 + $0x8] sm:$0xff]   ;;  %v686_v9 = vld [vmem:[%s813_s4] sm:$0xff]   ;;  %s271_s26 = scalar_lea.vmem %s809_s0, %s616_s23  ;;  %s796_s11 = scalar_lea.vmem %s815_s6, %s616_s23 }
   0xe   : > { %632 = vmatprep.subr.bf16.mxu0 %v680_v1  ;;  %655 = vmatprep.subr.bf16.mxu1 %v680_v1  ;;  %s278_s12 = scalar_lea.vmem %s812_s3, %s670_s7  ;;  %v457_v12 = vld [vmem:[%s271_s26 + $0x10] sm:$0xff]  ;;  %v610_v13 = vld [vmem:[%s810_s1] ss:$0 sm:$0xff]  ;;  %v458_v20 = vld [vmem:[%s271_s26 + $0x18] sm:$0xff] }
   0xf   : > { %v687_v4 = vld [vmem:[%s278_s12] ss:$8 sps:$4 sm:$0xff]   ;;  %v689_v10 = vld [vmem:[%s278_s12 + $0x10] ss:$8 sps:$4 sm:$0xff]   ;;  %v472_v17 = vmul.f32 %v610_v13, %v457_v12  ;;  %v473_v31 = vmul.f32 %v610_v13, %v458_v20 }
  0x10   : > { %v688_v5 = vld [vmem:[%s278_s12 + $0x20] ss:$8 sps:$4 sm:$0xff]   ;;  %646 = vmatprep.mubr.bf16.mxu0 %v687_v4  ;;  %v690_v11 = vld [vmem:[%s278_s12 + $0x30] ss:$8 sps:$4 sm:$0xff]  }
  0x11   : > { %633 = vmatpush3.bf16.msra.mxu0 %v680_v1  ;;  %663 = vmatpush3.bf16.msra.mxu1 %v680_v1  ;;  %v461_v14 = vld [vmem:[%s271_s26 + $0x30] sm:$0xff]  ;;  %v455_v15 = vld [vmem:[%s271_s26] sm:$0xff]  ;;  %v462_v23 = vld [vmem:[%s271_s26 + $0x38] sm:$0xff] }
  0x12   : > { %634 = vmatprep.subr.bf16.mxu0 %v681_v2  ;;  %656 = vmatprep.subr.bf16.mxu1 %v681_v2  ;;  %v459_v16 = vld [vmem:[%s271_s26 + $0x20] sm:$0xff]  ;;  %v476_v18 = vmul.f32 %v610_v13, %v461_v14  ;;  %v470_v21 = vmul.f32 %v610_v13, %v455_v15  ;;  %v456_v24 = vld [vmem:[%s271_s26 + $0x8] sm:$0xff]  ;;  %v477_v32 = vmul.f32 %v610_v13, %v462_v23 }
  0x13   : > { %650 = vmatprep.mubr.bf16.mxu1 %v688_v5  ;;  %v611_v19 = vld [vmem:[%s811_s2] ss:$0 sm:$0xff]  ;;  %v474_v22 = vmul.f32 %v610_v13, %v459_v16  ;;  %v460_v25 = vld [vmem:[%s271_s26 + $0x28] sm:$0xff]  ;;  %v471_v33 = vmul.f32 %v610_v13, %v456_v24 }
  0x14   : > { %v597_v26 = vld [vmem:[%s814_s5] ss:$0 sm:$0xff]  ;;  %v487_v27 = vadd.f32 %v611_v19, %v472_v17  ;;  %v491_v28 = vadd.f32 %v611_v19, %v476_v18  ;;  %v475_v34 = vmul.f32 %v610_v13, %v460_v25  ;;  %v485_v37 = vadd.f32 %v611_v19, %v470_v21 }
  0x15   : > { %635 = vmatpush3.bf16.msra.mxu0 %v681_v2  ;;  %664 = vmatpush3.bf16.msra.mxu1 %v681_v2  ;;  %v489_v38 = vadd.f32 %v611_v19, %v474_v22  ;;  %v488_v46 = vadd.f32 %v611_v19, %v473_v31  ;;  %v492_v48 = vadd.f32 %v611_v19, %v477_v32 }
  0x16   : > { %636 = vmatprep.subr.bf16.mxu0 %v682_v3  ;;  %657 = vmatprep.subr.bf16.mxu1 %v682_v3  ;;  %v486_v49 = vadd.f32 %v611_v19, %v471_v33  ;;  %v490_v50 = vadd.f32 %v611_v19, %v475_v34 }
  0x19   : > { %637 = vmatpush3.bf16.msra.mxu0 %v682_v3  ;;  %665 = vmatpush3.bf16.msra.mxu1 %v682_v3 }
  0x1a   : > { %638 = vmatprep.subr.bf16.mxu0 %v683_v6  ;;  %658 = vmatprep.subr.bf16.mxu1 %v683_v6 }
  0x1d   : > { %639 = vmatpush3.bf16.msra.mxu0 %v683_v6  ;;  %666 = vmatpush3.bf16.msra.mxu1 %v683_v6 }
  0x1e   : > { %640 = vmatprep.subr.bf16.mxu0 %v684_v7  ;;  %659 = vmatprep.subr.bf16.mxu1 %v684_v7 }
  0x21   : > { %641 = vmatpush3.bf16.msra.mxu0 %v684_v7  ;;  %667 = vmatpush3.bf16.msra.mxu1 %v684_v7 }
  0x22   : > { %642 = vmatprep.subr.bf16.mxu0 %v685_v8  ;;  %660 = vmatprep.subr.bf16.mxu1 %v685_v8 }
  0x25   : > { %643 = vmatpush3.bf16.msra.mxu0 %v685_v8  ;;  %668 = vmatpush3.bf16.msra.mxu1 %v685_v8 }
  0x26   : > { %644 = vmatprep.subr.bf16.mxu0 %v686_v9  ;;  %661 = vmatprep.subr.bf16.mxu1 %v686_v9 }
  0x29   : > { %645 = vmatpush3.bf16.msra.mxu0 %v686_v9  ;;  %669 = vmatpush3.bf16.msra.mxu1 %v686_v9 }
  0x2c   : > { %647 = vmatmul.mubr.bf16.vlgmr.msra.gmra.mxu0 %v689_v10  ;;  %651 = vmatmul.mubr.bf16.vlgmr.msra.gmra.mxu1 %v690_v11 }
  0xec   : > { %v648_v29 = vpop.f32.mrf.mxu0  ;;  %v652_v30 = vpop.f32.mrf.mxu1 }
  0xed   : > { %v433_v35 = vadd.f32 %v648_v29, %v597_v26  ;;  %v449_v36 = vadd.f32 %v652_v30, %v597_v26 }
  0xee   : > { %v424_v39 = vpop.f32.mrf.mxu0  ;;  %v440_v40 = vpop.f32.mrf.mxu1 }
  0xef   : > { %v495_v41 = vadd.f32 %v487_v27, %v433_v35  ;;  %v499_v42 = vadd.f32 %v491_v28, %v449_v36  ;;  %v425_v43 = vadd.f32 %v597_v26, %v424_v39  ;;  %v441_v44 = vadd.f32 %v597_v26, %v440_v40 }
  0xf0   : > { %v649_v45 = vpop.f32.mrf.mxu0  ;;  %v653_v47 = vpop.f32.mrf.mxu1 }
  0xf1   : > { %v503_v51 = vmax.f32 %v495_v41, 0.0  ;;  %v507_v52 = vmax.f32 %v499_v42, 0.0  ;;  %v493_v53 = vadd.f32 %v485_v37, %v425_v43  ;;  %v497_v54 = vadd.f32 %v489_v38, %v441_v44 }
  0xf2   : > { %v436_v55 = vadd.f32 %v649_v45, %v597_v26  ;;  %v452_v56 = vadd.f32 %v653_v47, %v597_v26  ;;  %v427_v57 = vpop.f32.mrf.mxu0  ;;  %v443_v58 = vpop.f32.mrf.mxu1 }
  0xf3   : > { %511 = vst [vmem:[%s796_s11 + $0x10] sm:$0xff] %v503_v51  ;;  %515 = vst [vmem:[%s796_s11 + $0x30] sm:$0xff] %v507_v52  ;;  %v501_v59 = vmax.f32 %v493_v53, 0.0  ;;  %v505_v60 = vmax.f32 %v497_v54, 0.0  ;;  %v428_v61 = vadd.f32 %v597_v26, %v427_v57  ;;  %v444_v62 = vadd.f32 %v597_v26, %v443_v58 }
  0xf4   : > { %v496_v63 = vadd.f32 %v488_v46, %v436_v55  ;;  %v500_v0 = vadd.f32 %v492_v48, %v452_v56 }
  0xf5   : > { %509 = vst [vmem:[%s796_s11] sm:$0xff] %v501_v59  ;;  %513 = vst [vmem:[%s796_s11 + $0x20] sm:$0xff] %v505_v60  ;;  %v494_v1 = vadd.f32 %v486_v49, %v428_v61  ;;  %v498_v2 = vadd.f32 %v490_v50, %v444_v62 }
  0xf6   : > { %v504_v3 = vmax.f32 %v496_v63, 0.0  ;;  %v508_v4 = vmax.f32 %v500_v0, 0.0 }
  0xf7   : > { %v502_v5 = vmax.f32 %v494_v1, 0.0  ;;  %v506_v6 = vmax.f32 %v498_v2, 0.0 }
  0xf8   : > { %512 = vst [vmem:[%s796_s11 + $0x18] sm:$0xff] %v504_v3  ;;  %516 = vst [vmem:[%s796_s11 + $0x38] sm:$0xff] %v508_v4 }
  0xf9   : > { %510 = vst [vmem:[%s796_s11 + $0x8] sm:$0xff] %v502_v5  ;;  %514 = vst [vmem:[%s796_s11 + $0x28] sm:$0xff] %v506_v6 }
  0xfa PF: > { %s16_s21 = sadd.s32 1, %s697_s21  }
  0xfb   : > { %p13_p5 = scmp.ge.s32.totalorder %s16_s21, 4  }
  0xfd   :  { %15 = sbr.rel (!%p13_p5) target bundleno = 1 (0x1), region = 77 }

// kernel: resblock_forward.3
= control target key start
LH: loop header
LB: loop body
LE: loop exit
PB: predicated region body
PF: predicated region fallthrough
CT: control target
= control target key end

     0   :  { %s3017_s15 = smov 0   ;;  %s3429_s0 = inlined_call_operand.vmem [shape: bf16[8,9,9,128], index: 0, kind: input, shape index: {}]   ;;  %s3430_s1 = inlined_call_operand.vmem [shape: bf16[9,128,128], index: 1, kind: input, shape index: {}]   ;;  %s3431_s2 = inlined_call_operand.vmem [shape: f32[1,128], index: 2, kind: input, shape index: {}]   ;;  %s3432_s3 = inlined_call_operand.vmem [shape: f32[2,64,128], index: 3, kind: output, shape index: {0}]   ;;  %s3433_s4 = inlined_call_operand.vmem [shape: f32[2,2,128], index: 4, kind: output, shape index: {1}]  }
   0x1 LB: > { %s3023_s16 = sadd.s32 4294967295, %s2990_s15   ;;  %p2221_p0 = scmp.ge.s32.totalorder %s2990_s15, 1  ;;  %s2990_s15 = sphi %s3017_s15, %s15_s15  }
   0x2   : > { %p167_p1 = scmp.lt.s32.totalorder %s2990_s15, 3 }
   0x4   : > { %p168_p2 = pnand %p2221_p0, %p167_p1 }
   0x6   : > { %171 = sbr.rel (%p168_p2) target bundleno = 404 (0x194), region = 32 }
   0xb   : > { %v2888_v0 = vld [vmem:[%s3430_s1 + $0x78] sm:$0xff]   ;;  %s2222_s19 = sshll.u32 %s3023_s16, 2  ;;  %v2890_v2 = vld [vmem:[%s3430_s1 + $0x70] sm:$0xff]   ;;  %v2892_v4 = vld [vmem:[%s3430_s1 + $0x68] sm:$0xff]   ;;  %vm555_vm0 = vsmask.f32 3328 }
   0xc   : > { %v2889_v1 = vld [vmem:[%s3430_s1 + $0x38] sm:$0xff]   ;;  %p199_p3 = scmp.lt.s32.totalorder %s2222_s19, 7  ;;  %2647 = vmatprep.subr.bf16.mxu0 %v2888_v0  ;;  %v2891_v3 = vld [vmem:[%s3430_s1 + $0x30] sm:$0xff]   ;;  %v2893_v5 = vld [vmem:[%s3430_s1 + $0x28] sm:$0xff]   ;;  %vm556_vm1 = vsmask.f32 7440 }
   0xd   : > { %2671 = vmatprep.subr.bf16.mxu1 %v2889_v1  ;;  %2648 = vmatpush3.bf16.msra.mxu0 %v2888_v0  ;;  %v2894_v6 = vld [vmem:[%s3430_s1 + $0x60] sm:$0xff]   ;;  %v2896_v8 = vld [vmem:[%s3430_s1 + $0x58] sm:$0xff]   ;;  %v2898_v10 = vld [vmem:[%s3430_s1 + $0x50] sm:$0xff]   ;;  %p205_p4 = scmp.lt.s32.totalorder %s3023_s16, 1 }
   0xe   : > { %2672 = vmatpush3.bf16.msra.mxu1 %v2889_v1  ;;  %2649 = vmatprep.subr.bf16.mxu0 %v2890_v2  ;;  %s3451_s19 = smov (!%p199_p3, %s2222_s19), 7  ;;  %v2895_v7 = vld [vmem:[%s3430_s1 + $0x20] sm:$0xff]   ;;  %v2897_v9 = vld [vmem:[%s3430_s1 + $0x18] sm:$0xff]   ;;  %v2899_v11 = vld [vmem:[%s3430_s1 + $0x10] sm:$0xff]  }
   0xf   : > { %2673 = vmatprep.subr.bf16.mxu1 %v2891_v3  ;;  %s2879_s8 = smul.u32 72, %s3451_s19  ;;  %v2900_v14 = vld [vmem:[%s3430_s1 + $0x48] sm:$0xff]   ;;  %v2902_v16 = vld [vmem:[%s3430_s1 + $0x40] sm:$0xff]   ;;  %v2908_v19 = vld [vmem:[%s3430_s1 + $0xb8] sm:$0xff]   ;;  %s3453_s16 = smov (!%p205_p4, %s3023_s16), 1 }
  0x10   : > { %v2901_v15 = vld [vmem:[%s3430_s1 + $0x8] sm:$0xff]   ;;  %v2903_v17 = vld [vmem:[%s3430_s1] sm:$0xff]   ;;  %v2909_v20 = vld [vmem:[%s3430_s1 + $0xf8] sm:$0xff]   ;;  %s2538_s26 = sshll.u32 %s3453_s16, 6  ;;  %s2226_s6 = sshll.u32 %s3453_s16, 1 }
  0x11   : > { %2650 = vmatpush3.bf16.msra.mxu0 %v2890_v2  ;;  %s3061_s17 = scalar_lea.vmem %s3429_s0, %s2879_s8  ;;  %v2910_v22 = vld [vmem:[%s3430_s1 + $0xb0] sm:$0xff]   ;;  %v2912_v26 = vld [vmem:[%s3430_s1 + $0xa8] sm:$0xff]   ;;  %v2914_v28 = vld [vmem:[%s3430_s1 + $0xa0] sm:$0xff]   ;;  %s3410_s5 = scalar_lea.vmem %s3432_s3, %s2538_s26 }
  0x12   : > { %2674 = vmatpush3.bf16.msra.mxu1 %v2891_v3  ;;  %2651 = vmatprep.subr.bf16.mxu0 %v2892_v4  ;;  %v2904_v12 = vld [vmem:[%s3061_s17 + $0x48] ss:$8 sps:$4 sm:$0xff]   ;;  %v2906_v18 = vld [vmem:[%s3061_s17 + $0x58] ss:$8 sps:$4 sm:$0xff]   ;;  %v540_v33 = vld [vmem:[%s3061_s17 + $0x4] sm:$0x1]  ;;  %s213_s9 = scalar_lea.vmem %s3433_s4, %s2226_s6 }
  0x13   : > { %2675 = vmatprep.subr.bf16.mxu1 %v2893_v5  ;;  %v2905_v13 = vld [vmem:[%s3061_s17] ss:$8 sps:$4 sm:$0xff]   ;;  %2663 = vmatprep.mubr.bf16.mxu0 %v2904_v12  ;;  %v2907_v21 = vld [vmem:[%s3061_s17 + $0x10] ss:$8 sps:$4 sm:$0xff]   ;;  %v542_v35 = vld [vmem:[%s3061_s17 + $0xc] sm:$0x1] }
  0x14   : > { %2687 = vmatprep.mubr.bf16.mxu1 %v2905_v13  ;;  %v2911_v23 = vld [vmem:[%s3430_s1 + $0xf0] sm:$0xff]   ;;  %v2919_v25 = vld [vmem:[%s3061_s17 + $0x20] ss:$8 sps:$4 sm:$0xff]   ;;  %v2916_v36 = vld [vmem:[%s3430_s1 + $0x98] sm:$0xff]   ;;  %v568_v39 = vshll.u32 %v540_v33, 16  ;;  %v582_v44 = vshll.u32 %v542_v35, 16 }
  0x15   : > { %2652 = vmatpush3.bf16.msra.mxu0 %v2892_v4  ;;  %v2918_v24 = vld [vmem:[%s3061_s17 + $0x68] ss:$8 sps:$4 sm:$0xff]   ;;  %v2920_v29 = vld [vmem:[%s3061_s17 + $0x78] ss:$8 sps:$4 sm:$0xff]   ;;  %v544_v45 = vld [vmem:[%s3061_s17 + $0x14] sm:$0x1] }
  0x16   : > { %2676 = vmatpush3.bf16.msra.mxu1 %v2893_v5  ;;  %2653 = vmatprep.subr.bf16.mxu0 %v2894_v6  ;;  %v2913_v27 = vld [vmem:[%s3430_s1 + $0xe8] sm:$0xff]   ;;  %v2915_v30 = vld [vmem:[%s3430_s1 + $0xe0] sm:$0xff]   ;;  %v2921_v31 = vld [vmem:[%s3061_s17 + $0x30] ss:$8 sps:$4 sm:$0xff]   ;;  %v570_v49 = vrot.slane %v568_v39, 5  ;;  %v584_v53 = vrot.slane %v582_v44, 5 }
  0x17   : > { %2677 = vmatprep.subr.bf16.mxu1 %v2895_v7  ;;  %v539_v32 = vld [vmem:[%s3061_s17] sm:$0xf]  ;;  %v541_v34 = vld [vmem:[%s3061_s17 + $0x8] sm:$0xf]  ;;  %v543_v41 = vld [vmem:[%s3061_s17 + $0x10] sm:$0xf] }
  0x18   : > { %v559_v37 = vshrl.u32 %v539_v32, 16  ;;  %v562_v38 = vshll.u32 %v539_v32, 16  ;;  %v573_v40 = vshrl.u32 %v541_v34, 16  ;;  %v2917_v42 = vld [vmem:[%s3430_s1 + $0xd8] sm:$0xff]   ;;  %v576_v43 = vshll.u32 %v541_v34, 16  ;;  %v2922_v60 = vld [vmem:[%s3430_s1 + $0x90] sm:$0xff]   ;;  %vm3132_vm2 = vmor %vm555_vm0, %vm556_vm1 }
  0x19   : > { %2654 = vmatpush3.bf16.msra.mxu0 %v2894_v6  ;;  %v545_v46 = vld [vmem:[%s3061_s17 + $0x18] sm:$0xf]  ;;  %v546_v51 = vld [vmem:[%s3061_s17 + $0x1c] sm:$0x1]  ;;  %v587_v54 = vshrl.u32 %v543_v41, 16  ;;  %v590_v55 = vshll.u32 %v543_v41, 16 }
  0x1a   : > { %2678 = vmatpush3.bf16.msra.mxu1 %v2895_v7  ;;  %2655 = vmatprep.subr.bf16.mxu0 %v2896_v8  ;;  %v561_v47 = vrot.slane %v559_v37, 4  ;;  %v564_v48 = vrot.slane %v562_v38, 5  ;;  %v575_v50 = vrot.slane %v573_v40, 4  ;;  %v578_v52 = vrot.slane %v576_v43, 5  ;;  %v2928_v2 = vld [vmem:[%s3061_s17 + $0x90] ss:$8 sps:$4 sm:$0xff]  }
  0x1b   : > { %2679 = vmatprep.subr.bf16.mxu1 %v2897_v9  ;;  %v596_v57 = vshll.u32 %v544_v45, 16  ;;  %v601_v58 = vshrl.u32 %v545_v46, 16  ;;  %v604_v59 = vshll.u32 %v545_v46, 16  ;;  %v589_v63 = vrot.slane %v587_v54, 4  ;;  %v2923_v3 = vld [vmem:[%s3430_s1 + $0xd0] sm:$0xff]   ;;  %v2924_v12 = vld [vmem:[%s3430_s1 + $0x88] sm:$0xff]  }
  0x1c   : > { %v565_v56 = vor.u32 %v564_v48, %v561_v47  ;;  %v579_v62 = vor.u32 %v578_v52, %v575_v50  ;;  %v592_v0 = vrot.slane %v590_v55, 5  ;;  %v610_v1 = vshll.u32 %v546_v51, 16  ;;  %v551_v32 = vld [vmem:[%s3061_s17 + $0x30] sm:$0xf]  ;;  %v553_v41 = vld [vmem:[%s3061_s17 + $0x38] sm:$0xf] }
  0x1d   : > { %2656 = vmatpush3.bf16.msra.mxu0 %v2896_v8  ;;  %v603_v5 = vrot.slane %v601_v58, 4  ;;  %v606_v6 = vrot.slane %v604_v59, 5  ;;  %v643_v37 = vshrl.u32 %v551_v32, 16  ;;  %v554_v45 = vld [vmem:[%s3061_s17 + $0x3c] sm:$0x1]  ;;  %v657_v50 = vshrl.u32 %v553_v41, 16 }
  0x1e   : > { %2680 = vmatpush3.bf16.msra.mxu1 %v2897_v9  ;;  %2657 = vmatprep.subr.bf16.mxu0 %v2898_v10  ;;  %v566_v4 = vrot.slane %v565_v56, 4  ;;  %v580_v7 = vrot.slane %v579_v62, 4  ;;  %v593_v8 = vor.u32 %v592_v0, %v589_v63  ;;  %v3140_v9 = vrot.slane %v596_v57, 5  ;;  %v2929_v52 = vld [vmem:[%s3430_s1 + $0x138] sm:$0xff]   ;;  %v2931_v56 = vld [vmem:[%s3061_s17 + $0xa0] ss:$8 sps:$4 sm:$0xff]  }
  0x1f   : > { %2681 = vmatprep.subr.bf16.mxu1 %v2899_v11  ;;  %v645_v46 = vrot.slane %v643_v37, 4  ;;  %v660_v51 = vshll.u32 %v553_v41, 16  ;;  %v666_v54 = vshll.u32 %v554_v45, 16  ;;  %v2930_v55 = vld [vmem:[%s3430_s1 + $0x178] sm:$0xff]   ;;  %v659_v59 = vrot.slane %v657_v50, 4 }
  0x20   : > { %v585_v13 = vsel %vm3132_vm2, %v580_v7, %v584_v53  ;;  %v2933_v7 = vld [vmem:[%s3430_s1 + $0x170] sm:$0xff]   ;;  %v2380_v41 = vld [vmem:[%s3061_s17 + $0xa4] sm:$0x1] }
  0x21   : > { %2658 = vmatpush3.bf16.msra.mxu0 %v2898_v10  ;;  %v571_v10 = vsel %vm3132_vm2, %v566_v4, %v570_v49 }
  0x22   : > { %2682 = vmatpush3.bf16.msra.mxu1 %v2899_v11  ;;  %2659 = vmatprep.subr.bf16.mxu0 %v2900_v14  ;;  %v607_v11 = vor.u32 %v606_v6, %v603_v5  ;;  %v668_v5 = vrot.slane %v666_v54, 5  ;;  %v2936_v6 = vld [vmem:[%s3061_s17 + $0xb0] ss:$8 sps:$4 sm:$0xff]  }
  0x23   : > { %2683 = vmatprep.subr.bf16.mxu1 %v2901_v15 }
  0x25   : > { %2660 = vmatpush3.bf16.msra.mxu0 %v2900_v14  ;;  %v594_v14 = vrot.slane %v593_v8, 4 }
  0x26   : > { %2684 = vmatpush3.bf16.msra.mxu1 %v2901_v15  ;;  %2661 = vmatprep.subr.bf16.mxu0 %v2902_v16  ;;  %v612_v15 = vrot.slane %v610_v1, 5  ;;  %v2932_v1 = vld [vmem:[%s3430_s1 + $0x130] sm:$0xff]  }
  0x27   : > { %2685 = vmatprep.subr.bf16.mxu1 %v2903_v17 }
  0x29   : > { %2662 = vmatpush3.bf16.msra.mxu0 %v2902_v16  ;;  %v2925_v16 = vld [vmem:[%s3430_s1 + $0xc8] sm:$0xff]  }
  0x2a   : > { %2686 = vmatpush3.bf16.msra.mxu1 %v2903_v17  ;;  %2695 = vmatprep.subr.bf16.mxu0 %v2908_v19  ;;  %v2291_v17 = vcombine.low %v571_v10, %v585_v13  ;;  %v2934_v10 = vld [vmem:[%s3430_s1 + $0x128] sm:$0xff]  }
  0x2b   : > { %2719 = vmatprep.subr.bf16.mxu1 %v2909_v20  ;;  %v2935_v13 = vld [vmem:[%s3430_s1 + $0x168] sm:$0xff]  }
  0x2c   : > { %2664 = vmatmul.mubr.bf16.vlgmr.msra.gmra.mxu0 %v2906_v18  ;;  %v608_v18 = vrot.slane %v607_v11, 4 }
  0x2d   : > { %2688 = vmatmul.mubr.bf16.vlgmr.msra.gmra.mxu1 %v2907_v21  ;;  %2696 = vmatpush3.bf16.msra.mxu0 %v2908_v19  ;;  %v547_v19 = vld [vmem:[%s3061_s17 + $0x20] sm:$0xf] }
  0x2e   : > { %2720 = vmatpush3.bf16.msra.mxu1 %v2909_v20  ;;  %2697 = vmatprep.subr.bf16.mxu0 %v2910_v22  ;;  %v548_v20 = vld [vmem:[%s3061_s17 + $0x24] sm:$0x1] }
  0x2f   : > { %2721 = vmatprep.subr.bf16.mxu1 %v2911_v23  ;;  %2667 = vmatprep.mubr.bf16.mxu0 %v2918_v24  ;;  %v2926_v21 = vld [vmem:[%s3430_s1 + $0x80] sm:$0xff]   ;;  %v550_v24 = vld [vmem:[%s3061_s17 + $0x2c] sm:$0x1] }
  0x30   : > { %2691 = vmatprep.mubr.bf16.mxu1 %v2919_v25  ;;  %v615_v25 = vshrl.u32 %v547_v19, 16  ;;  %v638_v35 = vshll.u32 %v550_v24, 16  ;;  %v2378_v24 = vld [vmem:[%s3061_s17 + $0x9c] sm:$0x1] }
  0x31   : > { %2698 = vmatpush3.bf16.msra.mxu0 %v2910_v22  ;;  %v599_v22 = vsel %vm3132_vm2, %v594_v14, %v3140_v9 }
  0x32   : > { %2722 = vmatpush3.bf16.msra.mxu1 %v2911_v23  ;;  %2699 = vmatprep.subr.bf16.mxu0 %v2912_v26  ;;  %v549_v23 = vld [vmem:[%s3061_s17 + $0x28] sm:$0xf]  ;;  %v617_v33 = vrot.slane %v615_v25, 4  ;;  %v640_v44 = vrot.slane %v638_v35, 5 }
  0x33   : > { %2723 = vmatprep.subr.bf16.mxu1 %v2913_v27 }
  0x34   : > { %2668 = vmatmul.mubr.bf16.gmra.mxu0 %v2920_v29  ;;  %v624_v29 = vshll.u32 %v548_v20, 16  ;;  %v2941_v20 = vld [vmem:[%s3430_s1 + $0x158] sm:$0xff]  }
  0x35   : > { %2700 = vmatpush3.bf16.msra.mxu0 %v2912_v26  ;;  %2692 = vmatmul.mubr.bf16.gmra.mxu1 %v2921_v31  ;;  %v618_v26 = vshll.u32 %v547_v19, 16  ;;  %v632_v31 = vshll.u32 %v549_v23, 16  ;;  %v2948_v19 = vld [vmem:[%s3061_s17 + $0xd8] ss:$8 sps:$4 sm:$0xff]  }
  0x36   : > { %2724 = vmatpush3.bf16.msra.mxu1 %v2913_v27  ;;  %2701 = vmatprep.subr.bf16.mxu0 %v2914_v28  ;;  %v2927_v27 = vld [vmem:[%s3430_s1 + $0xc0] sm:$0xff]   ;;  %v626_v38 = vrot.slane %v624_v29, 5 }
  0x37   : > { %2725 = vmatprep.subr.bf16.mxu1 %v2915_v30  ;;  %2735 = vmatprep.mubr.bf16.mxu1 %v2928_v2  ;;  %v620_v34 = vrot.slane %v618_v26, 5  ;;  %v634_v40 = vrot.slane %v632_v31, 5  ;;  %v2942_v31 = vld [vmem:[%s3430_s1 + $0x110] sm:$0xff]  }
  0x38   : > { %2711 = vmatprep.mubr.bf16.mxu0 %v2291_v17  ;;  %v2939_v17 = vld [vmem:[%s3430_s1 + $0x160] sm:$0xff]  }
  0x39   : > { %2702 = vmatpush3.bf16.msra.mxu0 %v2914_v28  ;;  %v613_v28 = vsel %vm3132_vm2, %v608_v18, %v612_v15  ;;  %v621_v43 = vor.u32 %v620_v34, %v617_v33  ;;  %v2937_v15 = vld [vmem:[%s3061_s17 + $0xc0] ss:$8 sps:$4 sm:$0xff]   ;;  %v2940_v18 = vld [vmem:[%s3430_s1 + $0x118] sm:$0xff]   ;;  %v2943_v34 = vld [vmem:[%s3430_s1 + $0x150] sm:$0xff]  }
  0x3a   : > { %2726 = vmatpush3.bf16.msra.mxu1 %v2915_v30  ;;  %2703 = vmatprep.subr.bf16.mxu0 %v2916_v36  ;;  %v629_v30 = vshrl.u32 %v549_v23, 16  ;;  %v2292_v62 = vcombine.low %v599_v22, %v613_v28  ;;  %v2376_v22 = vld [vmem:[%s3061_s17 + $0x94] sm:$0x1]  ;;  %v2377_v23 = vld [vmem:[%s3061_s17 + $0x98] sm:$0xf] }
  0x3b   : > { %2727 = vmatprep.subr.bf16.mxu1 %v2917_v42  ;;  %v622_v53 = vrot.slane %v621_v43, 4  ;;  %v1197_v28 = vshrl.u32 %v2377_v23, 16  ;;  %v1200_v29 = vshll.u32 %v2377_v23, 16  ;;  %v2381_v43 = vld [vmem:[%s3061_s17 + $0xa8] sm:$0xf] }
  0x3c   : > { %v631_v39 = vrot.slane %v629_v30, 4  ;;  %v1206_v30 = vshll.u32 %v2378_v24, 16  ;;  %v1228_v50 = vshll.u32 %v2381_v43, 16  ;;  %v2388_v24 = vld [vmem:[%s3061_s17 + $0xc4] sm:$0x1] }
  0x3d   : > { %2704 = vmatpush3.bf16.msra.mxu0 %v2916_v36  ;;  %v552_v36 = vld [vmem:[%s3061_s17 + $0x34] sm:$0x1]  ;;  %v627_v63 = vsel %vm3132_vm2, %v622_v53, %v626_v38  ;;  %v1202_v37 = vrot.slane %v1200_v29, 5  ;;  %v2389_v29 = vld [vmem:[%s3061_s17 + $0xc8] sm:$0xf] }
  0x3e   : > { %2728 = vmatpush3.bf16.msra.mxu1 %v2917_v42  ;;  %2705 = vmatprep.subr.bf16.mxu0 %v2922_v60  ;;  %v646_v42 = vshll.u32 %v551_v32, 16  ;;  %v652_v47 = vshll.u32 %v552_v36, 16  ;;  %v635_v48 = vor.u32 %v634_v40, %v631_v39  ;;  %v1199_v36 = vrot.slane %v1197_v28, 4  ;;  %v2379_v40 = vld [vmem:[%s3061_s17 + $0xa0] sm:$0xf] }
  0x3f   : > { %2729 = vmatprep.subr.bf16.mxu1 %v2923_v3  ;;  %v1208_v38 = vrot.slane %v1206_v30, 5  ;;  %v1211_v45 = vshrl.u32 %v2379_v40, 16 }
  0x40   : > { %v648_v49 = vrot.slane %v646_v42, 5  ;;  %v636_v57 = vrot.slane %v635_v48, 4  ;;  %v654_v0 = vrot.slane %v652_v47, 5  ;;  %v1203_v42 = vor.u32 %v1202_v37, %v1199_v36  ;;  %v2953_v37 = vld [vmem:[%s3430_s1 + $0x1f0] sm:$0xff]  }
  0x41   : > { %2706 = vmatpush3.bf16.msra.mxu0 %v2922_v60  ;;  %v662_v60 = vrot.slane %v660_v51, 5  ;;  %v1220_v48 = vshll.u32 %v2380_v41, 16  ;;  %v1281_v41 = vshrl.u32 %v2389_v29, 16 }
  0x42   : > { %2730 = vmatpush3.bf16.msra.mxu1 %v2923_v3  ;;  %2707 = vmatprep.subr.bf16.mxu0 %v2924_v12  ;;  %v649_v58 = vor.u32 %v648_v49, %v645_v46  ;;  %v641_v2 = vsel %vm3132_vm2, %v636_v57, %v640_v44  ;;  %v2382_v44 = vld [vmem:[%s3061_s17 + $0xac] sm:$0x1]  ;;  %v1214_v46 = vshll.u32 %v2379_v40, 16  ;;  %v1225_v49 = vshrl.u32 %v2381_v43, 16 }
  0x43   : > { %2731 = vmatprep.subr.bf16.mxu1 %v2925_v16  ;;  %v663_v4 = vor.u32 %v662_v60, %v659_v59  ;;  %v2293_v8 = vcombine.low %v627_v63, %v641_v2  ;;  %v1204_v51 = vrot.slane %v1203_v42, 4  ;;  %v1234_v54 = vshll.u32 %v2382_v44, 16  ;;  %v2945_v59 = vld [vmem:[%s3430_s1 + $0x148] sm:$0xff]  }
  0x44   : > { %v650_v3 = vrot.slane %v649_v58, 4  ;;  %v1216_v53 = vrot.slane %v1214_v46, 5  ;;  %v1227_v57 = vrot.slane %v1225_v49, 4  ;;  %v1230_v58 = vrot.slane %v1228_v50, 5  ;;  %v2956_v49 = vld [vmem:[%s3430_s1 + $0x1a8] sm:$0xff]  }
  0x45   : > { %2708 = vmatpush3.bf16.msra.mxu0 %v2924_v12  ;;  %v664_v9 = vrot.slane %v663_v4, 4  ;;  %v1209_v60 = vsel %vm3132_vm2, %v1204_v51, %v1208_v38  ;;  %v1222_v63 = vrot.slane %v1220_v48, 5  ;;  %v1236_v2 = vrot.slane %v1234_v54, 5 }
  0x46   : > { %2732 = vmatpush3.bf16.msra.mxu1 %v2925_v16  ;;  %2709 = vmatprep.subr.bf16.mxu0 %v2926_v21  ;;  %v655_v11 = vsel %vm3132_vm2, %v650_v3, %v654_v0  ;;  %v2938_v16 = vld [vmem:[%s3430_s1 + $0x120] sm:$0xff]   ;;  %v1276_v40 = vshll.u32 %v2388_v24, 16  ;;  %v1284_v43 = vshll.u32 %v2389_v29, 16  ;;  %v1283_v48 = vrot.slane %v1281_v41, 4  ;;  %v2499_v24 = vld [vmem:[%s3061_s17 + $0x28] sm:$0xf] }
  0x47   : > { %2733 = vmatprep.subr.bf16.mxu1 %v2927_v27  ;;  %v669_v12 = vsel %vm3132_vm2, %v664_v9, %v668_v5  ;;  %v2946_v3 = vld [vmem:[%s3430_s1 + $0x100] sm:$0xff]   ;;  %v2950_v9 = vld [vmem:[%s3430_s1 + $0x1b8] sm:$0xff]   ;;  %v2973_v41 = vld [vmem:[%s3430_s1 + $0x230] sm:$0xff]  }
  0x48   : > { %v2294_v14 = vcombine.low %v655_v11, %v669_v12  ;;  %v2947_v5 = vld [vmem:[%s3430_s1 + $0x140] sm:$0xff]   ;;  %v2384_v11 = vld [vmem:[%s3061_s17 + $0xb4] sm:$0x1]  ;;  %v2385_v12 = vld [vmem:[%s3061_s17 + $0xb8] sm:$0xf]  ;;  %v1278_v51 = vrot.slane %v1276_v40, 5 }
  0x49   : > { %2710 = vmatpush3.bf16.msra.mxu0 %v2926_v21  ;;  %v2375_v21 = vld [vmem:[%s3061_s17 + $0x90] sm:$0xf] }
  0x4a   : > { %2734 = vmatpush3.bf16.msra.mxu1 %v2927_v27  ;;  %2743 = vmatprep.subr.bf16.mxu0 %v2929_v52  ;;  %v1183_v25 = vshrl.u32 %v2375_v21, 16  ;;  %v1186_v26 = vshll.u32 %v2375_v21, 16  ;;  %v1192_v27 = vshll.u32 %v2376_v22, 16  ;;  %v1253_v21 = vshrl.u32 %v2385_v12, 16 }
  0x4b   : > { %2767 = vmatprep.subr.bf16.mxu1 %v2930_v55  ;;  %v1256_v22 = vshll.u32 %v2385_v12, 16  ;;  %v2966_v12 = vld [vmem:[%s3430_s1 + $0x180] sm:$0xff]  }
  0x4c   : > { %2712 = vmatmul.mubr.bf16.vlgmr.msra.gmra.mxu0 %v2292_v62  ;;  %v1185_v32 = vrot.slane %v1183_v25, 4  ;;  %v1188_v33 = vrot.slane %v1186_v26, 5  ;;  %v1194_v35 = vrot.slane %v1192_v27, 5 }
  0x4d   : > { %2736 = vmatmul.mubr.bf16.vlgmr.msra.gmra.mxu1 %v2931_v56  ;;  %2744 = vmatpush3.bf16.msra.mxu0 %v2929_v52  ;;  %v1213_v52 = vrot.slane %v1211_v45, 4  ;;  %v2954_v45 = vld [vmem:[%s3061_s17 + $0xf8] ss:$8 sps:$4 sm:$0xff]  }
  0x4e   : > { %2768 = vmatpush3.bf16.msra.mxu1 %v2930_v55  ;;  %2745 = vmatprep.subr.bf16.mxu0 %v2932_v1  ;;  %v1189_v39 = vor.u32 %v1188_v33, %v1185_v32  ;;  %v2944_v55 = vld [vmem:[%s3430_s1 + $0x108] sm:$0xff]   ;;  %v1255_v32 = vrot.slane %v1253_v21, 4  ;;  %v1258_v33 = vrot.slane %v1256_v22, 5  ;;  %v2969_v21 = vld [vmem:[%s3061_s17 + $0x18] ss:$8 sps:$4 sm:$0xff]  }
  0x4f   : > { %2769 = vmatprep.subr.bf16.mxu1 %v2933_v7  ;;  %2715 = vmatprep.mubr.bf16.mxu0 %v2293_v8  ;;  %v1217_v62 = vor.u32 %v1216_v53, %v1213_v52  ;;  %v2383_v8 = vld [vmem:[%s3061_s17 + $0xb0] sm:$0xf]  ;;  %v1286_v52 = vrot.slane %v1284_v43, 5  ;;  %v2971_v22 = vld [vmem:[%s3430_s1 + $0x238] sm:$0xff]  }
  0x50   : > { %2739 = vmatprep.mubr.bf16.mxu1 %v2936_v6  ;;  %v1190_v47 = vrot.slane %v1189_v39, 4  ;;  %v1259_v42 = vor.u32 %v1258_v33, %v1255_v32  ;;  %v2502_v33 = vld [vmem:[%s3061_s17 + $0x34] sm:$0x1] }
  0x51   : > { %2746 = vmatpush3.bf16.msra.mxu0 %v2932_v1  ;;  %v1231_v1 = vor.u32 %v1230_v58, %v1227_v57  ;;  %v1218_v4 = vrot.slane %v1217_v62, 4  ;;  %v1287_v58 = vor.u32 %v1286_v52, %v1283_v48 }
  0x52   : > { %2770 = vmatpush3.bf16.msra.mxu1 %v2933_v7  ;;  %2747 = vmatprep.subr.bf16.mxu0 %v2934_v10  ;;  %v1195_v56 = vsel %vm3132_vm2, %v1190_v47, %v1194_v35  ;;  %v2390_v35 = vld [vmem:[%s3061_s17 + $0xcc] sm:$0x1]  ;;  %v1260_v50 = vrot.slane %v1259_v42, 4 }
  0x53   : > { %2771 = vmatprep.subr.bf16.mxu1 %v2935_v13  ;;  %v2407_v0 = vcombine.low %v1195_v56, %v1209_v60  ;;  %v1232_v6 = vrot.slane %v1231_v1, 4  ;;  %v1223_v7 = vsel %vm3132_vm2, %v1218_v4, %v1222_v63  ;;  %v1290_v44 = vshll.u32 %v2390_v35, 16  ;;  %v2955_v56 = vld [vmem:[%s3061_s17 + $0x108] ss:$8 sps:$4 sm:$0xff]   ;;  %v2958_v1 = vld [vmem:[%s3430_s1 + $0x1a0] sm:$0xff]  }
  0x54   : > { %2716 = vmatmul.mubr.bf16.gmra.mxu0 %v2294_v14  ;;  %v2951_v14 = vld [vmem:[%s3430_s1 + $0x1f8] sm:$0xff]   ;;  %v1288_v63 = vrot.slane %v1287_v58, 4  ;;  %v2968_v4 = vld [vmem:[%s3061_s17 + $0x8] ss:$8 sps:$4 sm:$0xff]   ;;  %v1866_v35 = vshll.u32 %v2499_v24, 16 }
  0x55   : > { %2748 = vmatpush3.bf16.msra.mxu0 %v2934_v10  ;;  %2740 = vmatmul.mubr.bf16.gmra.mxu1 %v2937_v15  ;;  %v1237_v10 = vsel %vm3132_vm2, %v1232_v6, %v1236_v2  ;;  %v2970_v6 = vld [vmem:[%s3061_s17 + $0x50] ss:$8 sps:$4 sm:$0xff]   ;;  %v2976_v58 = vld [vmem:[%s3430_s1 + $0x228] sm:$0xff]  }
  0x56   : > { %2772 = vmatpush3.bf16.msra.mxu1 %v2935_v13  ;;  %2749 = vmatprep.subr.bf16.mxu0 %v2938_v16  ;;  %v2386_v13 = vld [vmem:[%s3061_s17 + $0xbc] sm:$0x1]  ;;  %v2408_v15 = vcombine.low %v1223_v7, %v1237_v10  ;;  %v2964_v10 = vld [vmem:[%s3430_s1 + $0x188] sm:$0xff]  }
  0x57   : > { %2773 = vmatprep.subr.bf16.mxu1 %v2939_v17  ;;  %2759 = vmatprep.mubr.bf16.mxu0 %v2948_v19  ;;  %v2387_v19 = vld [vmem:[%s3061_s17 + $0xc0] sm:$0xf]  ;;  %v1262_v23 = vshll.u32 %v2386_v13, 16  ;;  %v2961_v7 = vld [vmem:[%s3430_s1 + $0x1d8] sm:$0xff]  }
  0x58   : > { %2783 = vmatprep.mubr.bf16.mxu1 %v2407_v0  ;;  %v1267_v25 = vshrl.u32 %v2387_v19, 16  ;;  %v1270_v30 = vshll.u32 %v2387_v19, 16  ;;  %v2967_v13 = vld [vmem:[%s3430_s1 + $0x1c0] sm:$0xff]  }
  0x59   : > { %2750 = vmatpush3.bf16.msra.mxu0 %v2938_v16  ;;  %v1239_v16 = vshrl.u32 %v2383_v8, 16 }
  0x5a   : > { %2774 = vmatpush3.bf16.msra.mxu1 %v2939_v17  ;;  %2751 = vmatprep.subr.bf16.mxu0 %v2940_v18  ;;  %v1242_v17 = vshll.u32 %v2383_v8, 16  ;;  %v1269_v36 = vrot.slane %v1267_v25, 4  ;;  %v1272_v39 = vrot.slane %v1270_v30, 5  ;;  %v2962_v8 = vld [vmem:[%s3430_s1 + $0x190] sm:$0xff]   ;;  %v2500_v25 = vld [vmem:[%s3061_s17 + $0x2c] sm:$0x1] }
  0x5b   : > { %2775 = vmatprep.subr.bf16.mxu1 %v2941_v20  ;;  %v1241_v26 = vrot.slane %v1239_v16, 4  ;;  %v2493_v16 = vld [vmem:[%s3061_s17 + $0x10] sm:$0xf] }
  0x5c   : > { %v1244_v27 = vrot.slane %v1242_v17, 5  ;;  %v1273_v47 = vor.u32 %v1272_v39, %v1269_v36  ;;  %v2494_v17 = vld [vmem:[%s3061_s17 + $0x14] sm:$0x1]  ;;  %v2501_v30 = vld [vmem:[%s3061_s17 + $0x30] sm:$0xf] }
  0x5d   : > { %2752 = vmatpush3.bf16.msra.mxu0 %v2940_v18  ;;  %v1248_v18 = vshll.u32 %v2384_v11, 16  ;;  %v2965_v11 = vld [vmem:[%s3430_s1 + $0x1c8] sm:$0xff]   ;;  %v1830_v32 = vshll.u32 %v2494_v17, 16  ;;  %v1877_v39 = vshrl.u32 %v2501_v30, 16  ;;  %v1880_v40 = vshll.u32 %v2501_v30, 16 }
  0x5e   : > { %2776 = vmatpush3.bf16.msra.mxu1 %v2941_v20  ;;  %2753 = vmatprep.subr.bf16.mxu0 %v2942_v31  ;;  %v2949_v20 = vld [vmem:[%s3061_s17 + $0xe8] ss:$8 sps:$4 sm:$0xff]   ;;  %v1245_v38 = vor.u32 %v1244_v27, %v1241_v26  ;;  %v1274_v54 = vrot.slane %v1273_v47, 4 }
  0x5f   : > { %2777 = vmatprep.subr.bf16.mxu1 %v2943_v34  ;;  %v1250_v28 = vrot.slane %v1248_v18, 5  ;;  %v2972_v36 = vld [vmem:[%s3061_s17 + $0x60] ss:$8 sps:$4 sm:$0xff]   ;;  %v1879_v48 = vrot.slane %v1877_v39, 4 }
  0x60   : > { %v1246_v46 = vrot.slane %v1245_v38, 4  ;;  %v1279_v62 = vsel %vm3132_vm2, %v1274_v54, %v1278_v51  ;;  %v1872_v38 = vshll.u32 %v2500_v25, 16 }
  0x61   : > { %2754 = vmatpush3.bf16.msra.mxu0 %v2942_v31  ;;  %v2952_v31 = vld [vmem:[%s3430_s1 + $0x1b0] sm:$0xff]  }
  0x62   : > { %2778 = vmatpush3.bf16.msra.mxu1 %v2943_v34  ;;  %2755 = vmatprep.subr.bf16.mxu0 %v2944_v55  ;;  %v1264_v34 = vrot.slane %v1262_v23, 5  ;;  %v1251_v53 = vsel %vm3132_vm2, %v1246_v46, %v1250_v28  ;;  %v1824_v23 = vshll.u32 %v2493_v16, 16  ;;  %v2974_v46 = vld [vmem:[%s3061_s17 + $0x28] ss:$8 sps:$4 sm:$0xff]  }
  0x63   : > { %2779 = vmatprep.subr.bf16.mxu1 %v2945_v59 }
  0x64   : > { %v1265_v57 = vsel %vm3132_vm2, %v1260_v50, %v1264_v34  ;;  %v1863_v34 = vshrl.u32 %v2499_v24, 16  ;;  %v2977_v50 = vld [vmem:[%s3061_s17 + $0x70] ss:$8 sps:$4 sm:$0xff]  }
  0x65   : > { %2756 = vmatpush3.bf16.msra.mxu0 %v2944_v55  ;;  %v1292_v55 = vrot.slane %v1290_v44, 5  ;;  %v2409_v60 = vcombine.low %v1251_v53, %v1265_v57  ;;  %v1868_v44 = vrot.slane %v1866_v35, 5  ;;  %v1832_v53 = vrot.slane %v1830_v32, 5  ;;  %v2506_v32 = vld [vmem:[%s3061_s17 + $0x44] sm:$0x1] }
  0x66   : > { %2780 = vmatpush3.bf16.msra.mxu1 %v2945_v59  ;;  %2757 = vmatprep.subr.bf16.mxu0 %v2946_v3  ;;  %v2957_v59 = vld [vmem:[%s3430_s1 + $0x1e8] sm:$0xff]   ;;  %v1865_v43 = vrot.slane %v1863_v34, 4 }
  0x67   : > { %2781 = vmatprep.subr.bf16.mxu1 %v2947_v5  ;;  %v1293_v0 = vsel %vm3132_vm2, %v1288_v63, %v1292_v55  ;;  %v1874_v55 = vrot.slane %v1872_v38, 5 }
  0x68   : > { %v2410_v2 = vcombine.low %v1279_v62, %v1293_v0  ;;  %v1869_v54 = vor.u32 %v1868_v44, %v1865_v43  ;;  %v2975_v62 = vld [vmem:[%s3061_s17 + $0x38] ss:$8 sps:$4 sm:$0xff]  }
  0x69   : > { %2758 = vmatpush3.bf16.msra.mxu0 %v2946_v3  ;;  %v2959_v3 = vld [vmem:[%s3430_s1 + $0x1e0] sm:$0xff]  }
  0x6a   : > { %2782 = vmatpush3.bf16.msra.mxu1 %v2947_v5  ;;  %2791 = vmatprep.subr.bf16.mxu0 %v2950_v9  ;;  %v2960_v5 = vld [vmem:[%s3430_s1 + $0x198] sm:$0xff]  }
  0x6b   : > { %2815 = vmatprep.subr.bf16.mxu1 %v2951_v14 }
  0x6c   : > { %2760 = vmatmul.mubr.bf16.vlgmr.msra.gmra.mxu0 %v2949_v20  ;;  %v1821_v20 = vshrl.u32 %v2493_v16, 16 }
  0x6d   : > { %2784 = vmatmul.mubr.bf16.vlgmr.msra.gmra.mxu1 %v2408_v15  ;;  %2792 = vmatpush3.bf16.msra.mxu0 %v2950_v9  ;;  %v2963_v9 = vld [vmem:[%s3430_s1 + $0x1d0] sm:$0xff]   ;;  %v2492_v15 = vld [vmem:[%s3061_s17 + $0xc] sm:$0x1] }
  0x6e   : > { %2816 = vmatpush3.bf16.msra.mxu1 %v2951_v14  ;;  %2793 = vmatprep.subr.bf16.mxu0 %v2952_v31  ;;  %v2491_v14 = vld [vmem:[%s3061_s17 + $0x8] sm:$0xf]  ;;  %v1816_v28 = vshll.u32 %v2492_v15, 16  ;;  %v1823_v29 = vrot.slane %v1821_v20, 4  ;;  %v2980_v15 = vld [vmem:[%s3430_s1 + $0x218] sm:$0xff]   ;;  %v2981_v20 = vld [vmem:[%s3430_s1 + $0x210] sm:$0xff]  }
  0x6f   : > { %2817 = vmatprep.subr.bf16.mxu1 %v2953_v37  ;;  %2763 = vmatprep.mubr.bf16.mxu0 %v2954_v45  ;;  %v1807_v18 = vshrl.u32 %v2491_v14, 16  ;;  %v1810_v19 = vshll.u32 %v2491_v14, 16  ;;  %v1886_v45 = vshll.u32 %v2502_v33, 16 }
  0x70   : > { %2787 = vmatprep.mubr.bf16.mxu1 %v2409_v60  ;;  %v1818_v47 = vrot.slane %v1816_v28, 5 }
  0x71   : > { %2794 = vmatpush3.bf16.msra.mxu0 %v2952_v31  ;;  %v1809_v26 = vrot.slane %v1807_v18, 4  ;;  %v1812_v27 = vrot.slane %v1810_v19, 5  ;;  %v1826_v31 = vrot.slane %v1824_v23, 5  ;;  %v1888_v57 = vrot.slane %v1886_v45, 5 }
  0x72   : > { %2818 = vmatpush3.bf16.msra.mxu1 %v2953_v37  ;;  %2795 = vmatprep.subr.bf16.mxu0 %v2956_v49 }
  0x73   : > { %2819 = vmatprep.subr.bf16.mxu1 %v2957_v59  ;;  %v1813_v37 = vor.u32 %v1812_v27, %v1809_v26  ;;  %v1827_v42 = vor.u32 %v1826_v31, %v1823_v29  ;;  %v2498_v26 = vld [vmem:[%s3061_s17 + $0x24] sm:$0x1]  ;;  %v2504_v31 = vld [vmem:[%s3061_s17 + $0x3c] sm:$0x1] }
  0x74   : > { %2764 = vmatmul.mubr.bf16.gmra.mxu0 %v2955_v56  ;;  %v1900_v39 = vshll.u32 %v2504_v31, 16 }
  0x75   : > { %2796 = vmatpush3.bf16.msra.mxu0 %v2956_v49  ;;  %2788 = vmatmul.mubr.bf16.gmra.mxu1 %v2410_v2  ;;  %v1882_v49 = vrot.slane %v1880_v40, 5  ;;  %v1814_v51 = vrot.slane %v1813_v37, 4  ;;  %v1828_v52 = vrot.slane %v1827_v42, 4  ;;  %v2982_v37 = vld [vmem:[%s3430_s1 + $0x208] sm:$0xff]  }
  0x76   : > { %2820 = vmatpush3.bf16.msra.mxu1 %v2957_v59  ;;  %2797 = vmatprep.subr.bf16.mxu0 %v2958_v1  ;;  %v1870_v59 = vrot.slane %v1869_v54, 4 }
  0x77   : > { %2821 = vmatprep.subr.bf16.mxu1 %v2959_v3  ;;  %2807 = vmatprep.mubr.bf16.mxu0 %v2968_v4  ;;  %v1883_v56 = vor.u32 %v1882_v49, %v1879_v48  ;;  %v1819_v63 = vsel %vm3132_vm2, %v1814_v51, %v1818_v47  ;;  %v1833_v0 = vsel %vm3132_vm2, %v1828_v52, %v1832_v53  ;;  %v2979_v4 = vld [vmem:[%s3430_s1 + $0x220] sm:$0xff]   ;;  %v1902_v48 = vrot.slane %v1900_v39, 5 }
  0x78   : > { %2831 = vmatprep.mubr.bf16.mxu1 %v2970_v6  ;;  %v1875_v2 = vsel %vm3132_vm2, %v1870_v59, %v1874_v55  ;;  %v2497_v6 = vld [vmem:[%s3061_s17 + $0x20] sm:$0xf] }
  0x79   : > { %2798 = vmatpush3.bf16.msra.mxu0 %v2958_v1  ;;  %v1884_v60 = vrot.slane %v1883_v56, 4  ;;  %v2978_v1 = vld [vmem:[%s3061_s17 + $0x80] ss:$8 sps:$4 sm:$0xff]   ;;  %v1852_v14 = vshll.u32 %v2497_v6, 16 }
  0x7a   : > { %2822 = vmatpush3.bf16.msra.mxu1 %v2959_v3  ;;  %2799 = vmatprep.subr.bf16.mxu0 %v2960_v5 }
  0x7b   : > { %2823 = vmatprep.subr.bf16.mxu1 %v2961_v7  ;;  %v1889_v3 = vsel %vm3132_vm2, %v1884_v60, %v1888_v57  ;;  %v1854_v25 = vrot.slane %v1852_v14, 5 }
  0x7d   : > { %2800 = vmatpush3.bf16.msra.mxu0 %v2960_v5  ;;  %v2495_v5 = vld [vmem:[%s3061_s17 + $0x18] sm:$0xf] }
  0x7e   : > { %2824 = vmatpush3.bf16.msra.mxu1 %v2961_v7  ;;  %2801 = vmatprep.subr.bf16.mxu0 %v2962_v8  ;;  %v2523_v7 = vcombine.low %v1819_v63, %v1833_v0 }
  0x7f   : > { %2825 = vmatprep.subr.bf16.mxu1 %v2963_v9 }
  0x81   : > { %2802 = vmatpush3.bf16.msra.mxu0 %v2962_v8  ;;  %v2503_v8 = vld [vmem:[%s3061_s17 + $0x38] sm:$0xf] }
  0x82   : > { %2826 = vmatpush3.bf16.msra.mxu1 %v2963_v9  ;;  %2803 = vmatprep.subr.bf16.mxu0 %v2964_v10  ;;  %v2505_v9 = vld [vmem:[%s3061_s17 + $0x40] sm:$0xf]  ;;  %v1891_v16 = vshrl.u32 %v2503_v8, 16  ;;  %v1894_v17 = vshll.u32 %v2503_v8, 16 }
  0x83   : > { %2827 = vmatprep.subr.bf16.mxu1 %v2965_v11  ;;  %v1905_v18 = vshrl.u32 %v2505_v9, 16  ;;  %v1908_v19 = vshll.u32 %v2505_v9, 16 }
  0x84   : > { %v1893_v27 = vrot.slane %v1891_v16, 4  ;;  %v1896_v28 = vrot.slane %v1894_v17, 5 }
  0x85   : > { %2804 = vmatpush3.bf16.msra.mxu0 %v2964_v10  ;;  %v2525_v10 = vcombine.low %v1875_v2, %v1889_v3  ;;  %v1907_v29 = vrot.slane %v1905_v18, 4  ;;  %v1910_v30 = vrot.slane %v1908_v19, 5 }
  0x86   : > { %2828 = vmatpush3.bf16.msra.mxu1 %v2965_v11  ;;  %2805 = vmatprep.subr.bf16.mxu0 %v2966_v12  ;;  %v1835_v11 = vshrl.u32 %v2495_v5, 16  ;;  %v1897_v38 = vor.u32 %v1896_v28, %v1893_v27 }
  0x87   : > { %2829 = vmatprep.subr.bf16.mxu1 %v2967_v13  ;;  %v1911_v40 = vor.u32 %v1910_v30, %v1907_v29 }
  0x88   : > { %v1898_v47 = vrot.slane %v1897_v38, 4 }
  0x89   : > { %2806 = vmatpush3.bf16.msra.mxu0 %v2966_v12  ;;  %v1838_v12 = vshll.u32 %v2495_v5, 16  ;;  %v1912_v49 = vrot.slane %v1911_v40, 4 }
  0x8a   : > { %2830 = vmatpush3.bf16.msra.mxu1 %v2967_v13  ;;  %2839 = vmatprep.subr.bf16.mxu0 %v2971_v22  ;;  %v1849_v13 = vshrl.u32 %v2497_v6, 16  ;;  %v1903_v53 = vsel %vm3132_vm2, %v1898_v47, %v1902_v48 }
  0x8b   : > { %2863 = vmatprep.subr.bf16.mxu1 %v2971_v22  ;;  %v1840_v23 = vrot.slane %v1838_v12, 5 }
  0x8c   : > { %2808 = vmatmul.mubr.bf16.vlgmr.msra.gmra.mxu0 %v2969_v21  ;;  %v2496_v21 = vld [vmem:[%s3061_s17 + $0x1c] sm:$0x1]  ;;  %v1851_v24 = vrot.slane %v1849_v13, 4 }
  0x8d   : > { %2832 = vmatmul.mubr.bf16.vlgmr.msra.gmra.mxu1 %v2972_v36  ;;  %2840 = vmatpush3.bf16.msra.mxu0 %v2971_v22  ;;  %v1844_v34 = vshll.u32 %v2496_v21, 16  ;;  %v1858_v36 = vshll.u32 %v2498_v26, 16 }
  0x8e   : > { %2871 = vmatpush3.bf16.msra.mxu1 %v2971_v22  ;;  %2841 = vmatprep.subr.bf16.mxu0 %v2973_v41  ;;  %v1837_v22 = vrot.slane %v1835_v11, 4  ;;  %v1855_v35 = vor.u32 %v1854_v25, %v1851_v24 }
  0x8f   : > { %2864 = vmatprep.subr.bf16.mxu1 %v2973_v41  ;;  %2811 = vmatprep.mubr.bf16.mxu0 %v2974_v46  ;;  %v1846_v43 = vrot.slane %v1844_v34, 5  ;;  %v1860_v45 = vrot.slane %v1858_v36, 5  ;;  %v2983_v46 = vld [vmem:[%s3430_s1 + $0x200] sm:$0xff]  }
  0x90   : > { %2835 = vmatprep.mubr.bf16.mxu1 %v2977_v50  ;;  %v1841_v33 = vor.u32 %v1840_v23, %v1837_v22  ;;  %v1856_v44 = vrot.slane %v1855_v35, 4 }
  0x91   : > { %2842 = vmatpush3.bf16.msra.mxu0 %v2973_v41 }
  0x92   : > { %2872 = vmatpush3.bf16.msra.mxu1 %v2973_v41  ;;  %2843 = vmatprep.subr.bf16.mxu0 %v2976_v58  ;;  %v1914_v41 = vshll.u32 %v2506_v32, 16  ;;  %v1842_v42 = vrot.slane %v1841_v33, 4  ;;  %v1861_v52 = vsel %vm3132_vm2, %v1856_v44, %v1860_v45 }
  0x93   : > { %2865 = vmatprep.subr.bf16.mxu1 %v2976_v58 }
  0x94   : > { %2812 = vmatmul.mubr.bf16.gmra.mxu0 %v2975_v62  ;;  %v1916_v50 = vrot.slane %v1914_v41, 5  ;;  %v1847_v51 = vsel %vm3132_vm2, %v1842_v42, %v1846_v43 }
  0x95   : > { %2844 = vmatpush3.bf16.msra.mxu0 %v2976_v58  ;;  %2836 = vmatmul.mubr.bf16.gmra.mxu1 %v2978_v1  ;;  %v2524_v55 = vcombine.low %v1847_v51, %v1861_v52 }
  0x96   : > { %2873 = vmatpush3.bf16.msra.mxu1 %v2976_v58  ;;  %2845 = vmatprep.subr.bf16.mxu0 %v2979_v4  ;;  %v1917_v54 = vsel %vm3132_vm2, %v1912_v49, %v1916_v50 }
  0x97   : > { %2866 = vmatprep.subr.bf16.mxu1 %v2979_v4  ;;  %2855 = vmatprep.mubr.bf16.mxu0 %v2523_v7  ;;  %v2526_v56 = vcombine.low %v1903_v53, %v1917_v54 }
  0x98   : > { %2859 = vmatprep.mubr.bf16.mxu1 %v2525_v10 }
  0x99   : > { %2846 = vmatpush3.bf16.msra.mxu0 %v2979_v4 }
  0x9a   : > { %2874 = vmatpush3.bf16.msra.mxu1 %v2979_v4  ;;  %2847 = vmatprep.subr.bf16.mxu0 %v2980_v15 }
  0x9b   : > { %2867 = vmatprep.subr.bf16.mxu1 %v2980_v15 }
  0x9d   : > { %2848 = vmatpush3.bf16.msra.mxu0 %v2980_v15 }
  0x9e   : > { %2875 = vmatpush3.bf16.msra.mxu1 %v2980_v15  ;;  %2849 = vmatprep.subr.bf16.mxu0 %v2981_v20 }
  0x9f   : > { %2868 = vmatprep.subr.bf16.mxu1 %v2981_v20 }
  0xa1   : > { %2850 = vmatpush3.bf16.msra.mxu0 %v2981_v20 }
  0xa2   : > { %2876 = vmatpush3.bf16.msra.mxu1 %v2981_v20  ;;  %2851 = vmatprep.subr.bf16.mxu0 %v2982_v37 }
  0xa3   : > { %2869 = vmatprep.subr.bf16.mxu1 %v2982_v37 }
  0xa5   : > { %2852 = vmatpush3.bf16.msra.mxu0 %v2982_v37 }
  0xa6   : > { %2877 = vmatpush3.bf16.msra.mxu1 %v2982_v37  ;;  %2853 = vmatprep.subr.bf16.mxu0 %v2983_v46 }
  0xa7   : > { %2870 = vmatprep.subr.bf16.mxu1 %v2983_v46 }
  0xa9   : > { %2854 = vmatpush3.bf16.msra.mxu0 %v2983_v46 }
  0xaa   : > { %2878 = vmatpush3.bf16.msra.mxu1 %v2983_v46 }
  0xac   : > { %2856 = vmatmul.mubr.bf16.vlgmr.msra.gmra.mxu0 %v2524_v55 }
  0xad   : > { %2860 = vmatmul.mubr.bf16.vlgmr.msra.gmra.mxu1 %v2526_v56 }
  0xec   : > { %v2665_v57 = vpop.f32.mrf.mxu0 }
  0xed   : > { %v2689_v58 = vpop.f32.mrf.mxu1 }
  0xee   : > { %v371_v59 = vpop.f32.mrf.mxu0  ;;  %v517_v47 = vadd.f32 %v2689_v58, %v2665_v57 }
  0xef   : > { %v508_v60 = vpop.f32.mrf.mxu1 }
  0xf0   : > { %v2666_v62 = vpop.f32.mrf.mxu0  ;;  %v509_v50 = vadd.f32 %v508_v60, %v371_v59 }
  0xf1   : > { %v2690_v63 = vpop.f32.mrf.mxu1 }
  0xf2   : > { %v374_v0 = vpop.f32.mrf.mxu0  ;;  %v520_v55 = vadd.f32 %v2690_v63, %v2666_v62 }
  0xf3   : > { %v511_v1 = vpop.f32.mrf.mxu1 }
  0xf4   : > { %v2669_v2 = vpop.f32.mrf.mxu0 }
  0xf5   : > { %v2693_v3 = vpop.f32.mrf.mxu1 }
  0xf6   : > { %v387_v4 = vpop.f32.mrf.mxu0  ;;  %v533_v48 = vadd.f32 %v2693_v3, %v2669_v2 }
  0xf7   : > { %v524_v61 = vpop.f32.mrf.mxu1 }
  0xf8   : > { %v2670_v5 = vpop.f32.mrf.mxu0  ;;  %v525_v53 = vadd.f32 %v524_v61, %v387_v4 }
  0xf9   : > { %v2694_v6 = vpop.f32.mrf.mxu1 }
  0xfa   : > { %v390_v7 = vpop.f32.mrf.mxu0 }
  0xfb   : > { %v527_v8 = vpop.f32.mrf.mxu1 }
  0xfc   : > { %v528_v58 = vadd.f32 %v527_v8, %v390_v7 }
 0x10c   : > { %v2713_v9 = vpop.f32.mrf.mxu0 }
 0x10d   : > { %v2737_v10 = vpop.f32.mrf.mxu1  ;;  %v818_v51 = vadd.f32 %v2713_v9, %v517_v47 }
 0x10e   : > { %v785_v11 = vpop.f32.mrf.mxu0 }
 0x10f   : > { %v956_v12 = vpop.f32.mrf.mxu1  ;;  %v816_v56 = vadd.f32 %v785_v11, %v509_v50 }
 0x110   : > { %v2714_v13 = vpop.f32.mrf.mxu0 }
 0x111   : > { %v2738_v14 = vpop.f32.mrf.mxu1  ;;  %v987_v59 = vadd.f32 %v956_v12, %v816_v56 }
 0x112   : > { %v788_v15 = vpop.f32.mrf.mxu0 }
 0x113   : > { %v3378_v16 = vpop.f32.mrf.mxu1 }
 0x114   : > { %3436 = vst [vmem:[#allocation2_spill] sm:$0xff] %v3378_v16  ;;  %v2717_v17 = vpop.f32.mrf.mxu0  ;;  %v512_v16 = vadd.f32 %v511_v1, %v374_v0 }
 0x115   : > { %v2741_v18 = vpop.f32.mrf.mxu1  ;;  %v822_v54 = vadd.f32 %v2717_v17, %v533_v48 }
 0x116   : > { %v801_v19 = vpop.f32.mrf.mxu0  ;;  %v817_v60 = vadd.f32 %v788_v15, %v512_v16 }
 0x117   : > { %v972_v20 = vpop.f32.mrf.mxu1  ;;  %v993_v2 = vadd.f32 %v2741_v18, %v822_v54 }
 0x118   : > { %v2718_v21 = vpop.f32.mrf.mxu0 }
 0x119   : > { %v2742_v22 = vpop.f32.mrf.mxu1 }
 0x11a   : > { %v804_v23 = vpop.f32.mrf.mxu0 }
 0x11b   : > { %v975_v24 = vpop.f32.mrf.mxu1 }
 0x12c   : > { %v2761_v25 = vpop.f32.mrf.mxu0 }
 0x12d   : > { %v2785_v26 = vpop.f32.mrf.mxu1 }
 0x12e   : > { %v1127_v27 = vpop.f32.mrf.mxu0 }
 0x12f   : > { %v1409_v28 = vpop.f32.mrf.mxu1  ;;  %v1158_v63 = vadd.f32 %v1127_v27, %v987_v59 }
 0x130   : > { %v2762_v29 = vpop.f32.mrf.mxu0 }
 0x131   : > { %v3380_v30 = vpop.f32.mrf.mxu1  ;;  %v1440_v16 = vadd.f32 %v1409_v28, %v1158_v63 }
 0x132   : > { %3437 = vst [vmem:[#allocation3_spill] sm:$0xff] %v3380_v30  ;;  %v1130_v31 = vpop.f32.mrf.mxu0 }
 0x133   : > { %v3382_v32 = vpop.f32.mrf.mxu1 }
 0x134   : > { %3438 = vst [vmem:[#allocation4_spill] sm:$0xff] %v3382_v32  ;;  %v2765_v33 = vpop.f32.mrf.mxu0  ;;  %v820_v32 = vadd.f32 %v801_v19, %v525_v53 }
 0x135   : > { %v2789_v34 = vpop.f32.mrf.mxu1  ;;  %v1164_v4 = vadd.f32 %v2765_v33, %v993_v2 }
 0x136   : > { %v1143_v35 = vpop.f32.mrf.mxu0  ;;  %v991_v47 = vadd.f32 %v972_v20, %v820_v32 }
 0x137   : > { %v1425_v36 = vpop.f32.mrf.mxu1  ;;  %v1446_v12 = vadd.f32 %v2789_v34, %v1164_v4 }
 0x138   : > { %v2766_v37 = vpop.f32.mrf.mxu0  ;;  %v1162_v1 = vadd.f32 %v1143_v35, %v991_v47 }
 0x139   : > { %v2790_v38 = vpop.f32.mrf.mxu1 }
 0x13a   : > { %v1146_v39 = vpop.f32.mrf.mxu0 }
 0x13b   : > { %v3384_v40 = vpop.f32.mrf.mxu1 }
 0x13c   : > { %3439 = vst [vmem:[#allocation5_spill] sm:$0xff] %v3384_v40  ;;  %v536_v40 = vadd.f32 %v2694_v6, %v2670_v5  ;;  %v3443_v6 = vld [vmem:[#allocation2_spill] sm:$0xff] }
 0x13e   : > { %v823_v3 = vadd.f32 %v2718_v21, %v536_v40 }
 0x140   : > { %v994_v0 = vadd.f32 %v2742_v22, %v823_v3  ;;  %v3444_v22 = vld [vmem:[#allocation3_spill] sm:$0xff] }
 0x143   : > { %v3446_v34 = vld [vmem:[#allocation5_spill] sm:$0xff] }
 0x14c   : > { %v2809_v41 = vpop.f32.mrf.mxu0 }
 0x14d   : > { %v2833_v42 = vpop.f32.mrf.mxu1 }
 0x14e   : > { %v1580_v43 = vpop.f32.mrf.mxu0 }
 0x14f   : > { %v3386_v44 = vpop.f32.mrf.mxu1 }
 0x150   : > { %3440 = vst [vmem:[#allocation6_spill] sm:$0xff] %v3386_v44  ;;  %v2810_v45 = vpop.f32.mrf.mxu0  ;;  %v989_v44 = vadd.f32 %v2737_v10, %v818_v51  ;;  %v988_v10 = vadd.f32 %v3443_v6, %v817_v60 }
 0x151   : > { %v3388_v46 = vpop.f32.mrf.mxu1 }
 0x152   : > { %3441 = vst [vmem:[#allocation7_spill] sm:$0xff] %v3388_v46  ;;  %v1583_v49 = vpop.f32.mrf.mxu0  ;;  %v819_v46 = vadd.f32 %v2714_v13, %v520_v55  ;;  %v1160_v9 = vadd.f32 %v2761_v25, %v989_v44  ;;  %v1165_v13 = vadd.f32 %v2766_v37, %v994_v0  ;;  %v1159_v17 = vadd.f32 %v1130_v31, %v988_v10 }
 0x153   : > { %v3390_v52 = vpop.f32.mrf.mxu1  ;;  %v1611_v25 = vadd.f32 %v1580_v43, %v1440_v16 }
 0x154   : > { %3442 = vst [vmem:[#allocation8_spill] sm:$0xff] %v3390_v52  ;;  %v2813_v30 = vpop.f32.mrf.mxu0  ;;  %v821_v52 = vadd.f32 %v804_v23, %v528_v58  ;;  %v990_v62 = vadd.f32 %v2738_v14, %v819_v46  ;;  %v1442_v7 = vadd.f32 %v2785_v26, %v1160_v9  ;;  %v1444_v14 = vadd.f32 %v1425_v36, %v1162_v1 }
 0x155   : > { %v2837_v57 = vpop.f32.mrf.mxu1  ;;  %v1617_v21 = vadd.f32 %v2813_v30, %v1446_v12  ;;  %v1447_v26 = vadd.f32 %v2790_v38, %v1165_v13  ;;  %v2535_v30 = vld [vmem:[%s3431_s2] ss:$0 sm:$0xff] }
 0x156   : > { %v1596_v61 = vpop.f32.mrf.mxu0  ;;  %v1161_v8 = vadd.f32 %v2762_v29, %v990_v62  ;;  %v992_v11 = vadd.f32 %v975_v24, %v821_v52  ;;  %v1613_v18 = vadd.f32 %v2809_v41, %v1442_v7  ;;  %v3445_v29 = vld [vmem:[#allocation4_spill] sm:$0xff] }
 0x157   : > { %v1767_v5 = vpop.f32.mrf.mxu1  ;;  %v1615_v27 = vadd.f32 %v1596_v61, %v1444_v14  ;;  %v1441_v32 = vadd.f32 %v3445_v29, %v1159_v17  ;;  %v1788_v37 = vadd.f32 %v2837_v57, %v1617_v21  ;;  %v3447_v36 = vld [vmem:[#allocation6_spill] sm:$0xff] }
 0x158   : > { %v2814_v15 = vpop.f32.mrf.mxu0  ;;  %v1163_v20 = vadd.f32 %v1146_v39, %v992_v11  ;;  %v1443_v23 = vadd.f32 %v3444_v22, %v1161_v8  ;;  %v1784_v33 = vadd.f32 %v2833_v42, %v1613_v18  ;;  %v1782_v39 = vadd.f32 %v3447_v36, %v1611_v25 }
 0x159   : > { %v2838_v19 = vpop.f32.mrf.mxu1  ;;  %v1618_v40 = vadd.f32 %v2814_v15, %v1447_v26  ;;  %v1612_v38 = vadd.f32 %v1583_v49, %v1441_v32  ;;  %v1786_v46 = vadd.f32 %v1767_v5, %v1615_v27  ;;  %v3448_v50 = vld [vmem:[#allocation7_spill] sm:$0xff] }
 0x15a   : > { %v1599_v24 = vpop.f32.mrf.mxu0  ;;  %v1614_v28 = vadd.f32 %v2810_v45, %v1443_v23  ;;  %v1445_v35 = vadd.f32 %v3446_v34, %v1163_v20 }
 0x15b   : > { %v1770_v31 = vpop.f32.mrf.mxu1  ;;  %v1789_v49 = vadd.f32 %v2838_v19, %v1618_v40  ;;  %v3449_v58 = vld [vmem:[#allocation8_spill] sm:$0xff] }
 0x15c   : > { %v1616_v48 = vadd.f32 %v1599_v24, %v1445_v35  ;;  %v1785_v51 = vadd.f32 %v3448_v50, %v1614_v28  ;;  %v1783_v2 = vadd.f32 %v3449_v58, %v1612_v38 }
 0x15e   : > { %v1787_v9 = vadd.f32 %v1770_v31, %v1616_v48 }
 0x16c   : > { %v2857_v41 = vpop.f32.mrf.mxu0 }
 0x16d   : > { %v2066_v43 = vadd.f32 %v2857_v41, %v1784_v33  ;;  %v2861_v44 = vpop.f32.mrf.mxu1 }
 0x16e   : > { %v2070_v42 = vadd.f32 %v2861_v44, %v1788_v37  ;;  %v2033_v45 = vpop.f32.mrf.mxu0 }
 0x16f   : > { %v2081_v52 = vadd.f32 %v2535_v30, %v2066_v43  ;;  %v2064_v53 = vadd.f32 %v2033_v45, %v1782_v39  ;;  %v2049_v54 = vpop.f32.mrf.mxu1 }
 0x170   : > { %v2085_v55 = vadd.f32 %v2535_v30, %v2070_v42  ;;  %v2068_v56 = vadd.f32 %v2049_v54, %v1786_v46  ;;  %v2858_v57 = vpop.f32.mrf.mxu0 }
 0x171   : > { %2089 = vst [vmem:[%s3410_s5 + $0x10] sm:$0xff] %v2081_v52  ;;  %v2079_v3 = vadd.f32 %v2535_v30, %v2064_v53  ;;  %v2067_v59 = vadd.f32 %v2858_v57, %v1785_v51  ;;  %v2862_v60 = vpop.f32.mrf.mxu1  ;;  %v2111_v12 = vmul.f32 %v2081_v52, %v2081_v52 }
 0x172   : > { %2093 = vst [vmem:[%s3410_s5 + $0x30] sm:$0xff] %v2085_v55  ;;  %v2083_v47 = vadd.f32 %v2535_v30, %v2068_v56  ;;  %v2071_v4 = vadd.f32 %v2862_v60, %v1789_v49  ;;  %v2036_v61 = vpop.f32.mrf.mxu0  ;;  %v2115_v25 = vmul.f32 %v2085_v55, %v2085_v55 }
 0x173   : > { %2087 = vst [vmem:[%s3410_s5] sm:$0xff] %v2079_v3  ;;  %v2082_v62 = vadd.f32 %v2535_v30, %v2067_v59  ;;  %v2065_v63 = vadd.f32 %v2036_v61, %v1783_v2  ;;  %v2052_v5 = vpop.f32.mrf.mxu1  ;;  %v2109_v7 = vmul.f32 %v2079_v3, %v2079_v3 }
 0x174   : > { %2091 = vst [vmem:[%s3410_s5 + $0x20] sm:$0xff] %v2083_v47  ;;  %v2086_v0 = vadd.f32 %v2535_v30, %v2071_v4  ;;  %v2069_v1 = vadd.f32 %v2052_v5, %v1787_v9  ;;  %v2113_v19 = vmul.f32 %v2083_v47, %v2083_v47 }
 0x175   : > { %2090 = vst [vmem:[%s3410_s5 + $0x18] sm:$0xff] %v2082_v62  ;;  %v2080_v6 = vadd.f32 %v2535_v30, %v2065_v63  ;;  %v2112_v16 = vmul.f32 %v2082_v62, %v2082_v62 }
 0x176   : > { %2094 = vst [vmem:[%s3410_s5 + $0x38] sm:$0xff] %v2086_v0  ;;  %v2084_v10 = vadd.f32 %v2535_v30, %v2069_v1  ;;  %v2116_v24 = vmul.f32 %v2086_v0, %v2086_v0 }
 0x177   : > { %2088 = vst [vmem:[%s3410_s5 + $0x8] sm:$0xff] %v2080_v6  ;;  %v2095_v8 = vadd.f32 %v2080_v6, %v2079_v3  ;;  %v2110_v11 = vmul.f32 %v2080_v6, %v2080_v6 }
 0x178   : > { %2092 = vst [vmem:[%s3410_s5 + $0x28] sm:$0xff] %v2084_v10  ;;  %v2114_v22 = vmul.f32 %v2084_v10, %v2084_v10 }
 0x179   : > { %v2096_v13 = vadd.f32 %v2095_v8, %v2081_v52  ;;  %v2117_v15 = vadd.f32 %v2110_v11, %v2109_v7 }
 0x17b   : > { %v2118_v17 = vadd.f32 %v2117_v15, %v2111_v12  ;;  %v2097_v18 = vadd.f32 %v2096_v13, %v2082_v62 }
 0x17d   : > { %v2098_v14 = vadd.f32 %v2097_v18, %v2083_v47  ;;  %v2119_v20 = vadd.f32 %v2118_v17, %v2112_v16 }
 0x17f   : > { %v2099_v21 = vadd.f32 %v2098_v14, %v2084_v10  ;;  %v2120_v23 = vadd.f32 %v2119_v20, %v2113_v19 }
 0x181   : > { %v2100_v26 = vadd.f32 %v2099_v21, %v2085_v55  ;;  %v2121_v27 = vadd.f32 %v2120_v23, %v2114_v22 }
 0x183   : > { %v2101_v29 = vadd.f32 %v2100_v26, %v2086_v0  ;;  %v2122_v32 = vadd.f32 %v2121_v27, %v2115_v25 }
 0x185   : > { %v2102_v33 = vrot.slane %v2101_v29, 4  ;;  %v2123_v28 = vadd.f32 %v2122_v32, %v2116_v24 }
 0x187   : > { %v2103_v31 = vadd.f32 %v2102_v33, %v2101_v29  ;;  %v2124_v34 = vrot.slane %v2123_v28, 4 }
 0x189   : > { %v2104_v35 = vrot.slane %v2103_v31, 2  ;;  %v2125_v37 = vadd.f32 %v2124_v34, %v2123_v28 }
 0x18b   : > { %v2105_v40 = vadd.f32 %v2104_v35, %v2103_v31  ;;  %v2126_v41 = vrot.slane %v2125_v37, 2 }
 0x18d   : > { %v2106_v30 = vrot.slane %v2105_v40, 1  ;;  %v2127_v36 = vadd.f32 %v2126_v41, %v2125_v37 }
 0x18f   : > { %v2107_v39 = vadd.f32 %v2106_v30, %v2105_v40  ;;  %v2128_v38 = vrot.slane %v2127_v36, 1 }
 0x191   : > { %2108 = vst [vmem:[%s213_s9] sm:$0x1] %v2107_v39  ;;  %v2129_v43 = vadd.f32 %v2128_v38, %v2127_v36 }
 0x193   : > { %2130 = vst [vmem:[%s213_s9 + $0x1] sm:$0x1] %v2129_v43 }
 0x194 PF: > { %s15_s15 = sadd.s32 1, %s2990_s15  }
 0x195   : > { %p12_p5 = scmp.ge.s32.totalorder %s15_s15, 4  }
 0x197   :  { %14 = sbr.rel (!%p12_p5) target bundleno = 1 (0x1), region = 87 }

// kernel: resblock_forward.4
= control target key start
LH: loop header
LB: loop body
LE: loop exit
PB: predicated region body
PF: predicated region fallthrough
CT: control target
= control target key end

     0   :  { %s3426_s21 = smov 0   ;;  %s4166_s0 = inlined_call_operand.vmem [shape: f32[2,64,128], index: 0, kind: input, shape index: {}]   ;;  %s4167_s1 = inlined_call_operand.vmem [shape: f32[1,128], index: 1, kind: input, shape index: {}]   ;;  %s4168_s2 = inlined_call_operand.vmem [shape: f32[1,128], index: 2, kind: input, shape index: {}]   ;;  %s4169_s3 = inlined_call_operand.vmem [shape: bf16[9,128,128], index: 3, kind: input, shape index: {}]   ;;  %s4170_s4 = inlined_call_operand.vmem [shape: f32[1,128], index: 4, kind: input, shape index: {}]   ;;  %s4171_s5 = inlined_call_operand.vmem [shape: f32[2,64,128], index: 5, kind: output, shape index: {0}]   ;;  %s4172_s6 = inlined_call_operand.vmem [shape: f32[2,2,128], index: 6, kind: output, shape index: {1}]  }
   0x1 LB: > { %s2656_s22 = sadd.s32 4294967295, %s3388_s21   ;;  %p2660_p0 = scmp.ge.s32.totalorder %s3388_s21, 1  ;;  %s3388_s21 = sphi %s3426_s21, %s17_s21  }
   0x2   : > { %p215_p1 = scmp.lt.s32.totalorder %s3388_s21, 3 }
   0x4   : > { %p216_p2 = pnand %p2660_p0, %p215_p1 }
   0x6   : > { %219 = sbr.rel (%p216_p2) target bundleno = 421 (0x1a5), region = 40 }
   0xb   : > { %v3298_v0 = vld [vmem:[%s4169_s3 + $0x38] sm:$0xff]   ;;  %p3437_p3 = scmp.lt.s32.totalorder %s2656_s22, 1  ;;  %v3299_v1 = vld [vmem:[%s4169_s3 + $0x30] sm:$0xff]   ;;  %v3390_v3 = vmov 0   ;;  %v3301_v4 = vld [vmem:[%s4169_s3 + $0x28] sm:$0xff]   ;;  %vm315_vm0 = vcmask 1040384  }
   0xc   : > { %3081 = vmatprep.subr.bf16.mxu1 %v3298_v0  ;;  %v3300_v2 = vld [vmem:[%s4169_s3 + $0x78] sm:$0xff]   ;;  %310 = vst [vmem:[#allocation2] sm:$0xf] %v3390_v3  ;;  %314 = vst [vmem:[#allocation2 + $0x4c] sm:$0x1] %v3390_v3  ;;  %v3302_v5 = vld [vmem:[%s4169_s3 + $0x70] sm:$0xff]  }
   0xd   : > { %311 = vst [vmem:[#allocation2 + $0x4] sm:$0x1] %v3390_v3  ;;  %313 = vst [vmem:[#allocation2 + $0x48] sm:$0xf] %v3390_v3  ;;  %3082 = vmatpush3.bf16.msra.mxu1 %v3298_v0  ;;  %3057 = vmatprep.subr.bf16.mxu0 %v3300_v2  ;;  %s4199_s22 = smov (!%p3437_p3, %s2656_s22), 1  ;;  %v3304_v6 = vld [vmem:[%s4169_s3 + $0x68] sm:$0xff]  }
   0xe   : > { %3083 = vmatprep.subr.bf16.mxu1 %v3299_v1  ;;  %3058 = vmatpush3.bf16.msra.mxu0 %v3300_v2  ;;  %v3303_v7 = vld [vmem:[%s4169_s3 + $0x20] sm:$0xff]   ;;  %s2939_s14 = sshll.u32 %s4199_s22, 6  ;;  %v3305_v9 = vld [vmem:[%s4169_s3 + $0x18] sm:$0xff]   ;;  %v3307_v10 = vld [vmem:[%s4169_s3 + $0x10] sm:$0xff]   ;;  %vm316_vm1 = vsmask.f32 256 }
   0xf   : > { %3059 = vmatprep.subr.bf16.mxu0 %v3302_v5  ;;  %v3306_v8 = vld [vmem:[%s4169_s3 + $0x60] sm:$0xff]   ;;  %s3475_s23 = scalar_lea.vmem %s4166_s0, %s2939_s14  ;;  %v3308_v11 = vld [vmem:[%s4169_s3 + $0x58] sm:$0xff]   ;;  %v321_v17 = vld [vmem:[#allocation2 + $0x8] sm:$0x1]  ;;  %vm348_vm3 = vsmask.f32 7938  ;;  %s4140_s10 = scalar_lea.vmem %s4171_s5, %s2939_s14 }
  0x10   : > { %v264_v12 = vld [vmem:[%s3475_s23] sm:$0xff]  ;;  %vm3496_vm2 = vmand %vm315_vm0, %vm316_vm1  ;;  %v3310_v19 = vld [vmem:[%s4169_s3 + $0x50] sm:$0xff]   ;;  %vm493_vm5 = vcmask 1043456   ;;  %vm575_vm7 = vsmask.f32 3328  ;;  %vm997_vm10 = vcmask 1042432  }
  0x11   : > { %3084 = vmatpush3.bf16.msra.mxu1 %v3299_v1  ;;  %v3487_v13 = vld [vmem:[%s4167_s1] ss:$0 sm:$0xff]  ;;  %v322_v22 = vsel %vm3496_vm2, 0, %v321_v17  ;;  %v265_v23 = vld [vmem:[%s3475_s23 + $0x8] sm:$0xff]  ;;  %v266_v25 = vld [vmem:[%s3475_s23 + $0x10] sm:$0xff]  ;;  %vm998_vm11 = vcmask 1046532  }
  0x12   : > { %3085 = vmatprep.subr.bf16.mxu1 %v3301_v4  ;;  %3060 = vmatpush3.bf16.msra.mxu0 %v3302_v5  ;;  %v3492_v14 = vld [vmem:[%s4168_s2] ss:$0 sm:$0xff]  ;;  %v279_v15 = vmul.f32 %v3487_v13, %v264_v12  ;;  %v3309_v24 = vld [vmem:[%s4169_s3 + $0x8] sm:$0xff]   ;;  %323 = vst [vmem:[#allocation2 + $0x8] sm:$0x1] %v322_v22  ;;  %v280_v26 = vmul.f32 %v3487_v13, %v265_v23  ;;  %vm3519_vm4 = vmand %vm315_vm0, %vm348_vm3  ;;  %s2665_s14 = sshll.u32 %s4199_s22, 1 }
  0x13   : > { %3061 = vmatprep.subr.bf16.mxu0 %v3304_v6  ;;  %v318_v16 = vld [vmem:[#allocation2] sm:$0x1]  ;;  %v324_v27 = vld [vmem:[#allocation2 + $0x10] sm:$0x1]  ;;  %v281_v29 = vmul.f32 %v3487_v13, %v266_v25  ;;  %v327_v31 = vld [vmem:[#allocation2 + $0x18] sm:$0x1]  ;;  %s262_s13 = scalar_lea.vmem %s4172_s6, %s2665_s14 }
  0x14   : > { %v294_v20 = vadd.f32 %v3492_v14, %v279_v15  ;;  %v319_v21 = vsel %vm3496_vm2, 0, %v318_v16  ;;  %v325_v30 = vsel %vm3496_vm2, 0, %v324_v27  ;;  %v295_v33 = vadd.f32 %v3492_v14, %v280_v26  ;;  %v3311_v35 = vld [vmem:[%s4169_s3] sm:$0xff]   ;;  %v3312_v36 = vld [vmem:[%s4169_s3 + $0x48] sm:$0xff]   ;;  %v356_v49 = vld [vmem:[#allocation2 + $0x14] sm:$0x1] }
  0x15   : > { %3086 = vmatpush3.bf16.msra.mxu1 %v3301_v4  ;;  %320 = vst [vmem:[#allocation2] sm:$0x1] %v319_v21  ;;  %326 = vst [vmem:[#allocation2 + $0x10] sm:$0x1] %v325_v30  ;;  %v328_v34 = vsel %vm3496_vm2, 0, %v327_v31  ;;  %v296_v38 = vadd.f32 %v3492_v14, %v281_v29  ;;  %v3316_v48 = vld [vmem:[%s4169_s3 + $0x40] sm:$0xff]  }
  0x16   : > { %3087 = vmatprep.subr.bf16.mxu1 %v3303_v7  ;;  %3062 = vmatpush3.bf16.msra.mxu0 %v3304_v6  ;;  %v302_v28 = vmax.f32 %v294_v20, 0.0  ;;  %329 = vst [vmem:[#allocation2 + $0x18] sm:$0x1] %v328_v34  ;;  %v350_v39 = vld [vmem:[#allocation2 + $0x4] sm:$0x1]  ;;  %v303_v40 = vmax.f32 %v295_v33, 0.0  ;;  %vm3546_vm6 = vmand %vm493_vm5, %vm348_vm3 }
  0x17   : > { %3063 = vmatprep.subr.bf16.mxu0 %v3306_v8  ;;  %v351_v41 = vsel %vm3519_vm4, 0, %v350_v39  ;;  %v353_v42 = vld [vmem:[#allocation2 + $0xc] sm:$0x1]  ;;  %v304_v45 = vmax.f32 %v296_v38, 0.0  ;;  %v359_v50 = vld [vmem:[#allocation2 + $0x1c] sm:$0x1]  ;;  %vm3727_vm12 = vmor %vm997_vm10, %vm998_vm11 }
  0x18   : > { %v2941_v37 = vpack.c.bf16 %v302_v28, %v302_v28  ;;  %352 = vst [vmem:[#allocation2 + $0x4] sm:$0x1] %v351_v41  ;;  %v354_v46 = vsel %vm3519_vm4, 0, %v353_v42  ;;  %v2942_v47 = vpack.c.bf16 %v303_v40, %v303_v40  ;;  %v357_v55 = vsel %vm3519_vm4, 0, %v356_v49  ;;  %v3555_v63 = vld [vmem:[%s4169_s3 + $0xf8] sm:$0xff]  }
  0x19   : > { %3088 = vmatpush3.bf16.msra.mxu1 %v3303_v7  ;;  %355 = vst [vmem:[#allocation2 + $0xc] sm:$0x1] %v354_v46  ;;  %v495_v52 = vld [vmem:[#allocation2 + $0x8] sm:$0xf]  ;;  %v2943_v54 = vpack.c.bf16 %v304_v45, %v304_v45  ;;  %358 = vst [vmem:[#allocation2 + $0x14] sm:$0x1] %v357_v55 }
  0x1a   : > { %3089 = vmatprep.subr.bf16.mxu1 %v3305_v9  ;;  %3064 = vmatpush3.bf16.msra.mxu0 %v3306_v8  ;;  %v413_v43 = vshrl.u32 %v2941_v37, 16  ;;  %v416_v44 = vshll.u32 %v2941_v37, 16  ;;  %v421_v59 = vshrl.u32 %v2942_v47, 16  ;;  %v424_v60 = vshll.u32 %v2942_v47, 16  ;;  %v3564_v8 = vld [vmem:[%s4169_s3 + $0xb8] sm:$0xff]  }
  0x1b   : > { %3065 = vmatprep.subr.bf16.mxu0 %v3308_v11  ;;  %v429_v0 = vshrl.u32 %v2943_v54, 16  ;;  %v432_v1 = vshll.u32 %v2943_v54, 16  ;;  %v360_v5 = vsel %vm3519_vm4, 0, %v359_v50  ;;  %vm576_vm8 = vsmask.f32 7440  ;;  %v267_v34 = vld [vmem:[%s3475_s23 + $0x18] sm:$0xff] }
  0x1c   : > { %v415_v51 = vrot.slane %v413_v43, 7  ;;  %v3540_v53 = vld [vmem:[#allocation2] sm:$0xf]  ;;  %v423_v2 = vrot.slane %v421_v59, 7  ;;  %v501_v3 = vld [vmem:[#allocation2 + $0x10] sm:$0xf]  ;;  %v282_v42 = vmul.f32 %v3487_v13, %v267_v34  ;;  %vm3589_vm9 = vmor %vm575_vm7, %vm576_vm8 }
  0x1d   : > { %3090 = vmatpush3.bf16.msra.mxu1 %v3305_v9  ;;  %v579_v57 = vshrl.u32 %v3540_v53, 16  ;;  %v582_v58 = vshll.u32 %v3540_v53, 16  ;;  %v507_v4 = vld [vmem:[#allocation2 + $0x18] sm:$0xf]  ;;  %v431_v7 = vrot.slane %v429_v0, 7 }
  0x1e   : > { %3091 = vmatprep.subr.bf16.mxu1 %v3307_v10  ;;  %3066 = vmatpush3.bf16.msra.mxu0 %v3308_v11  ;;  %v418_v61 = vor.u32 %v416_v44, %v415_v51  ;;  %v419_v62 = vrot.slane %v415_v51, 4  ;;  %361 = vst [vmem:[#allocation2 + $0x1c] sm:$0x1] %v360_v5  ;;  %v426_v9 = vor.u32 %v424_v60, %v423_v2  ;;  %v330_v60 = vld [vmem:[#allocation2 + $0x20] sm:$0x1]  ;;  %v3319_v5 = vld [vmem:[%s4169_s3 + $0xe8] sm:$0xff]  }
  0x1f   : > { %3067 = vmatprep.subr.bf16.mxu0 %v3310_v19  ;;  %v3566_v11 = vld [vmem:[#allocation2 + $0x4] sm:$0x1]  ;;  %v581_v12 = vrot.slane %v579_v57, 4  ;;  %v584_v15 = vrot.slane %v582_v58, 5  ;;  %v434_v16 = vor.u32 %v432_v1, %v431_v7  ;;  %v435_v21 = vrot.slane %v431_v7, 4  ;;  %v3991_v32 = vld [vmem:[%s4169_s3 + $0x238] sm:$0xff]  }
  0x20   : > { %v496_v6 = vsel %vm3546_vm6, %v418_v61, %v495_v52  ;;  %v498_v17 = vld [vmem:[#allocation2 + $0xc] sm:$0x1]  ;;  %v588_v23 = vshll.u32 %v3566_v11, 16  ;;  %v3317_v52 = vld [vmem:[%s4169_s3 + $0xf0] sm:$0xff]   ;;  %v3378_v46 = vld [vmem:[%s4169_s3 + $0x218] sm:$0xff]  }
  0x21   : > { %3092 = vmatpush3.bf16.msra.mxu1 %v3307_v10  ;;  %497 = vst [vmem:[#allocation2 + $0x8] sm:$0xf] %v496_v6  ;;  %v427_v10 = vrot.slane %v423_v2, 4  ;;  %v499_v20 = vsel %vm3496_vm2, %v419_v62, %v498_v17  ;;  %v508_v22 = vsel %vm3546_vm6, %v434_v16, %v507_v4  ;;  %v585_v26 = vor.u32 %v584_v15, %v581_v12  ;;  %v362_v15 = vld [vmem:[#allocation2 + $0x24] sm:$0x1]  ;;  %v269_v17 = vld [vmem:[%s3475_s23 + $0x28] sm:$0xff] }
  0x22   : > { %3093 = vmatprep.subr.bf16.mxu1 %v3309_v24  ;;  %3068 = vmatpush3.bf16.msra.mxu0 %v3310_v19  ;;  %v502_v19 = vsel %vm3546_vm6, %v426_v9, %v501_v3  ;;  %500 = vst [vmem:[#allocation2 + $0xc] sm:$0x1] %v499_v20  ;;  %509 = vst [vmem:[#allocation2 + $0x18] sm:$0xf] %v508_v22  ;;  %v590_v37 = vrot.slane %v588_v23, 5  ;;  %v297_v6 = vadd.f32 %v3492_v14, %v282_v42  ;;  %v270_v23 = vld [vmem:[%s3475_s23 + $0x30] sm:$0xff] }
  0x23   : > { %3069 = vmatprep.subr.bf16.mxu0 %v3312_v36  ;;  %503 = vst [vmem:[#allocation2 + $0x10] sm:$0xf] %v502_v19  ;;  %v333_v9 = vld [vmem:[#allocation2 + $0x28] sm:$0x1]  ;;  %v365_v16 = vld [vmem:[#allocation2 + $0x2c] sm:$0x1]  ;;  %v285_v42 = vmul.f32 %v3487_v13, %v270_v23 }
  0x24   : > { %v363_v34 = vsel %vm3519_vm4, 0, %v362_v15  ;;  %v3325_v15 = vld [vmem:[%s4169_s3 + $0xd0] sm:$0xff]   ;;  %v377_v18 = vld [vmem:[#allocation2 + $0x4c] sm:$0x1] }
  0x25   : > { %3094 = vmatpush3.bf16.msra.mxu1 %v3309_v24  ;;  %v504_v24 = vld [vmem:[#allocation2 + $0x14] sm:$0x1]  ;;  %v510_v27 = vld [vmem:[#allocation2 + $0x1c] sm:$0x1]  ;;  %364 = vst [vmem:[#allocation2 + $0x24] sm:$0x1] %v363_v34 }
  0x26   : > { %3095 = vmatprep.subr.bf16.mxu1 %v3311_v35  ;;  %3070 = vmatpush3.bf16.msra.mxu0 %v3312_v36  ;;  %v505_v25 = vsel %vm3496_vm2, %v427_v10, %v504_v24  ;;  %v511_v29 = vsel %vm3496_vm2, %v435_v21, %v510_v27  ;;  %v586_v36 = vrot.slane %v585_v26, 4  ;;  %v305_v21 = vmax.f32 %v297_v6, 0.0  ;;  %v336_v24 = vld [vmem:[#allocation2 + $0x30] sm:$0x1]  ;;  %v3321_v27 = vld [vmem:[%s4169_s3 + $0xe0] sm:$0xff]  }
  0x27   : > { %3071 = vmatprep.subr.bf16.mxu0 %v3316_v48  ;;  %506 = vst [vmem:[#allocation2 + $0x14] sm:$0x1] %v505_v25  ;;  %512 = vst [vmem:[#allocation2 + $0x1c] sm:$0x1] %v511_v29  ;;  %v334_v29 = vsel %vm3496_vm2, 0, %v333_v9 }
  0x28   : > { %v544_v28 = vld [vmem:[#allocation2 + $0x8] sm:$0xf]  ;;  %v591_v0 = vsel %vm3589_vm9, %v586_v36, %v590_v37  ;;  %335 = vst [vmem:[#allocation2 + $0x28] sm:$0x1] %v334_v29  ;;  %v2944_v36 = vpack.c.bf16 %v305_v21, %v305_v21  ;;  %v371_v37 = vld [vmem:[#allocation2 + $0x3c] sm:$0x1] }
  0x29   : > { %3096 = vmatpush3.bf16.msra.mxu1 %v3311_v35  ;;  %v593_v30 = vshrl.u32 %v544_v28, 16  ;;  %v596_v31 = vshll.u32 %v544_v28, 16  ;;  %v2704_v33 = vcombine.low %v3540_v53, %v544_v28  ;;  %v268_v35 = vld [vmem:[%s3475_s23 + $0x20] sm:$0xff]  ;;  %v3584_v41 = vld [vmem:[#allocation2 + $0xc] sm:$0x1]  ;;  %v331_v28 = vsel %vm3496_vm2, 0, %v330_v60 }
  0x2a   : > { %3129 = vmatprep.subr.bf16.mxu1 %v3555_v63  ;;  %3072 = vmatpush3.bf16.msra.mxu0 %v3316_v48  ;;  %v545_v40 = vld [vmem:[#allocation2 + $0x10] sm:$0xf]  ;;  %v546_v43 = vld [vmem:[#allocation2 + $0x18] sm:$0xf]  ;;  %v602_v47 = vshll.u32 %v3584_v41, 16  ;;  %v283_v48 = vmul.f32 %v3487_v13, %v268_v35  ;;  %v366_v35 = vsel %vm3519_vm4, 0, %v365_v16 }
  0x2b   : > { %3105 = vmatprep.subr.bf16.mxu0 %v3564_v8  ;;  %v595_v38 = vrot.slane %v593_v30, 4  ;;  %v598_v39 = vrot.slane %v596_v31, 5  ;;  %3097 = vmatprep.mubr.bf16.mxu1 %v2704_v33  ;;  %v607_v44 = vshrl.u32 %v545_v40, 16  ;;  %v610_v45 = vshll.u32 %v545_v40, 16  ;;  %v339_v30 = vld [vmem:[#allocation2 + $0x38] sm:$0x1] }
  0x2c   : > { %v621_v49 = vshrl.u32 %v546_v43, 16  ;;  %v624_v50 = vshll.u32 %v546_v43, 16  ;;  %v2705_v51 = vcombine.low %v545_v40, %v546_v43  ;;  %v604_v58 = vrot.slane %v602_v47, 5  ;;  %v368_v31 = vld [vmem:[#allocation2 + $0x34] sm:$0x1]  ;;  %v3324_v21 = vld [vmem:[%s4169_s3 + $0xa0] sm:$0xff]  }
  0x2d   : > { %v599_v53 = vor.u32 %v598_v39, %v595_v38  ;;  %v609_v55 = vrot.slane %v607_v44, 4  ;;  %v612_v57 = vrot.slane %v610_v45, 5  ;;  %v298_v7 = vadd.f32 %v3492_v14, %v283_v48  ;;  %332 = vst [vmem:[#allocation2 + $0x20] sm:$0x1] %v331_v28  ;;  %367 = vst [vmem:[#allocation2 + $0x2c] sm:$0x1] %v366_v35 }
  0x2e   : > { %v3598_v54 = vld [vmem:[#allocation2 + $0x14] sm:$0x1]  ;;  %v623_v61 = vrot.slane %v621_v49, 4  ;;  %v626_v62 = vrot.slane %v624_v50, 5  ;;  %3098 = vmatmul.mubr.bf16.vlgmr.msra.gmra.mxu1 %v2705_v51  ;;  %v3604_v2 = vld [vmem:[#allocation2 + $0x1c] sm:$0x1]  ;;  %v284_v40 = vmul.f32 %v3487_v13, %v269_v17 }
  0x2f   : > { %v616_v59 = vshll.u32 %v3598_v54, 16  ;;  %v600_v1 = vrot.slane %v599_v53, 4  ;;  %3130 = vmatpush3.bf16.msra.mxu1 %v3555_v63  ;;  %v613_v3 = vor.u32 %v612_v57, %v609_v55  ;;  %v630_v63 = vshll.u32 %v3604_v2, 16  ;;  %v3320_v44 = vld [vmem:[%s4169_s3 + $0xb0] sm:$0xff]   ;;  %v519_v6 = vld [vmem:[#allocation2 + $0x28] sm:$0xf] }
  0x30   : > { %3131 = vmatprep.subr.bf16.mxu1 %v3317_v52  ;;  %v627_v12 = vor.u32 %v626_v62, %v623_v61  ;;  %v306_v22 = vmax.f32 %v298_v7, 0.0  ;;  %v437_v45 = vshrl.u32 %v2944_v36, 16  ;;  %v440_v47 = vshll.u32 %v2944_v36, 16  ;;  %v3328_v29 = vld [vmem:[%s4169_s3 + $0xc8] sm:$0xff]   ;;  %v3326_v35 = vld [vmem:[%s4169_s3 + $0x98] sm:$0xff]  }
  0x31   : > { %v618_v4 = vrot.slane %v616_v59, 5  ;;  %v605_v10 = vsel %vm3589_vm9, %v600_v1, %v604_v58  ;;  %v614_v20 = vrot.slane %v613_v3, 4  ;;  %v632_v26 = vrot.slane %v630_v63, 5  ;;  %v3323_v59 = vld [vmem:[%s4169_s3 + $0xd8] sm:$0xff]  }
  0x32   : > { %v2692_v19 = vcombine.low %v591_v0, %v605_v10  ;;  %v628_v25 = vrot.slane %v627_v12, 4  ;;  %v2945_v39 = vpack.c.bf16 %v306_v22, %v306_v22  ;;  %v337_v48 = vsel %vm3496_vm2, 0, %v336_v24  ;;  %v3322_v0 = vld [vmem:[%s4169_s3 + $0xa8] sm:$0xff]   ;;  %v516_v12 = vld [vmem:[#allocation2 + $0x24] sm:$0x1] }
  0x33   : > { %3132 = vmatpush3.bf16.msra.mxu1 %v3317_v52  ;;  %v619_v33 = vsel %vm3589_vm9, %v614_v20, %v618_v4  ;;  %v299_v51 = vadd.f32 %v3492_v14, %v284_v40  ;;  %v300_v52 = vadd.f32 %v3492_v14, %v285_v42  ;;  %338 = vst [vmem:[#allocation2 + $0x30] sm:$0x1] %v337_v48  ;;  %v439_v53 = vrot.slane %v437_v45, 7  ;;  %v3331_v48 = vld [vmem:[%s4169_s3 + $0xc0] sm:$0xff]  }
  0x34   : > { %3073 = vmatprep.mubr.bf16.mxu0 %v2692_v19  ;;  %v633_v38 = vsel %vm3589_vm9, %v628_v25, %v632_v26  ;;  %3133 = vmatprep.subr.bf16.mxu1 %v3319_v5  ;;  %v445_v49 = vshrl.u32 %v2945_v39, 16  ;;  %v448_v50 = vshll.u32 %v2945_v39, 16  ;;  %v340_v55 = vsel %vm3496_vm2, 0, %v339_v30  ;;  %v522_v63 = vld [vmem:[#allocation2 + $0x2c] sm:$0x1] }
  0x35   : > { %v2693_v43 = vcombine.low %v619_v33, %v633_v38  ;;  %v369_v57 = vsel %vm3519_vm4, 0, %v368_v31  ;;  %v372_v58 = vsel %vm3519_vm4, 0, %v371_v37  ;;  %v307_v61 = vmax.f32 %v299_v51, 0.0  ;;  %341 = vst [vmem:[#allocation2 + $0x38] sm:$0x1] %v340_v55 }
  0x36   : > { %v447_v60 = vrot.slane %v445_v49, 7  ;;  %v308_v62 = vmax.f32 %v300_v52, 0.0  ;;  %370 = vst [vmem:[#allocation2 + $0x34] sm:$0x1] %v369_v57  ;;  %373 = vst [vmem:[#allocation2 + $0x3c] sm:$0x1] %v372_v58  ;;  %v442_v1 = vor.u32 %v440_v47, %v439_v53 }
  0x37   : > { %3074 = vmatmul.mubr.bf16.vlgmr.msra.gmra.mxu0 %v2693_v43  ;;  %3134 = vmatpush3.bf16.msra.mxu1 %v3319_v5  ;;  %v443_v3 = vrot.slane %v439_v53, 4  ;;  %v513_v5 = vld [vmem:[#allocation2 + $0x20] sm:$0xf]  ;;  %v2946_v7 = vpack.c.bf16 %v307_v61, %v307_v61  ;;  %v1002_v38 = vrot.slane %v3566_v11, 5  ;;  %v1006_v42 = vrot.slane %v3584_v41, 5  ;;  %v3330_v47 = vld [vmem:[%s4169_s3 + $0x90] sm:$0xff]  }
  0x38   : > { %3106 = vmatpush3.bf16.msra.mxu0 %v3564_v8  ;;  %3135 = vmatprep.subr.bf16.mxu1 %v3321_v27  ;;  %v450_v4 = vor.u32 %v448_v50, %v447_v60  ;;  %v451_v8 = vrot.slane %v447_v60, 4  ;;  %v2947_v9 = vpack.c.bf16 %v308_v62, %v308_v62  ;;  %v514_v10 = vsel %vm3546_vm6, %v442_v1, %v513_v5  ;;  %v3693_v52 = vld [vmem:[#allocation2] sm:$0xe] }
  0x39   : > { %3107 = vmatprep.subr.bf16.mxu0 %v3320_v44  ;;  %515 = vst [vmem:[#allocation2 + $0x20] sm:$0xf] %v514_v10  ;;  %v517_v16 = vsel %vm3496_vm2, %v443_v3, %v516_v12  ;;  %v453_v20 = vshrl.u32 %v2946_v7, 16  ;;  %v456_v22 = vshll.u32 %v2946_v7, 16  ;;  %v3707_v7 = vld [vmem:[%s4169_s3 + $0x178] sm:$0xff]   ;;  %v2716_v12 = vrot.slane %v3693_v52, 9 }
  0x3a   : > { %v520_v17 = vsel %vm3546_vm6, %v450_v4, %v519_v6  ;;  %v523_v19 = vsel %vm3496_vm2, %v451_v8, %v522_v63  ;;  %518 = vst [vmem:[#allocation2 + $0x24] sm:$0x1] %v517_v16  ;;  %v461_v23 = vshrl.u32 %v2947_v9, 16  ;;  %v464_v24 = vshll.u32 %v2947_v9, 16  ;;  %v3332_v6 = vld [vmem:[%s4169_s3 + $0x88] sm:$0xff]  }
  0x3b   : > { %3136 = vmatpush3.bf16.msra.mxu1 %v3321_v27  ;;  %521 = vst [vmem:[#allocation2 + $0x28] sm:$0xf] %v520_v17  ;;  %524 = vst [vmem:[#allocation2 + $0x2c] sm:$0x1] %v523_v19  ;;  %v455_v25 = vrot.slane %v453_v20, 7  ;;  %v1014_v8 = vrot.slane %v3604_v2, 5 }
  0x3c   : > { %3108 = vmatpush3.bf16.msra.mxu0 %v3320_v44  ;;  %3137 = vmatprep.subr.bf16.mxu1 %v3323_v59  ;;  %v463_v26 = vrot.slane %v461_v23, 7  ;;  %v525_v27 = vld [vmem:[#allocation2 + $0x30] sm:$0xf]  ;;  %v531_v33 = vld [vmem:[#allocation2 + $0x38] sm:$0xf] }
  0x3d   : > { %3109 = vmatprep.subr.bf16.mxu0 %v3322_v0  ;;  %v528_v28 = vld [vmem:[#allocation2 + $0x34] sm:$0x1]  ;;  %v458_v30 = vor.u32 %v456_v22, %v455_v25  ;;  %v459_v31 = vrot.slane %v455_v25, 4  ;;  %v534_v34 = vld [vmem:[#allocation2 + $0x3c] sm:$0x1] }
  0x3e   : > { %v466_v36 = vor.u32 %v464_v24, %v463_v26  ;;  %v467_v37 = vrot.slane %v463_v26, 4 }
  0x3f   : > { %3138 = vmatpush3.bf16.msra.mxu1 %v3323_v59  ;;  %v526_v39 = vsel %vm3546_vm6, %v458_v30, %v525_v27  ;;  %v529_v40 = vsel %vm3496_vm2, %v459_v31, %v528_v28  ;;  %v3696_v59 = vld [vmem:[#allocation2 + $0x8] sm:$0xe] }
  0x40   : > { %3110 = vmatpush3.bf16.msra.mxu0 %v3322_v0  ;;  %3139 = vmatprep.subr.bf16.mxu1 %v3325_v15  ;;  %v547_v43 = vld [vmem:[#allocation2 + $0x20] sm:$0xf]  ;;  %527 = vst [vmem:[#allocation2 + $0x30] sm:$0xf] %v526_v39  ;;  %530 = vst [vmem:[#allocation2 + $0x34] sm:$0x1] %v529_v40  ;;  %v532_v44 = vsel %vm3546_vm6, %v466_v36, %v531_v33  ;;  %v535_v45 = vsel %vm3496_vm2, %v467_v37, %v534_v34 }
  0x41   : > { %3111 = vmatprep.subr.bf16.mxu0 %v3324_v21  ;;  %v3689_v50 = vld [vmem:[#allocation2 + $0x24] sm:$0x1]  ;;  %533 = vst [vmem:[#allocation2 + $0x38] sm:$0xf] %v532_v44  ;;  %536 = vst [vmem:[#allocation2 + $0x3c] sm:$0x1] %v535_v45 }
  0x42   : > { %v548_v49 = vld [vmem:[#allocation2 + $0x28] sm:$0xf]  ;;  %v3691_v51 = vld [vmem:[#allocation2 + $0x2c] sm:$0x1]  ;;  %v635_v53 = vshrl.u32 %v547_v43, 16  ;;  %v638_v55 = vshll.u32 %v547_v43, 16 }
  0x43   : > { %3140 = vmatpush3.bf16.msra.mxu1 %v3325_v15  ;;  %v644_v57 = vshll.u32 %v3689_v50, 16  ;;  %v649_v58 = vshrl.u32 %v548_v49, 16  ;;  %v652_v60 = vshll.u32 %v548_v49, 16  ;;  %v658_v61 = vshll.u32 %v3691_v51, 16  ;;  %v3333_v28 = vld [vmem:[#allocation2 + $0x8] ss:$8 sps:$4 sm:$0xff]  }
  0x44   : > { %3112 = vmatpush3.bf16.msra.mxu0 %v3324_v21  ;;  %3141 = vmatprep.subr.bf16.mxu1 %v3328_v29  ;;  %v2706_v62 = vcombine.low %v547_v43, %v548_v49  ;;  %v1010_v0 = vrot.slane %v3598_v54, 5  ;;  %v637_v1 = vrot.slane %v635_v53, 4  ;;  %v640_v3 = vrot.slane %v638_v55, 5  ;;  %v976_v36 = vld [vmem:[#allocation2 + $0x18] sm:$0xe] }
  0x45   : > { %3113 = vmatprep.subr.bf16.mxu0 %v3326_v35  ;;  %v651_v4 = vrot.slane %v649_v58, 4  ;;  %v654_v5 = vrot.slane %v652_v60, 5  ;;  %v646_v10 = vrot.slane %v644_v57, 5  ;;  %v660_v15 = vrot.slane %v658_v61, 5  ;;  %v977_v43 = vld [vmem:[#allocation2 + $0x20] sm:$0xe] }
  0x46   : > { %3101 = vmatprep.mubr.bf16.mxu1 %v2706_v62  ;;  %v641_v9 = vor.u32 %v640_v3, %v637_v1  ;;  %v2717_v19 = vrot.slane %v3696_v59, 9  ;;  %v978_v55 = vld [vmem:[#allocation2 + $0x28] sm:$0xe]  ;;  %v271_v57 = vld [vmem:[%s3475_s23 + $0x38] sm:$0xff]  ;;  %v2719_v60 = vrot.slane %v976_v36, 9  ;;  %v1018_v62 = vrot.slane %v3689_v50, 5 }
  0x47   : > { %3142 = vmatpush3.bf16.msra.mxu1 %v3328_v29  ;;  %v655_v63 = vor.u32 %v654_v5, %v651_v4  ;;  %v549_v16 = vld [vmem:[#allocation2 + $0x30] sm:$0xf]  ;;  %v3710_v17 = vld [vmem:[#allocation2 + $0x34] sm:$0x1]  ;;  %v3735_v61 = vld [vmem:[%s4169_s3 + $0x138] sm:$0xff]   ;;  %v1003_v3 = vsel %vm3727_vm12, %v2716_v12, %v1002_v38  ;;  %v2720_v5 = vrot.slane %v977_v43, 9  ;;  %v286_v50 = vmul.f32 %v3487_v13, %v271_v57 }
  0x48   : > { %3114 = vmatpush3.bf16.msra.mxu0 %v3326_v35  ;;  %3143 = vmatprep.subr.bf16.mxu1 %v3331_v48  ;;  %v642_v20 = vrot.slane %v641_v9, 4  ;;  %v550_v21 = vld [vmem:[#allocation2 + $0x38] sm:$0xf]  ;;  %v3713_v22 = vld [vmem:[#allocation2 + $0x3c] sm:$0x1]  ;;  %v663_v23 = vshrl.u32 %v549_v16, 16  ;;  %v1007_v4 = vsel %vm3727_vm12, %v2717_v19, %v1006_v42 }
  0x49   : > { %3115 = vmatprep.subr.bf16.mxu0 %v3330_v47  ;;  %v656_v24 = vrot.slane %v655_v63, 4  ;;  %v666_v25 = vshll.u32 %v549_v16, 16  ;;  %v672_v26 = vshll.u32 %v3710_v17, 16  ;;  %v677_v27 = vshrl.u32 %v550_v21, 16  ;;  %v975_v29 = vld [vmem:[#allocation2 + $0x10] sm:$0xe] }
  0x4a   : > { %v647_v30 = vsel %vm3589_vm9, %v642_v20, %v646_v10  ;;  %v665_v31 = vrot.slane %v663_v23, 4  ;;  %v680_v33 = vshll.u32 %v550_v21, 16  ;;  %v686_v34 = vshll.u32 %v3713_v22, 16  ;;  %v3336_v35 = vld [vmem:[%s4169_s3 + $0x80] sm:$0xff]   ;;  %v3343_v38 = vld [vmem:[#allocation2 + $0x28] ss:$8 sps:$4 sm:$0xff]  }
  0x4b   : > { %3144 = vmatpush3.bf16.msra.mxu1 %v3331_v48  ;;  %v661_v37 = vsel %vm3589_vm9, %v656_v24, %v660_v15  ;;  %v668_v39 = vrot.slane %v666_v25, 5  ;;  %v679_v40 = vrot.slane %v677_v27, 4  ;;  %v2718_v49 = vrot.slane %v975_v29, 9  ;;  %v3335_v10 = vld [vmem:[#allocation2 + $0x18] ss:$8 sps:$4 sm:$0xff]   ;;  %v3337_v20 = vld [vmem:[%s4169_s3 + $0x170] sm:$0xff]  }
  0x4c   : > { %3116 = vmatpush3.bf16.msra.mxu0 %v3330_v47  ;;  %3177 = vmatprep.subr.bf16.mxu1 %v3707_v7  ;;  %v2694_v44 = vcombine.low %v647_v30, %v661_v37  ;;  %v682_v45 = vrot.slane %v680_v33, 5  ;;  %v2707_v47 = vcombine.low %v549_v16, %v550_v21  ;;  %v674_v53 = vrot.slane %v672_v26, 5  ;;  %v979_v16 = vld [vmem:[#allocation2 + $0x30] sm:$0xe]  ;;  %v980_v24 = vld [vmem:[#allocation2 + $0x38] sm:$0xe] }
  0x4d   : > { %3117 = vmatprep.subr.bf16.mxu0 %v3332_v6  ;;  %v669_v52 = vor.u32 %v668_v39, %v665_v31  ;;  %v688_v59 = vrot.slane %v686_v34, 5  ;;  %v2721_v63 = vrot.slane %v978_v55, 9  ;;  %v1022_v11 = vrot.slane %v3691_v51, 5  ;;  %v3776_v27 = vld [vmem:[#allocation2 + $0xc] sm:$0x1]  ;;  %v3340_v43 = vld [vmem:[%s4169_s3 + $0x130] sm:$0xff]  }
  0x4e   : > { %3077 = vmatprep.mubr.bf16.mxu0 %v2694_v44  ;;  %v683_v58 = vor.u32 %v682_v45, %v679_v40  ;;  %3102 = vmatmul.mubr.bf16.gmra.mxu1 %v2707_v47  ;;  %v2740_v12 = vcombine.low %v1003_v3, %v1007_v4  ;;  %v301_v19 = vadd.f32 %v3492_v14, %v286_v50  ;;  %v3339_v14 = vld [vmem:[%s4169_s3 + $0x168] sm:$0xff]   ;;  %v2722_v25 = vrot.slane %v979_v16, 9  ;;  %v3807_v57 = vld [vmem:[#allocation2 + $0x18] sm:$0xe]  ;;  %v1358_v3 = vld [vmem:[#allocation2 + $0x10] sm:$0xf] }
  0x4f   : > { %v670_v1 = vrot.slane %v669_v52, 4  ;;  %3145 = vmatprep.mubr.bf16.mxu1 %v3333_v28  ;;  %v1011_v51 = vsel %vm3727_vm12, %v2718_v49, %v1010_v0  ;;  %v1015_v21 = vsel %vm3727_vm12, %v2719_v60, %v1014_v8  ;;  %v1026_v54 = vrot.slane %v3710_v17, 5  ;;  %v3778_v28 = vld [vmem:[#allocation2 + $0x14] sm:$0x1]  ;;  %v1638_v29 = vld [vmem:[#allocation2 + $0x8] sm:$0xe] }
  0x50   : > { %3118 = vmatpush3.bf16.msra.mxu0 %v3332_v6  ;;  %v342_v6 = vld [vmem:[#allocation2 + $0x40] sm:$0x1]  ;;  %v684_v9 = vrot.slane %v683_v58, 4  ;;  %v309_v23 = vmax.f32 %v301_v19, 0.0  ;;  %v2741_v0 = vcombine.low %v1011_v51, %v1015_v21  ;;  %v1019_v2 = vsel %vm3727_vm12, %v2720_v5, %v1018_v62  ;;  %v3342_v52 = vld [vmem:[%s4169_s3 + $0x128] sm:$0xff]  }
  0x51   : > { %3119 = vmatprep.subr.bf16.mxu0 %v3336_v35  ;;  %v675_v15 = vsel %vm3589_vm9, %v670_v1, %v674_v53  ;;  %v343_v41 = vsel %vm3496_vm2, 0, %v342_v6  ;;  %v1023_v8 = vsel %vm3727_vm12, %v2721_v63, %v1022_v11  ;;  %v2723_v30 = vrot.slane %v980_v24, 9  ;;  %v3815_v60 = vld [vmem:[#allocation2 + $0x1c] sm:$0x1]  ;;  %v1356_v62 = vld [vmem:[#allocation2 + $0x8] sm:$0xf] }
  0x52   : > { %v689_v42 = vsel %vm3589_vm9, %v684_v9, %v688_v59  ;;  %344 = vst [vmem:[#allocation2 + $0x40] sm:$0x1] %v343_v41  ;;  %v2948_v26 = vpack.c.bf16 %v309_v23, %v309_v23  ;;  %v1030_v17 = vrot.slane %v3713_v22, 5  ;;  %v2808_v34 = vrot.slane %v1638_v29, 9  ;;  %v3341_v22 = vld [vmem:[%s4169_s3 + $0x160] sm:$0xff]   ;;  %v3345_v59 = vld [vmem:[%s4169_s3 + $0x158] sm:$0xff]  }
  0x53   : > { %v2695_v13 = vcombine.low %v675_v15, %v689_v42  ;;  %v1668_v37 = vrot.slane %v3778_v28, 5  ;;  %v2742_v39 = vcombine.low %v1019_v2, %v1023_v8  ;;  %v1027_v47 = vsel %vm3727_vm12, %v2722_v25, %v1026_v54  ;;  %v3820_v9 = vld [vmem:[#allocation2 + $0x24] sm:$0x1]  ;;  %v1362_v15 = vld [vmem:[#allocation2 + $0x20] sm:$0xf]  ;;  %v3348_v2 = vld [vmem:[%s4169_s3 + $0x118] sm:$0xff]  }
  0x54   : > { %3120 = vmatpush3.bf16.msra.mxu0 %v3336_v35  ;;  %v469_v31 = vshrl.u32 %v2948_v26, 16  ;;  %v472_v33 = vshll.u32 %v2948_v26, 16  ;;  %v1664_v35 = vrot.slane %v3776_v27, 5  ;;  %v1031_v49 = vsel %vm3727_vm12, %v2723_v30, %v1030_v17  ;;  %v3349_v17 = vld [vmem:[%s4169_s3 + $0x148] sm:$0xff]  }
  0x55   : > { %3153 = vmatprep.subr.bf16.mxu0 %v3735_v61  ;;  %3078 = vmatmul.mubr.bf16.gmra.mxu0 %v2695_v13  ;;  %v1382_v1 = vshll.u32 %v3776_v27, 16  ;;  %v1373_v4 = vshrl.u32 %v1356_v62, 16  ;;  %v1376_v5 = vshll.u32 %v1356_v62, 16  ;;  %v2743_v6 = vcombine.low %v1027_v47, %v1031_v49  ;;  %v3854_v47 = vld [vmem:[#allocation2 + $0x2c] sm:$0x1] }
  0x56   : > { %3146 = vmatmul.mubr.bf16.vlgmr.msra.gmra.mxu1 %v3335_v10  ;;  %3121 = vmatprep.mubr.bf16.mxu0 %v2740_v12  ;;  %v3783_v40 = vrot.slane %v469_v31, 7  ;;  %v3801_v53 = vsel %vm3727_vm12, %v2808_v34, %v1664_v35  ;;  %v1641_v10 = vld [vmem:[#allocation2 + $0x20] sm:$0xe]  ;;  %v1387_v63 = vshrl.u32 %v1358_v3, 16  ;;  %v1390_v50 = vshll.u32 %v1358_v3, 16 }
  0x57   : > { %3178 = vmatpush3.bf16.msra.mxu1 %v3707_v7  ;;  %3149 = vmatprep.mubr.bf16.mxu1 %v3343_v38  ;;  %v1639_v7 = vld [vmem:[#allocation2 + $0x10] sm:$0xe]  ;;  %v1375_v11 = vrot.slane %v1373_v4, 4  ;;  %v1378_v16 = vrot.slane %v1376_v5, 5  ;;  %v1396_v38 = vshll.u32 %v3778_v28, 16  ;;  %v2810_v42 = vrot.slane %v3807_v57, 9 }
  0x58   : > { %3179 = vmatprep.subr.bf16.mxu1 %v3337_v20  ;;  %v2809_v36 = vrot.slane %v1639_v7, 9  ;;  %v474_v45 = vor.u32 %v472_v33, %v3783_v40  ;;  %v1389_v12 = vrot.slane %v1387_v63, 4  ;;  %v1392_v19 = vrot.slane %v1390_v50, 5  ;;  %v1366_v49 = vld [vmem:[#allocation2 + $0x30] sm:$0xf] }
  0x59   : > { %v537_v44 = vld [vmem:[#allocation2 + $0x40] sm:$0xf]  ;;  %v1672_v51 = vrot.slane %v3815_v60, 5  ;;  %v1379_v21 = vor.u32 %v1378_v16, %v1375_v11  ;;  %v1384_v23 = vrot.slane %v1382_v1, 5  ;;  %v1415_v24 = vshrl.u32 %v1362_v15, 16 }
  0x5a   : > { %v3805_v55 = vsel %vm3727_vm12, %v2809_v36, %v1668_v37  ;;  %v538_v58 = vsel %vm3546_vm6, %v474_v45, %v537_v44  ;;  %v1393_v25 = vor.u32 %v1392_v19, %v1389_v12  ;;  %v1398_v54 = vrot.slane %v1396_v38, 5  ;;  %v1368_v5 = vld [vmem:[#allocation2 + $0x38] sm:$0xf]  ;;  %v3871_v11 = vld [vmem:[#allocation2 + $0x3c] sm:$0x1]  ;;  %v3352_v38 = vld [vmem:[%s4169_s3 + $0x108] sm:$0xff]  }
  0x5b   : > { %3180 = vmatpush3.bf16.msra.mxu1 %v3337_v20  ;;  %539 = vst [vmem:[#allocation2 + $0x40] sm:$0xf] %v538_v58  ;;  %v2832_v56 = vcombine.low %v3801_v53, %v3805_v55  ;;  %v3346_v20 = vld [vmem:[%s4169_s3 + $0x120] sm:$0xff]   ;;  %v1410_v26 = vshll.u32 %v3815_v60, 16  ;;  %v2811_v8 = vrot.slane %v1641_v10, 9  ;;  %v1676_v27 = vrot.slane %v3820_v9, 5 }
  0x5c   : > { %3181 = vmatprep.subr.bf16.mxu1 %v3339_v14  ;;  %v1380_v28 = vrot.slane %v1379_v21, 4  ;;  %v1394_v31 = vrot.slane %v1393_v25, 4  ;;  %v1417_v34 = vrot.slane %v1415_v24, 4  ;;  %v475_v36 = vrot.slane %v3783_v40, 4  ;;  %v3350_v60 = vld [vmem:[%s4169_s3 + $0x110] sm:$0xff]  }
  0x5d   : > { %3122 = vmatmul.mubr.bf16.vlgmr.msra.gmra.mxu0 %v2741_v0  ;;  %v1418_v0 = vshll.u32 %v1362_v15, 16  ;;  %v3848_v44 = vsel %vm3727_vm12, %v2810_v42, %v1672_v51  ;;  %v1424_v55 = vshll.u32 %v3820_v9, 16  ;;  %v1438_v1 = vshll.u32 %v3854_v47, 16 }
  0x5e   : > { %3154 = vmatpush3.bf16.msra.mxu0 %v3735_v61  ;;  %3125 = vmatprep.mubr.bf16.mxu0 %v2742_v39  ;;  %v1360_v61 = vld [vmem:[#allocation2 + $0x18] sm:$0xf]  ;;  %v1385_v7 = vsel %vm3589_vm9, %v1380_v28, %v1384_v23  ;;  %v1399_v37 = vsel %vm3589_vm9, %v1394_v31, %v1398_v54  ;;  %v3844_v39 = vrot.slane %v1410_v26, 5  ;;  %v1443_v3 = vshrl.u32 %v1366_v49, 16  ;;  %v1642_v54 = vld [vmem:[#allocation2 + $0x28] sm:$0xe] }
  0x5f   : > { %3182 = vmatpush3.bf16.msra.mxu1 %v3339_v14  ;;  %3155 = vmatprep.subr.bf16.mxu0 %v3340_v43  ;;  %v1401_v41 = vshrl.u32 %v1360_v61, 16  ;;  %v1404_v13 = vshll.u32 %v1360_v61, 16  ;;  %v3347_v14 = vld [vmem:[%s4169_s3 + $0x150] sm:$0xff]   ;;  %v1420_v35 = vrot.slane %v1418_v0, 5  ;;  %v2796_v45 = vcombine.low %v1385_v7, %v1399_v37  ;;  %v3351_v61 = vld [vmem:[%s4169_s3 + $0x140] sm:$0xff]  }
  0x60   : > { %3183 = vmatprep.subr.bf16.mxu1 %v3341_v22  ;;  %v1446_v4 = vshll.u32 %v1366_v49, 16  ;;  %v1445_v50 = vrot.slane %v1443_v3, 4  ;;  %v1457_v12 = vshrl.u32 %v1368_v5, 16  ;;  %v1460_v19 = vshll.u32 %v1368_v5, 16  ;;  %v3354_v0 = vld [vmem:[%s4169_s3 + $0x100] sm:$0xff]   ;;  %v3355_v37 = vld [vmem:[%s4169_s3 + $0x1f0] sm:$0xff]  }
  0x61   : > { %v1403_v29 = vrot.slane %v1401_v41, 4  ;;  %v1406_v33 = vrot.slane %v1404_v13, 5  ;;  %v1421_v62 = vor.u32 %v1420_v35, %v1417_v34  ;;  %v1426_v41 = vrot.slane %v1424_v55, 5  ;;  %v3353_v13 = vld [vmem:[%s4169_s3 + $0x1f8] sm:$0xff]   ;;  %v3359_v5 = vld [vmem:[%s4169_s3 + $0x1e0] sm:$0xff]  }
  0x62   : > { %3156 = vmatpush3.bf16.msra.mxu0 %v3340_v43  ;;  %v3344_v30 = vld [vmem:[#allocation2 + $0x38] ss:$8 sps:$4 sm:$0xff]   ;;  %v1364_v43 = vld [vmem:[#allocation2 + $0x28] sm:$0xf]  ;;  %v1448_v15 = vrot.slane %v1446_v4, 5  ;;  %v1466_v25 = vshll.u32 %v3871_v11, 16 }
  0x63   : > { %3184 = vmatpush3.bf16.msra.mxu1 %v3341_v22  ;;  %3157 = vmatprep.subr.bf16.mxu0 %v3342_v52  ;;  %v3852_v22 = vsel %vm3727_vm12, %v2811_v8, %v1676_v27  ;;  %v1407_v53 = vor.u32 %v1406_v33, %v1403_v29  ;;  %v1429_v57 = vshrl.u32 %v1364_v43, 16  ;;  %v1432_v58 = vshll.u32 %v1364_v43, 16  ;;  %v1370_v16 = vld [vmem:[#allocation2 + $0x40] sm:$0xf]  ;;  %v1643_v29 = vld [vmem:[#allocation2 + $0x30] sm:$0xe] }
  0x64   : > { %3185 = vmatprep.subr.bf16.mxu1 %v3345_v59  ;;  %3150 = vmatmul.mubr.bf16.gmra.mxu1 %v3344_v30  ;;  %v2833_v63 = vcombine.low %v3848_v44, %v3852_v22  ;;  %v1449_v51 = vor.u32 %v1448_v15, %v1445_v50  ;;  %v1471_v21 = vshrl.u32 %v1370_v16, 16  ;;  %v1474_v23 = vshll.u32 %v1370_v16, 16  ;;  %v1644_v7 = vld [vmem:[#allocation2 + $0x38] sm:$0xe]  ;;  %v3922_v50 = vld [vmem:[#allocation2 + $0x1c] sm:$0x1] }
  0x65   : > { %3126 = vmatmul.mubr.bf16.gmra.mxu0 %v2743_v6  ;;  %3193 = vmatprep.mubr.bf16.mxu1 %v2832_v56  ;;  %v1431_v6 = vrot.slane %v1429_v57, 4  ;;  %v1434_v56 = vrot.slane %v1432_v58, 5  ;;  %v1422_v24 = vrot.slane %v1421_v62, 4  ;;  %v1680_v26 = vrot.slane %v3854_v47, 5  ;;  %v3356_v47 = vld [vmem:[%s4169_s3 + $0x1b8] sm:$0xff]   ;;  %v3357_v58 = vld [vmem:[%s4169_s3 + $0x1e8] sm:$0xff]  }
  0x66   : > { %3158 = vmatpush3.bf16.msra.mxu0 %v3342_v52  ;;  %v3856_v52 = vld [vmem:[#allocation2 + $0x34] sm:$0x1]  ;;  %3169 = vmatprep.mubr.bf16.mxu0 %v2796_v45  ;;  %v1459_v27 = vrot.slane %v1457_v12, 4  ;;  %v1462_v28 = vrot.slane %v1460_v19, 5  ;;  %v1473_v30 = vrot.slane %v1471_v21, 4  ;;  %v2812_v31 = vrot.slane %v1642_v54, 9 }
  0x67   : > { %3186 = vmatpush3.bf16.msra.mxu1 %v3345_v59  ;;  %3159 = vmatprep.subr.bf16.mxu0 %v3346_v20  ;;  %v374_v59 = vld [vmem:[#allocation2 + $0x44] sm:$0x1]  ;;  %v1452_v9 = vshll.u32 %v3856_v52, 16  ;;  %v1435_v42 = vor.u32 %v1434_v56, %v1431_v6  ;;  %v2813_v33 = vrot.slane %v1643_v29, 9  ;;  %v1450_v34 = vrot.slane %v1449_v51, 4  ;;  %v3360_v21 = vld [vmem:[%s4169_s3 + $0x1a8] sm:$0xff]  }
  0x68   : > { %3187 = vmatprep.subr.bf16.mxu1 %v3347_v14  ;;  %v375_v10 = vsel %vm3519_vm4, 0, %v374_v59  ;;  %v1684_v35 = vrot.slane %v3856_v52, 5  ;;  %v3891_v22 = vrot.slane %v1466_v25, 5  ;;  %v1681_v45 = vsel %vm3727_vm12, %v2812_v31, %v1680_v26 }
  0x69   : > { %376 = vst [vmem:[#allocation2 + $0x44] sm:$0x1] %v375_v10  ;;  %v1454_v8 = vrot.slane %v1452_v9, 5  ;;  %v1463_v52 = vor.u32 %v1462_v28, %v1459_v27  ;;  %v2814_v55 = vrot.slane %v1644_v7, 9  ;;  %v1427_v57 = vsel %vm3589_vm9, %v1422_v24, %v1426_v41  ;;  %v2019_v9 = vld [vmem:[#allocation2 + $0x10] sm:$0xf] }
  0x6a   : > { %3160 = vmatpush3.bf16.msra.mxu0 %v3346_v20  ;;  %v1408_v20 = vrot.slane %v1407_v53, 4  ;;  %v1685_v53 = vsel %vm3727_vm12, %v2813_v33, %v1684_v35  ;;  %v1688_v4 = vrot.slane %v3871_v11, 5  ;;  %v3920_v10 = vld [vmem:[#allocation2 + $0x14] sm:$0x1]  ;;  %v2036_v15 = vshrl.u32 %v2019_v9, 16  ;;  %v3361_v24 = vld [vmem:[%s4169_s3 + $0x1d8] sm:$0xff]  }
  0x6b   : > { %3188 = vmatpush3.bf16.msra.mxu1 %v3347_v14  ;;  %3161 = vmatprep.subr.bf16.mxu0 %v3348_v2  ;;  %v1440_v14 = vrot.slane %v1438_v1, 5  ;;  %v2834_v59 = vcombine.low %v1681_v45, %v1685_v53  ;;  %v3358_v1 = vld [vmem:[%s4169_s3 + $0x1b0] sm:$0xff]   ;;  %v1464_v3 = vrot.slane %v1463_v52, 4  ;;  %v2039_v16 = vshll.u32 %v2019_v9, 16  ;;  %v345_v9 = vld [vmem:[#allocation2 + $0x48] sm:$0x1] }
  0x6c   : > { %3189 = vmatprep.subr.bf16.mxu1 %v3349_v17  ;;  %v1413_v43 = vsel %vm3589_vm9, %v1408_v20, %v3844_v39  ;;  %v1645_v39 = vld [vmem:[#allocation2 + $0x40] sm:$0xe]  ;;  %v2045_v11 = vshll.u32 %v3920_v10, 16  ;;  %v1689_v19 = vsel %vm3727_vm12, %v2814_v55, %v1688_v4 }
  0x6d   : > { %v2797_v62 = vcombine.low %v1413_v43, %v1427_v57  ;;  %v2815_v56 = vrot.slane %v1645_v39, 9  ;;  %v2041_v20 = vrot.slane %v2039_v16, 5  ;;  %v1469_v27 = vsel %vm3589_vm9, %v1464_v3, %v3891_v22  ;;  %v3362_v43 = vld [vmem:[%s4169_s3 + $0x1a0] sm:$0xff]   ;;  %v3365_v3 = vld [vmem:[%s4169_s3 + $0x1c8] sm:$0xff]   ;;  %v2027_v16 = vld [vmem:[#allocation2 + $0x30] sm:$0xf] }
  0x6e   : > { %3162 = vmatpush3.bf16.msra.mxu0 %v3348_v2  ;;  %v1436_v2 = vrot.slane %v1435_v42, 4  ;;  %v2059_v42 = vshll.u32 %v3922_v50, 16 }
  0x6f   : > { %3190 = vmatpush3.bf16.msra.mxu1 %v3349_v17  ;;  %3163 = vmatprep.subr.bf16.mxu0 %v3350_v60  ;;  %v1476_v17 = vrot.slane %v1474_v23, 5 }
  0x70   : > { %3191 = vmatprep.subr.bf16.mxu1 %v3351_v61  ;;  %v540_v44 = vld [vmem:[#allocation2 + $0x44] sm:$0x1] }
  0x71   : > { %v541_v49 = vsel %vm3496_vm2, %v475_v36, %v540_v44  ;;  %v1477_v40 = vor.u32 %v1476_v17, %v1473_v30  ;;  %v1441_v36 = vsel %vm3589_vm9, %v1436_v2, %v1440_v14  ;;  %v2047_v14 = vrot.slane %v2045_v11, 5  ;;  %v2023_v2 = vld [vmem:[#allocation2 + $0x20] sm:$0xf]  ;;  %v2025_v30 = vld [vmem:[#allocation2 + $0x28] sm:$0xf]  ;;  %v3363_v44 = vld [vmem:[%s4169_s3 + $0x1d0] sm:$0xff]  }
  0x72   : > { %3164 = vmatpush3.bf16.msra.mxu0 %v3350_v60  ;;  %542 = vst [vmem:[#allocation2 + $0x44] sm:$0x1] %v541_v49  ;;  %v1455_v60 = vsel %vm3589_vm9, %v1450_v34, %v1454_v8  ;;  %v3934_v8 = vld [vmem:[#allocation2 + $0x24] sm:$0x1]  ;;  %v3941_v17 = vld [vmem:[#allocation2 + $0x2c] sm:$0x1] }
  0x73   : > { %3192 = vmatpush3.bf16.msra.mxu1 %v3351_v61  ;;  %3165 = vmatprep.subr.bf16.mxu0 %v3352_v38  ;;  %v2798_v61 = vcombine.low %v1441_v36, %v1455_v60  ;;  %v1478_v6 = vrot.slane %v1477_v40, 4  ;;  %v2064_v31 = vshrl.u32 %v2023_v2, 16  ;;  %v2067_v35 = vshll.u32 %v2023_v2, 16  ;;  %v3372_v36 = vld [vmem:[#allocation2 + $0x10] ss:$8 sps:$4 sm:$0xff]  }
  0x74   : > { %3225 = vmatprep.subr.bf16.mxu1 %v3353_v13  ;;  %v2078_v45 = vshrl.u32 %v2025_v30, 16  ;;  %v2073_v39 = vshll.u32 %v3934_v8, 16  ;;  %v2081_v57 = vshll.u32 %v2025_v30, 16  ;;  %v3968_v11 = vld [vmem:[#allocation2 + $0x34] sm:$0x1] }
  0x75   : > { %v2066_v22 = vrot.slane %v2064_v31, 4  ;;  %v2069_v53 = vrot.slane %v2067_v35, 5 }
  0x76   : > { %3166 = vmatpush3.bf16.msra.mxu0 %v3352_v38  ;;  %3194 = vmatmul.mubr.bf16.vlgmr.msra.gmra.mxu1 %v2833_v63  ;;  %v2021_v63 = vld [vmem:[#allocation2 + $0x18] sm:$0xf]  ;;  %v2080_v55 = vrot.slane %v2078_v45, 4  ;;  %v2075_v4 = vrot.slane %v2073_v39, 5 }
  0x77   : > { %3226 = vmatpush3.bf16.msra.mxu1 %v3353_v13  ;;  %3167 = vmatprep.subr.bf16.mxu0 %v3354_v0  ;;  %v2050_v38 = vshrl.u32 %v2021_v63, 16  ;;  %v2053_v41 = vshll.u32 %v2021_v63, 16  ;;  %v2038_v13 = vrot.slane %v2036_v15, 4  ;;  %v346_v15 = vsel %vm3496_vm2, 0, %v345_v9 }
  0x78   : > { %3227 = vmatprep.subr.bf16.mxu1 %v3355_v37  ;;  %3197 = vmatprep.mubr.bf16.mxu1 %v2834_v59  ;;  %v2070_v59 = vor.u32 %v2069_v53, %v2066_v22  ;;  %347 = vst [vmem:[#allocation2 + $0x48] sm:$0x1] %v346_v15  ;;  %v4000_v22 = vld [vmem:[%s4169_s3 + $0x230] sm:$0xff]  }
  0x79   : > { %v1371_v12 = vld [vmem:[#allocation2 + $0x44] sm:$0x1]  ;;  %v2052_v25 = vrot.slane %v2050_v38, 4  ;;  %v2042_v54 = vor.u32 %v2041_v20, %v2038_v13  ;;  %v2055_v26 = vrot.slane %v2053_v41, 5  ;;  %v2029_v38 = vld [vmem:[#allocation2 + $0x38] sm:$0xf] }
  0x7a   : > { %3168 = vmatpush3.bf16.msra.mxu0 %v3354_v0  ;;  %v1480_v51 = vshll.u32 %v1371_v12, 16  ;;  %v1692_v23 = vrot.slane %v1371_v12, 5  ;;  %v2061_v0 = vrot.slane %v2059_v42, 5  ;;  %v3970_v41 = vld [vmem:[#allocation2 + $0x3c] sm:$0x1]  ;;  %v3367_v42 = vld [vmem:[%s4169_s3 + $0x1c0] sm:$0xff]  }
  0x7b   : > { %3228 = vmatpush3.bf16.msra.mxu1 %v3355_v37  ;;  %3201 = vmatprep.subr.bf16.mxu0 %v3356_v47  ;;  %v2043_v7 = vrot.slane %v2042_v54, 4  ;;  %v2056_v34 = vor.u32 %v2055_v26, %v2052_v25  ;;  %v2092_v12 = vshrl.u32 %v2027_v16, 16  ;;  %v2101_v13 = vshll.u32 %v3968_v11, 16  ;;  %v3981_v26 = vld [vmem:[#allocation2 + $0x44] sm:$0x1] }
  0x7c   : > { %3229 = vmatprep.subr.bf16.mxu1 %v3357_v58  ;;  %v1482_v28 = vrot.slane %v1480_v51, 5  ;;  %v1693_v29 = vsel %vm3727_vm12, %v2815_v56, %v1692_v23  ;;  %v2106_v20 = vshrl.u32 %v2029_v38, 16  ;;  %v2109_v51 = vshll.u32 %v2029_v38, 16  ;;  %v2031_v23 = vld [vmem:[#allocation2 + $0x40] sm:$0xf] }
  0x7d   : > { %3170 = vmatmul.mubr.bf16.vlgmr.msra.gmra.mxu0 %v2797_v62  ;;  %v2835_v33 = vcombine.low %v1689_v19, %v1693_v29  ;;  %v2048_v49 = vsel %vm3589_vm9, %v2043_v7, %v2047_v14  ;;  %v2057_v52 = vrot.slane %v2056_v34, 4  ;;  %v2083_v62 = vrot.slane %v2081_v57, 5  ;;  %v3373_v38 = vld [vmem:[#allocation2 + $0x20] ss:$8 sps:$4 sm:$0xff]  }
  0x7e   : > { %3202 = vmatpush3.bf16.msra.mxu0 %v3356_v47  ;;  %3173 = vmatprep.mubr.bf16.mxu0 %v2798_v61  ;;  %v1483_v37 = vsel %vm3589_vm9, %v1478_v6, %v1482_v28  ;;  %v3366_v61 = vld [vmem:[%s4169_s3 + $0x190] sm:$0xff]   ;;  %v2071_v6 = vrot.slane %v2070_v59, 4  ;;  %v2095_v19 = vshll.u32 %v2027_v16, 16  ;;  %v2094_v14 = vrot.slane %v2092_v12, 4  ;;  %v2302_v12 = vld [vmem:[#allocation2 + $0x18] sm:$0xe] }
  0x7f   : > { %3230 = vmatpush3.bf16.msra.mxu1 %v3357_v58  ;;  %3203 = vmatprep.subr.bf16.mxu0 %v3358_v1  ;;  %v2799_v47 = vcombine.low %v1469_v27, %v1483_v37  ;;  %v2087_v58 = vshll.u32 %v3941_v17, 16  ;;  %v2062_v40 = vsel %vm3589_vm9, %v2057_v52, %v2061_v0  ;;  %v378_v54 = vsel %vm3519_vm4, 0, %v377_v18  ;;  %v3368_v0 = vld [vmem:[%s4169_s3 + $0x188] sm:$0xff]   ;;  %v2305_v59 = vld [vmem:[#allocation2 + $0x30] sm:$0xe] }
  0x80   : > { %3231 = vmatprep.subr.bf16.mxu1 %v3359_v5  ;;  %3198 = vmatmul.mubr.bf16.gmra.mxu1 %v2835_v33  ;;  %v2888_v60 = vcombine.low %v2048_v49, %v2062_v40  ;;  %v2097_v25 = vrot.slane %v2095_v19, 5  ;;  %v2108_v27 = vrot.slane %v2106_v20, 4  ;;  %v2111_v28 = vrot.slane %v2109_v51, 5  ;;  %379 = vst [vmem:[#allocation2 + $0x4c] sm:$0x1] %v378_v54 }
  0x81   : > { %v2089_v56 = vrot.slane %v2087_v58, 5  ;;  %v2120_v29 = vshrl.u32 %v2031_v23, 16  ;;  %v2103_v31 = vrot.slane %v2101_v13, 5  ;;  %v2123_v33 = vshll.u32 %v2031_v23, 16  ;;  %v2033_v52 = vld [vmem:[#allocation2 + $0x48] sm:$0xf] }
  0x82   : > { %3204 = vmatpush3.bf16.msra.mxu0 %v3358_v1  ;;  %v3364_v1 = vld [vmem:[%s4169_s3 + $0x198] sm:$0xff]   ;;  %3241 = vmatprep.mubr.bf16.mxu1 %v2888_v60  ;;  %v2098_v30 = vor.u32 %v2097_v25, %v2094_v14  ;;  %v2129_v7 = vshll.u32 %v3981_v26, 16  ;;  %v2112_v34 = vor.u32 %v2111_v28, %v2108_v27  ;;  %v2134_v57 = vshrl.u32 %v2033_v52, 16  ;;  %v2301_v16 = vld [vmem:[#allocation2 + $0x10] sm:$0xe] }
  0x83   : > { %3232 = vmatpush3.bf16.msra.mxu1 %v3359_v5  ;;  %3205 = vmatprep.subr.bf16.mxu0 %v3360_v21  ;;  %v2084_v5 = vor.u32 %v2083_v62, %v2080_v55  ;;  %v2122_v37 = vrot.slane %v2120_v29, 4  ;;  %v2137_v58 = vshll.u32 %v2033_v52, 16  ;;  %v2347_v15 = vrot.slane %v3970_v41, 5  ;;  %v3376_v19 = vld [vmem:[#allocation2 + $0x30] ss:$8 sps:$4 sm:$0xff]  }
  0x84   : > { %3233 = vmatprep.subr.bf16.mxu1 %v3361_v24  ;;  %v2099_v45 = vrot.slane %v2098_v30, 4  ;;  %v2113_v49 = vrot.slane %v2112_v34, 4  ;;  %v2131_v53 = vrot.slane %v2129_v7, 5  ;;  %v2327_v51 = vrot.slane %v3920_v10, 5  ;;  %v3379_v27 = vld [vmem:[%s4169_s3 + $0x210] sm:$0xff]   ;;  %v3381_v34 = vld [vmem:[%s4169_s3 + $0x200] sm:$0xff]  }
  0x85   : > { %3174 = vmatmul.mubr.bf16.gmra.mxu0 %v2799_v47  ;;  %v2085_v63 = vrot.slane %v2084_v5, 4  ;;  %v2125_v47 = vrot.slane %v2123_v33, 5  ;;  %v2331_v23 = vrot.slane %v3922_v50, 5  ;;  %v2307_v28 = vld [vmem:[#allocation2 + $0x40] sm:$0xe]  ;;  %v2351_v30 = vrot.slane %v3981_v26, 5 }
  0x86   : > { %3206 = vmatpush3.bf16.msra.mxu0 %v3360_v21  ;;  %3217 = vmatprep.mubr.bf16.mxu0 %v3372_v36  ;;  %v2115_v21 = vshll.u32 %v3970_v41, 16  ;;  %v2104_v39 = vsel %vm3589_vm9, %v2099_v45, %v2103_v31  ;;  %v2306_v36 = vld [vmem:[#allocation2 + $0x38] sm:$0xe]  ;;  %v2900_v41 = vrot.slane %v2301_v16, 9  ;;  %v2308_v29 = vld [vmem:[#allocation2 + $0x48] sm:$0xe] }
  0x87   : > { %3234 = vmatpush3.bf16.msra.mxu1 %v3361_v24  ;;  %3207 = vmatprep.subr.bf16.mxu0 %v3362_v43  ;;  %v2076_v24 = vsel %vm3589_vm9, %v2071_v6, %v2075_v4  ;;  %v2090_v2 = vsel %vm3589_vm9, %v2085_v63, %v2089_v56  ;;  %v2126_v55 = vor.u32 %v2125_v47, %v2122_v37  ;;  %v4007_v62 = vld [vmem:[#allocation2 + $0x4c] sm:$0x1]  ;;  %v2139_v4 = vrot.slane %v2137_v58, 5  ;;  %v2303_v26 = vld [vmem:[#allocation2 + $0x20] sm:$0xe] }
  0x88   : > { %3235 = vmatprep.subr.bf16.mxu1 %v3363_v44  ;;  %v2117_v35 = vrot.slane %v2115_v21, 5  ;;  %v2143_v5 = vshll.u32 %v4007_v62, 16  ;;  %v2343_v6 = vrot.slane %v3968_v11, 5  ;;  %v3374_v56 = vld [vmem:[%s4169_s3 + $0x228] sm:$0xff]   ;;  %v2905_v63 = vrot.slane %v2306_v36, 9 }
  0x89   : > { %v2901_v21 = vrot.slane %v2302_v12, 9  ;;  %v2328_v10 = vsel %vm3727_vm12, %v2900_v41, %v2327_v51  ;;  %v2355_v31 = vrot.slane %v4007_v62, 5  ;;  %v2906_v33 = vrot.slane %v2307_v28, 9 }
  0x8a   : > { %3208 = vmatpush3.bf16.msra.mxu0 %v3362_v43  ;;  %v2889_v43 = vcombine.low %v2076_v24, %v2090_v2  ;;  %v2118_v40 = vsel %vm3589_vm9, %v2113_v49, %v2117_v35  ;;  %v2348_v20 = vsel %vm3727_vm12, %v2905_v63, %v2347_v15  ;;  %v3375_v24 = vld [vmem:[%s4169_s3 + $0x220] sm:$0xff]   ;;  %v2907_v7 = vrot.slane %v2308_v29, 9 }
  0x8b   : > { %3236 = vmatpush3.bf16.msra.mxu1 %v3363_v44  ;;  %3209 = vmatprep.subr.bf16.mxu0 %v3364_v1  ;;  %v3370_v44 = vld [vmem:[%s4169_s3 + $0x180] sm:$0xff]   ;;  %v2890_v60 = vcombine.low %v2104_v39, %v2118_v40  ;;  %v2332_v50 = vsel %vm3727_vm12, %v2901_v21, %v2331_v23  ;;  %v2352_v35 = vsel %vm3727_vm12, %v2906_v33, %v2351_v30  ;;  %v2335_v45 = vrot.slane %v3934_v8, 5 }
  0x8c   : > { %3237 = vmatprep.subr.bf16.mxu1 %v3365_v3  ;;  %v2924_v2 = vcombine.low %v2328_v10, %v2332_v50  ;;  %v2356_v37 = vsel %vm3727_vm12, %v2907_v7, %v2355_v31  ;;  %v2339_v49 = vrot.slane %v3941_v17, 5 }
  0x8e   : > { %3210 = vmatpush3.bf16.msra.mxu0 %v3364_v1  ;;  %v2127_v1 = vrot.slane %v2126_v55, 4 }
  0x8f   : > { %3238 = vmatpush3.bf16.msra.mxu1 %v3365_v3  ;;  %3211 = vmatprep.subr.bf16.mxu0 %v3366_v61  ;;  %v2136_v3 = vrot.slane %v2134_v57, 4 }
  0x90   : > { %3239 = vmatprep.subr.bf16.mxu1 %v3367_v42  ;;  %v2132_v11 = vsel %vm3589_vm9, %v2127_v1, %v2131_v53 }
  0x91   : > { %v2140_v9 = vor.u32 %v2139_v4, %v2136_v3 }
  0x92   : > { %3212 = vmatpush3.bf16.msra.mxu0 %v3366_v61  ;;  %v2904_v61 = vrot.slane %v2305_v59, 9 }
  0x93   : > { %3240 = vmatpush3.bf16.msra.mxu1 %v3367_v42  ;;  %3213 = vmatprep.subr.bf16.mxu0 %v3368_v0  ;;  %v2145_v42 = vrot.slane %v2143_v5, 5  ;;  %v2141_v13 = vrot.slane %v2140_v9, 4 }
  0x94   : > { %3273 = vmatprep.subr.bf16.mxu1 %v3991_v32  ;;  %v2344_v18 = vsel %vm3727_vm12, %v2904_v61, %v2343_v6 }
  0x95   : > { %v2146_v14 = vsel %vm3589_vm9, %v2141_v13, %v2145_v42  ;;  %v2926_v54 = vcombine.low %v2344_v18, %v2348_v20 }
  0x96   : > { %3214 = vmatpush3.bf16.msra.mxu0 %v3368_v0  ;;  %3242 = vmatmul.mubr.bf16.vlgmr.msra.gmra.mxu1 %v2889_v43  ;;  %v2891_v25 = vcombine.low %v2132_v11, %v2146_v14  ;;  %v3377_v0 = vld [vmem:[#allocation2 + $0x40] ss:$8 sps:$4 sm:$0xff]  }
  0x97   : > { %3281 = vmatpush3.bf16.msra.mxu1 %v3991_v32  ;;  %3215 = vmatprep.subr.bf16.mxu0 %v3370_v44  ;;  %v2304_v43 = vld [vmem:[#allocation2 + $0x28] sm:$0xe] }
  0x98   : > { %3274 = vmatprep.subr.bf16.mxu1 %v4000_v22  ;;  %3245 = vmatprep.mubr.bf16.mxu1 %v2890_v60  ;;  %v2903_v47 = vrot.slane %v2304_v43, 9 }
  0x9a   : > { %3216 = vmatpush3.bf16.msra.mxu0 %v3370_v44  ;;  %v2927_v44 = vcombine.low %v2352_v35, %v2356_v37  ;;  %v2340_v53 = vsel %vm3727_vm12, %v2903_v47, %v2339_v49 }
  0x9b   : > { %3282 = vmatpush3.bf16.msra.mxu1 %v4000_v22  ;;  %3249 = vmatprep.subr.bf16.mxu0 %v3991_v32 }
  0x9c   : > { %3275 = vmatprep.subr.bf16.mxu1 %v3374_v56 }
  0x9d   : > { %3218 = vmatmul.mubr.bf16.vlgmr.msra.gmra.mxu0 %v3373_v38 }
  0x9e   : > { %3250 = vmatpush3.bf16.msra.mxu0 %v3991_v32  ;;  %3221 = vmatprep.mubr.bf16.mxu0 %v3376_v19  ;;  %v3380_v32 = vld [vmem:[%s4169_s3 + $0x208] sm:$0xff]  }
  0x9f   : > { %3283 = vmatpush3.bf16.msra.mxu1 %v3374_v56  ;;  %3251 = vmatprep.subr.bf16.mxu0 %v4000_v22 }
  0xa0   : > { %3276 = vmatprep.subr.bf16.mxu1 %v3375_v24  ;;  %3246 = vmatmul.mubr.bf16.gmra.mxu1 %v2891_v25 }
  0xa1   : > { %3269 = vmatprep.mubr.bf16.mxu1 %v2926_v54 }
  0xa2   : > { %3252 = vmatpush3.bf16.msra.mxu0 %v4000_v22  ;;  %v2902_v22 = vrot.slane %v2303_v26, 9 }
  0xa3   : > { %3284 = vmatpush3.bf16.msra.mxu1 %v3375_v24  ;;  %3253 = vmatprep.subr.bf16.mxu0 %v3374_v56 }
  0xa4   : > { %3277 = vmatprep.subr.bf16.mxu1 %v3378_v46  ;;  %v2336_v52 = vsel %vm3727_vm12, %v2902_v22, %v2335_v45 }
  0xa5   : > { %3222 = vmatmul.mubr.bf16.gmra.mxu0 %v3377_v0  ;;  %v2925_v39 = vcombine.low %v2336_v52, %v2340_v53 }
  0xa6   : > { %3254 = vmatpush3.bf16.msra.mxu0 %v3374_v56  ;;  %3265 = vmatprep.mubr.bf16.mxu0 %v2924_v2 }
  0xa7   : > { %3285 = vmatpush3.bf16.msra.mxu1 %v3378_v46  ;;  %3255 = vmatprep.subr.bf16.mxu0 %v3375_v24 }
  0xa8   : > { %3278 = vmatprep.subr.bf16.mxu1 %v3379_v27 }
  0xaa   : > { %3256 = vmatpush3.bf16.msra.mxu0 %v3375_v24 }
  0xab   : > { %3286 = vmatpush3.bf16.msra.mxu1 %v3379_v27  ;;  %3257 = vmatprep.subr.bf16.mxu0 %v3378_v46 }
  0xac   : > { %3279 = vmatprep.subr.bf16.mxu1 %v3380_v32 }
  0xae   : > { %3258 = vmatpush3.bf16.msra.mxu0 %v3378_v46 }
  0xaf   : > { %3287 = vmatpush3.bf16.msra.mxu1 %v3380_v32  ;;  %3259 = vmatprep.subr.bf16.mxu0 %v3379_v27 }
  0xb0   : > { %3280 = vmatprep.subr.bf16.mxu1 %v3381_v34 }
  0xb2   : > { %3260 = vmatpush3.bf16.msra.mxu0 %v3379_v27 }
  0xb3   : > { %3288 = vmatpush3.bf16.msra.mxu1 %v3381_v34  ;;  %3261 = vmatprep.subr.bf16.mxu0 %v3380_v32 }
  0xb6   : > { %3262 = vmatpush3.bf16.msra.mxu0 %v3380_v32  ;;  %3270 = vmatmul.mubr.bf16.vlgmr.msra.gmra.mxu1 %v2927_v44 }
  0xb7   : > { %3263 = vmatprep.subr.bf16.mxu0 %v3381_v34 }
  0xba   : > { %3264 = vmatpush3.bf16.msra.mxu0 %v3381_v34 }
  0xbd   : > { %3266 = vmatmul.mubr.bf16.vlgmr.msra.gmra.mxu0 %v2925_v39 }
  0xee   : > { %v4063_v55 = vpop.f32.mrf.mxu1 }
  0xf0   : > { %v4065_v8 = vpop.f32.mrf.mxu1 }
  0xf2   : > { %v4069_v17 = vpop.f32.mrf.mxu1 }
  0xf4   : > { %v4073_v40 = vpop.f32.mrf.mxu1 }
  0xf7   : > { %v4067_v57 = vpop.f32.mrf.mxu0 }
  0xf9   : > { %v4071_v58 = vpop.f32.mrf.mxu0 }
  0xfb   : > { %v4075_v36 = vpop.f32.mrf.mxu0 }
  0xfd   : > { %v4077_v60 = vpop.f32.mrf.mxu0 }
 0x10e   : > { %v3103_v59 = vpop.f32.mrf.mxu1 }
 0x110   : > { %v958_v48 = vpop.f32.mrf.mxu1 }
 0x112   : > { %v3104_v1 = vpop.f32.mrf.mxu1 }
 0x114   : > { %v961_v4 = vpop.f32.mrf.mxu1 }
 0x115   : > { %v3079_v62 = vpop.f32.mrf.mxu0 }
 0x116   : > { %v4079_v61 = vpop.f32.mrf.mxu1  ;;  %v967_v26 = vadd.f32 %v3103_v59, %v3079_v62  ;;  %v943_v59 = vadd.f32 %v4065_v8, %v4071_v58 }
 0x117   : > { %v821_v3 = vpop.f32.mrf.mxu0 }
 0x118   : > { %v4081_v56 = vpop.f32.mrf.mxu1  ;;  %v959_v22 = vadd.f32 %v958_v48, %v821_v3 }
 0x119   : > { %v3080_v5 = vpop.f32.mrf.mxu0 }
 0x11a   : > { %v4083_v63 = vpop.f32.mrf.mxu1  ;;  %v970_v47 = vadd.f32 %v3104_v1, %v3080_v5  ;;  %v954_v5 = vadd.f32 %v4069_v17, %v4075_v36 }
 0x11b   : > { %v824_v6 = vpop.f32.mrf.mxu0 }
 0x11c   : > { %v4085_v16 = vpop.f32.mrf.mxu1  ;;  %v962_v39 = vadd.f32 %v961_v4, %v824_v6 }
 0x11d   : > { %v3123_v9 = vpop.f32.mrf.mxu0 }
 0x11f   : > { %v1147_v15 = vpop.f32.mrf.mxu0 }
 0x120   : > { %v1178_v4 = vadd.f32 %v1147_v15, %v943_v59 }
 0x121   : > { %v3124_v38 = vpop.f32.mrf.mxu0 }
 0x123   : > { %v4087_v12 = vpop.f32.mrf.mxu0 }
 0x124   : > { %v3151_v42 = vpop.f32.mrf.mxu1 }
 0x125   : > { %v3127_v11 = vpop.f32.mrf.mxu0 }
 0x126   : > { %v1333_v19 = vpop.f32.mrf.mxu1  ;;  %v1184_v45 = vadd.f32 %v3127_v11, %v967_v26 }
 0x127   : > { %v1163_v18 = vpop.f32.mrf.mxu0 }
 0x128   : > { %v3152_v13 = vpop.f32.mrf.mxu1  ;;  %v1182_v49 = vadd.f32 %v1163_v18, %v959_v22 }
 0x129   : > { %v3128_v41 = vpop.f32.mrf.mxu0 }
 0x12a   : > { %v1336_v20 = vpop.f32.mrf.mxu1 }
 0x12b   : > { %v1166_v21 = vpop.f32.mrf.mxu0 }
 0x136   : > { %v4089_v51 = vpop.f32.mrf.mxu1 }
 0x138   : > { %v4091_v23 = vpop.f32.mrf.mxu1 }
 0x13a   : > { %v4093_v14 = vpop.f32.mrf.mxu1 }
 0x13c   : > { %v4095_v54 = vpop.f32.mrf.mxu1 }
 0x13d   : > { %v3171_v24 = vpop.f32.mrf.mxu0  ;;  %4184 = vst [vmem:[#allocation3_spill] sm:$0xff] %v4095_v54  ;;  %v951_v54 = vadd.f32 %v4063_v55, %v4067_v57  ;;  %v946_v55 = vadd.f32 %v4073_v40, %v4077_v60 }
 0x13f   : > { %v1599_v25 = vpop.f32.mrf.mxu0  ;;  %v1180_v62 = vadd.f32 %v3123_v9, %v951_v54 }
 0x140   : > { %v3199_v50 = vpop.f32.mrf.mxu1 }
 0x141   : > { %v4097_v10 = vpop.f32.mrf.mxu0  ;;  %v1350_v57 = vadd.f32 %v4079_v61, %v1180_v62 }
 0x142   : > { %v1825_v0 = vpop.f32.mrf.mxu1 }
 0x143   : > { %v4099_v46 = vpop.f32.mrf.mxu0  ;;  %v1632_v17 = vadd.f32 %v3171_v24, %v1350_v57 }
 0x144   : > { %v3200_v27 = vpop.f32.mrf.mxu1 }
 0x145   : > { %v3175_v2 = vpop.f32.mrf.mxu0 }
 0x146   : > { %v1828_v29 = vpop.f32.mrf.mxu1 }
 0x147   : > { %v1615_v28 = vpop.f32.mrf.mxu0 }
 0x149   : > { %v3176_v32 = vpop.f32.mrf.mxu0 }
 0x14b   : > { %v1618_v31 = vpop.f32.mrf.mxu0 }
 0x156   : > { %v4101_v30 = vpop.f32.mrf.mxu1 }
 0x157   : > { %4185 = vst [vmem:[#allocation4_spill] sm:$0xff] %v4101_v30  ;;  %v1185_v30 = vadd.f32 %v3128_v41, %v970_v47 }
 0x158   : > { %v4103_v33 = vpop.f32.mrf.mxu1 }
 0x159   : > { %4186 = vst [vmem:[#allocation5_spill] sm:$0xff] %v4103_v33  ;;  %v1354_v33 = vadd.f32 %v3151_v42, %v1184_v45  ;;  %v1355_v3 = vadd.f32 %v3152_v13, %v1185_v30  ;;  %v1348_v13 = vadd.f32 %v4081_v56, %v1178_v4 }
 0x15a   : > { %v4107_v35 = vpop.f32.mrf.mxu1 }
 0x15b   : > { %4188 = vst [vmem:[#allocation7_spill] sm:$0xff] %v4107_v35  ;;  %v1352_v35 = vadd.f32 %v1333_v19, %v1182_v49  ;;  %v1637_v11 = vadd.f32 %v3176_v32, %v1355_v3  ;;  %v1181_v19 = vadd.f32 %v3124_v38, %v954_v5  ;;  %v1630_v54 = vadd.f32 %v1599_v25, %v1348_v13 }
 0x15c   : > { %v4113_v44 = vpop.f32.mrf.mxu1 }
 0x15d   : > { %v3219_v7 = vpop.f32.mrf.mxu0  ;;  %4190 = vst [vmem:[#allocation9_spill] sm:$0xff] %v4113_v44  ;;  %v1634_v1 = vadd.f32 %v1615_v28, %v1352_v35  ;;  %v1847_v36 = vadd.f32 %v3200_v27, %v1637_v11  ;;  %v1840_v27 = vadd.f32 %v4091_v23, %v1630_v54 }
 0x15f   : > { %v4105_v34 = vpop.f32.mrf.mxu0  ;;  %v1844_v58 = vadd.f32 %v1825_v0, %v1634_v1 }
 0x160   : > { %4187 = vst [vmem:[#allocation6_spill] sm:$0xff] %v4105_v34  ;;  %v3247_v53 = vpop.f32.mrf.mxu1  ;;  %v1183_v34 = vadd.f32 %v1166_v21, %v962_v39  ;;  %v1179_v21 = vadd.f32 %v4087_v12, %v946_v55  ;;  %v2936_v12 = vld [vmem:[%s4170_s4] ss:$0 sm:$0xff] }
 0x161   : > { %v4109_v37 = vpop.f32.mrf.mxu0  ;;  %v4195_v39 = vld [vmem:[#allocation5_spill] sm:$0xff] }
 0x162   : > { %4189 = vst [vmem:[#allocation8_spill] sm:$0xff] %v4109_v37  ;;  %v1636_v37 = vadd.f32 %v3175_v2, %v1354_v33  ;;  %v2278_v48 = vpop.f32.mrf.mxu1  ;;  %v1353_v6 = vadd.f32 %v1336_v20, %v1183_v34  ;;  %v1351_v20 = vadd.f32 %v4083_v63, %v1181_v19  ;;  %v1349_v0 = vadd.f32 %v4085_v16, %v1179_v21  ;;  %v4196_v5 = vld [vmem:[#allocation7_spill] sm:$0xff] }
 0x163   : > { %v4111_v43 = vpop.f32.mrf.mxu0  ;;  %v1842_v2 = vadd.f32 %v4089_v51, %v1632_v17 }
 0x164   : > { %v1846_v42 = vadd.f32 %v3199_v50, %v1636_v37  ;;  %v3248_v8 = vpop.f32.mrf.mxu1  ;;  %v1635_v9 = vadd.f32 %v1618_v31, %v1353_v6  ;;  %v1633_v56 = vadd.f32 %v4097_v10, %v1351_v20  ;;  %v4192_v37 = vld [vmem:[#allocation3_spill] sm:$0xff]  ;;  %v4197_v55 = vld [vmem:[#allocation9_spill] sm:$0xff] }
 0x165   : > { %v3223_v52 = vpop.f32.mrf.mxu0  ;;  %v2013_v32 = vadd.f32 %v3219_v7, %v1842_v2 }
 0x166   : > { %v2017_v41 = vadd.f32 %v3223_v52, %v1846_v42  ;;  %v2281_v40 = vpop.f32.mrf.mxu1  ;;  %v1845_v60 = vadd.f32 %v1828_v29, %v1635_v9  ;;  %v1631_v29 = vadd.f32 %v4099_v46, %v1349_v0  ;;  %v1843_v31 = vadd.f32 %v4093_v14, %v1633_v56 }
 0x167   : > { %v1996_v44 = vpop.f32.mrf.mxu0  ;;  %v4191_v33 = vld [vmem:[#allocation6_spill] sm:$0xff] }
 0x168   : > { %v2015_v15 = vadd.f32 %v1996_v44, %v1844_v58  ;;  %v2299_v61 = vadd.f32 %v3247_v53, %v2017_v41  ;;  %v2011_v34 = vadd.f32 %v4191_v33, %v1840_v27  ;;  %v1841_v26 = vadd.f32 %v4192_v37, %v1631_v29  ;;  %v4193_v44 = vld [vmem:[#allocation4_spill] sm:$0xff] }
 0x169   : > { %v3224_v18 = vpop.f32.mrf.mxu0  ;;  %v2295_v22 = vadd.f32 %v4193_v44, %v2013_v32  ;;  %v4194_v45 = vld [vmem:[#allocation8_spill] sm:$0xff] }
 0x16a   : > { %v2018_v38 = vadd.f32 %v3224_v18, %v1847_v36  ;;  %v2297_v24 = vadd.f32 %v2278_v48, %v2015_v15  ;;  %v2014_v47 = vadd.f32 %v4194_v45, %v1843_v31  ;;  %v2293_v59 = vadd.f32 %v4195_v39, %v2011_v34 }
 0x16b   : > { %v1999_v50 = vpop.f32.mrf.mxu0  ;;  %v2012_v62 = vadd.f32 %v4111_v43, %v1841_v26 }
 0x16c   : > { %v2016_v63 = vadd.f32 %v1999_v50, %v1845_v60  ;;  %v2300_v51 = vadd.f32 %v3248_v8, %v2018_v38  ;;  %v2296_v4 = vadd.f32 %v4196_v5, %v2014_v47 }
 0x16d   : > { %v2294_v57 = vadd.f32 %v4197_v55, %v2012_v62 }
 0x16e   : > { %v2298_v46 = vadd.f32 %v2281_v40, %v2016_v63 }
 0x176   : > { %v3271_v28 = vpop.f32.mrf.mxu1 }
 0x177   : > { %v2509_v25 = vadd.f32 %v3271_v28, %v2299_v61 }
 0x178   : > { %v2488_v16 = vpop.f32.mrf.mxu1 }
 0x179   : > { %v2524_v10 = vadd.f32 %v2936_v12, %v2509_v25  ;;  %v2507_v30 = vadd.f32 %v2488_v16, %v2297_v24 }
 0x17a   : > { %v3272_v23 = vpop.f32.mrf.mxu1 }
 0x17b   : > { %2532 = vst [vmem:[%s4140_s10 + $0x30] sm:$0xff] %v2524_v10  ;;  %v2522_v7 = vadd.f32 %v2936_v12, %v2507_v30  ;;  %v2510_v35 = vadd.f32 %v3272_v23, %v2300_v51  ;;  %v2554_v56 = vmul.f32 %v2524_v10, %v2524_v10 }
 0x17c   : > { %v2491_v49 = vpop.f32.mrf.mxu1 }
 0x17d   : > { %2530 = vst [vmem:[%s4140_s10 + $0x20] sm:$0xff] %v2522_v7  ;;  %v2525_v52 = vadd.f32 %v2936_v12, %v2510_v35  ;;  %v3267_v14 = vpop.f32.mrf.mxu0  ;;  %v2508_v53 = vadd.f32 %v2491_v49, %v2298_v46  ;;  %v2552_v40 = vmul.f32 %v2522_v7, %v2522_v7 }
 0x17e   : > { %v2505_v48 = vadd.f32 %v3267_v14, %v2295_v22 }
 0x17f   : > { %2533 = vst [vmem:[%s4140_s10 + $0x38] sm:$0xff] %v2525_v52  ;;  %v2523_v3 = vadd.f32 %v2936_v12, %v2508_v53  ;;  %v2472_v1 = vpop.f32.mrf.mxu0  ;;  %v2555_v24 = vmul.f32 %v2525_v52, %v2525_v52 }
 0x180   : > { %v2520_v6 = vadd.f32 %v2936_v12, %v2505_v48  ;;  %v2503_v42 = vadd.f32 %v2472_v1, %v2293_v59 }
 0x181   : > { %2531 = vst [vmem:[%s4140_s10 + $0x28] sm:$0xff] %v2523_v3  ;;  %v3268_v11 = vpop.f32.mrf.mxu0  ;;  %v2553_v38 = vmul.f32 %v2523_v3, %v2523_v3 }
 0x182   : > { %2528 = vst [vmem:[%s4140_s10 + $0x10] sm:$0xff] %v2520_v6  ;;  %v2518_v19 = vadd.f32 %v2936_v12, %v2503_v42  ;;  %v2506_v18 = vadd.f32 %v3268_v11, %v2296_v4  ;;  %v2550_v17 = vmul.f32 %v2520_v6, %v2520_v6 }
 0x183   : > { %v2475_v8 = vpop.f32.mrf.mxu0 }
 0x184   : > { %2526 = vst [vmem:[%s4140_s10] sm:$0xff] %v2518_v19  ;;  %v2521_v43 = vadd.f32 %v2936_v12, %v2506_v18  ;;  %v2504_v58 = vadd.f32 %v2475_v8, %v2294_v57  ;;  %v2548_v41 = vmul.f32 %v2518_v19, %v2518_v19 }
 0x186   : > { %2529 = vst [vmem:[%s4140_s10 + $0x18] sm:$0xff] %v2521_v43  ;;  %v2519_v9 = vadd.f32 %v2936_v12, %v2504_v58  ;;  %v2551_v20 = vmul.f32 %v2521_v43, %v2521_v43 }
 0x188   : > { %2527 = vst [vmem:[%s4140_s10 + $0x8] sm:$0xff] %v2519_v9  ;;  %v2534_v13 = vadd.f32 %v2519_v9, %v2518_v19  ;;  %v2549_v21 = vmul.f32 %v2519_v9, %v2519_v9 }
 0x18a   : > { %v2535_v36 = vadd.f32 %v2534_v13, %v2520_v6  ;;  %v2556_v15 = vadd.f32 %v2549_v21, %v2548_v41 }
 0x18c   : > { %v2536_v54 = vadd.f32 %v2535_v36, %v2521_v43  ;;  %v2557_v50 = vadd.f32 %v2556_v15, %v2550_v17 }
 0x18e   : > { %v2537_v60 = vadd.f32 %v2536_v54, %v2522_v7  ;;  %v2558_v61 = vadd.f32 %v2557_v50, %v2551_v20 }
 0x190   : > { %v2538_v0 = vadd.f32 %v2537_v60, %v2523_v3  ;;  %v2559_v2 = vadd.f32 %v2558_v61, %v2552_v40 }
 0x192   : > { %v2539_v28 = vadd.f32 %v2538_v0, %v2524_v10  ;;  %v2560_v12 = vadd.f32 %v2559_v2, %v2553_v38 }
 0x194   : > { %v2540_v63 = vadd.f32 %v2539_v28, %v2525_v52  ;;  %v2561_v25 = vadd.f32 %v2560_v12, %v2554_v56 }
 0x196   : > { %v2541_v27 = vrot.slane %v2540_v63, 4  ;;  %v2562_v29 = vadd.f32 %v2561_v25, %v2555_v24 }
 0x198   : > { %v2542_v32 = vadd.f32 %v2541_v27, %v2540_v63  ;;  %v2563_v16 = vrot.slane %v2562_v29, 4 }
 0x19a   : > { %v2543_v51 = vrot.slane %v2542_v32, 2  ;;  %v2564_v30 = vadd.f32 %v2563_v16, %v2562_v29 }
 0x19c   : > { %v2544_v31 = vadd.f32 %v2543_v51, %v2542_v32  ;;  %v2565_v33 = vrot.slane %v2564_v30, 2 }
 0x19e   : > { %v2545_v34 = vrot.slane %v2544_v31, 1  ;;  %v2566_v23 = vadd.f32 %v2565_v33, %v2564_v30 }
 0x1a0   : > { %v2546_v10 = vadd.f32 %v2545_v34, %v2544_v31  ;;  %v2567_v46 = vrot.slane %v2566_v23, 1 }
 0x1a2   : > { %2547 = vst [vmem:[%s262_s13] sm:$0x1] %v2546_v10  ;;  %v2568_v7 = vadd.f32 %v2567_v46, %v2566_v23 }
 0x1a4   : > { %2569 = vst [vmem:[%s262_s13 + $0x1] sm:$0x1] %v2568_v7 }
 0x1a5 PF: > { %s17_s21 = sadd.s32 1, %s3388_s21  }
 0x1a6   : > { %p14_p4 = scmp.ge.s32.totalorder %s17_s21, 4  }
 0x1a8   :  { %16 = sbr.rel (!%p14_p4) target bundleno = 1 (0x1), region = 93 }

</bundles_post_ra>
